<compile_context>
chip_gen: v7x
topology: tpu7x:2x2x1
jax: 0.10.0
libtpu: 0.0.40
codegen_flags: <defaults>
</compile_context>

<pallas_src>
import functools

import jax
import jax.numpy as jnp
from jax import lax
from jax.experimental import pallas as pl
from jax.experimental.pallas import tpu as pltpu

_LN_EPS = 1e-5


# ----------------------------------------------------------------------------- helpers
def _gelu(x):
    # exact (erf) GELU, matching nn.GELU() default
    return 0.5 * x * (1.0 + lax.erf(x * 0.7071067811865476))


def _bf16(x):
    # MXU operands in bf16; accumulation stays f32 via preferred_element_type.
    return x.astype(jnp.bfloat16)


def _attend(q, k, v, wo, bo, *, heads, d_k):
    """Multi-head attention with the head axis folded into the einsum batch dim.

    q: (G, Lq, heads*d_k); k, v: (G, Lk, heads*d_k); all f32.
    Heads are moved into the (well supported) single batch dim of the 3-D
    einsum via cheap lane slices + axis-0 concat, so there is exactly one score
    einsum, one softmax, one PV einsum and one output-projection matmul
    regardless of the head count.  Returns (G*Lq, c_out) float32.
    """
    G, Lq, _ = q.shape
    qb = jnp.concatenate([q[:, :, h * d_k:(h + 1) * d_k] for h in range(heads)], axis=0)
    kb = jnp.concatenate([k[:, :, h * d_k:(h + 1) * d_k] for h in range(heads)], axis=0)
    vb = jnp.concatenate([v[:, :, h * d_k:(h + 1) * d_k] for h in range(heads)], axis=0)
    s = jnp.einsum('bqd,bkd->bqk', _bf16(qb), _bf16(kb),
                   preferred_element_type=jnp.float32)
    s = s - jnp.max(s, axis=-1, keepdims=True)
    p = jnp.exp(s)
    p = p / jnp.sum(p, axis=-1, keepdims=True)   # exact division (softmax parity)
    # TODO(synk): nn.Dropout(p=0.1) on attention weights omitted (eval-mode identity).
    pv = jnp.einsum('bqk,bkd->bqd', _bf16(p), _bf16(vb),
                    preferred_element_type=jnp.float32)
    pvm = jnp.concatenate([pv[h * G:(h + 1) * G] for h in range(heads)], axis=-1)
    return jnp.dot(_bf16(pvm.reshape(G * Lq, heads * d_k)), wo,
                   preferred_element_type=jnp.float32) + bo


# ----------------------------------------------------------------------------- fused kernel
def _cmt_block_kernel(
        x_ref, kv_ref,
        hwq_ref, hbq_ref, hwkv_ref, hbkv_ref, hwo_ref, hbo_ref,
        vwqkv_ref, vqs_ref, vqt_ref, vbkv_ref, vwo_ref, vbo_ref,
        w1_ref, s1_ref, t1_ref, wdw_ref, s2_ref, t2_ref,
        w2_ref, s3_ref, t3_ref,
        out_ref,
        *, H, W, C, E, heads, d_k, c1, c2, window, Lk):
    hd = heads * d_k
    HW = H * W
    x = x_ref[...]                                      # (H, W, C) f32, one image
    x_tok = x.reshape(HW, C)

    # ---- horizontal attention -------------------------------------------
    # The global F.layer_norm(q, (b, hw, c)) is already folded into hwq/hbq by
    # the wrapper (scalar stats), so Q is one matmul on the raw tokens; K|V
    # share one fused projection on the pooled tokens.
    q = jnp.dot(_bf16(x_tok), hwq_ref[...],
                preferred_element_type=jnp.float32) + hbq_ref[...]
    kv = jnp.dot(_bf16(kv_ref[...]), hwkv_ref[...],
                 preferred_element_type=jnp.float32) + hbkv_ref[...]
    ha = _attend(q.reshape(1, HW, hd),
                 kv[:, :hd].reshape(1, Lk, hd),
                 kv[:, hd:].reshape(1, Lk, hd),
                 hwo_ref[...], hbo_ref[...], heads=heads, d_k=d_k)
    ha = ha.reshape(H, W, c1)

    # ---- vertical attention: all W//window columns batched ----------------
    if c2 > 0:
        nw = W // window
        Lv = H * window
        xg = jnp.concatenate(
            [x[:, j * window:(j + 1) * window, :].reshape(1, Lv, C)
             for j in range(nw)], axis=0)               # (nw, Lv, C)
        # One fused Q|K|V projection on the raw window tokens; the per-window
        # LayerNorm is applied to Q post-matmul via wrapper-computed
        # (scale, shift) -> no normalized token copy is ever materialized.
        proj = jnp.dot(_bf16(xg.reshape(nw * Lv, C)), vwqkv_ref[...],
                       preferred_element_type=jnp.float32).reshape(nw, Lv, 3 * hd)
        qv = proj[:, :, :hd] * vqs_ref[...].reshape(nw, 1, 1) \
            + vqt_ref[...].reshape(nw, 1, hd)
        kvv = proj[:, :, hd:] + vbkv_ref[...].reshape(1, 1, 2 * hd)
        va = _attend(qv, kvv[:, :, :hd], kvv[:, :, hd:],
                     vwo_ref[...], vbo_ref[...], heads=heads, d_k=d_k)
        va = jnp.concatenate(
            [va[j * Lv:(j + 1) * Lv].reshape(H, window, c2) for j in range(nw)],
            axis=1)
        attn = jnp.concatenate([ha, va], axis=-1)       # lane-dense (H, W, C)
    else:
        attn = ha

    # ---- residual add + per-image layer_norm over (c, h, w) ---------------
    r = attn + x
    mu = jnp.mean(r)
    var = jnp.mean(jnp.square(r - mu))
    y = (r - mu) * lax.rsqrt(var + _LN_EPS)             # (H, W, C)

    # ---- IRFFN: 1x1 conv+BN+GELU -> 3x3 DW conv+BN+GELU -> 1x1 conv+BN -> +res
    h1 = jnp.dot(_bf16(y.reshape(HW, C)), w1_ref[...],
                 preferred_element_type=jnp.float32)
    h1 = _gelu(h1 * s1_ref[...] + t1_ref[...]).reshape(H, W, E)

    # 3x3 depthwise conv (padding=1): build only two W-shifted (sublane axis)
    # copies; row (H) shifts are cheap major-axis slices.  No padded scratch
    # slab and no full-buffer zeroing.
    # TODO(synk): the two W-shifts could use pltpu.roll (XLU) + edge mask.
    wdw = wdw_ref[...]                                  # (9, E) f32 VPU taps
    zc = jnp.zeros((H, 1, E), jnp.float32)
    taps = (jnp.concatenate([zc, h1[:, :W - 1, :]], axis=1),   # [:, j] = h1[:, j-1]
            h1,
            jnp.concatenate([h1[:, 1:, :], zc], axis=1))       # [:, j] = h1[:, j+1]
    zr = jnp.zeros((1, W, E), jnp.float32)

    def shift_h(a, s):  # out[i] = a[i + s] with zero padding at the borders
        if s == 0:
            return a
        if s > 0:
            return jnp.concatenate([a[s:], zr], axis=0)
        return jnp.concatenate([zr, a[:s]], axis=0)

    acc = None
    for di in range(3):
        for dj in range(3):
            term = shift_h(taps[dj], di - 1) * wdw[di * 3 + dj]
            acc = term if acc is None else acc + term
    acc = _gelu(acc * s2_ref[...] + t2_ref[...])

    h2 = jnp.dot(_bf16(acc.reshape(HW, E)), w2_ref[...],
                 preferred_element_type=jnp.float32)
    h2 = h2 * s3_ref[...] + t3_ref[...]
    out_ref[...] = y + h2.reshape(H, W, C)


# ----------------------------------------------------------------------------- wrapper
def _pre_pad(x_nchw, window):
    # LMHSA.pre: pad width to a multiple of `window`.  NOTE: matches the
    # PyTorch reference, which never crops back, so the output keeps the
    # padded width when w % window != 0.
    w = x_nchw.shape[3]
    exceed = w % window
    if exceed:
        x_nchw = jnp.pad(x_nchw, ((0, 0), (0, 0), (0, 0), (0, window - exceed)))
    return x_nchw


def _pool_kv(x, params):
    # AvgPool2d(pool_stride) K/V tokens (floor semantics: ragged border dropped)
    b, h, w, c = x.shape
    if params['full_attn']:
        return x.reshape(b, h * w, c)
    s = params['pool_stride']
    hs, ws = h // s, w // s
    pooled = x[:, :hs * s, :ws * s, :].reshape(b, hs, s, ws, s, c).mean(axis=(2, 4))
    return pooled.reshape(b, hs * ws, c)


def _cmt_pallas(x_nhwc, kv_tok, hwq_run, hbq_run, vargs, params, *, c1, c2):
    B, H, W, C = x_nhwc.shape
    Lk = kv_tok.shape[1]
    lm, ir = params['lmhsa'], params['irffn']
    heads, d_k, window = params['heads'], params['d_k'], params['window']
    E = ir['w1'].shape[1]

    args = (x_nhwc, kv_tok,
            hwq_run, hbq_run, lm['hwkv'], lm['hbkv'], lm['hwo'], lm['hbo'],
            *vargs,
            ir['w1'], ir['s1'], ir['t1'], ir['wdw'], ir['s2'], ir['t2'],
            ir['w2'], ir['s3'], ir['t3'])

    kernel = functools.partial(
        _cmt_block_kernel, H=H, W=W, C=C, E=E, heads=heads, d_k=d_k,
        c1=c1, c2=c2, window=window, Lk=Lk)

    def _shared(a):  # small weights: constant block index -> fetched once
        return pl.BlockSpec(a.shape, lambda b, nd=a.ndim: (0,) * nd)

    in_specs = [pl.BlockSpec((None, H, W, C), lambda b: (b, 0, 0, 0)),
                pl.BlockSpec((None, Lk, C), lambda b: (b, 0, 0))]
    in_specs += [_shared(a) for a in args[2:]]

    return pl.pallas_call(
        kernel,
        out_shape=jax.ShapeDtypeStruct((B, H, W, C), jnp.float32),
        grid=(B,),
        in_specs=in_specs,
        out_specs=pl.BlockSpec((None, H, W, C), lambda b: (b, 0, 0, 0)),
        compiler_params=pltpu.CompilerParams(
            dimension_semantics=("parallel",),           # megacore split on v7x
            vmem_limit_bytes=64 * 1024 * 1024),
    )(*args)


def cmt_block_forward(x_nchw, params):
    """Full CMTBlock forward (LMHSA horizontal+vertical attention, residual,
    per-image layer norm, then IRFFN).  Input / output: NCHW float32."""
    window = params['window']
    heads, d_k = params['heads'], params['d_k']
    hd = heads * d_k
    lm = params['lmhsa']

    x_nchw = _pre_pad(x_nchw, window)
    b, c, h, w = x_nchw.shape
    x = jnp.transpose(x_nchw, (0, 2, 3, 1)).astype(jnp.float32)        # NHWC

    c1 = lm['hwo'].shape[1]
    c2 = c - c1

    kv_tok = _pool_kv(x, params)

    # F.layer_norm(q, (b, hw, c)) has scalar statistics over the whole tensor;
    # fold them (with the d_k**-0.5 scale already inside hwq) into the Q
    # projection so the kernel never materializes a normalized copy of x and
    # per-batch grid blocks remain exact.
    mu_h = jnp.mean(x)
    inv_h = lax.rsqrt(jnp.mean(jnp.square(x - mu_h)) + _LN_EPS)
    hwq_run = (lm['hwq'] * inv_h).astype(jnp.bfloat16)
    hbq_run = lm['hbq'] - mu_h * inv_h * lm['hcsq']

    if c2 > 0:
        # Per-window-column LayerNorm statistics (shared across the batch, as
        # in the reference); applied to Q inside the kernel after the fused
        # Q|K|V projection.
        nw = w // window
        xg = x.reshape(b, h, nw, window, c)
        mu_v = jnp.mean(xg, axis=(0, 1, 3, 4))
        var_v = jnp.mean(jnp.square(xg - mu_v.reshape(1, 1, nw, 1, 1)),
                         axis=(0, 1, 3, 4))
        inv_v = lax.rsqrt(var_v + _LN_EPS)
        vqs = inv_v.reshape(nw, 1)
        vqt = lm['vbq'] - (mu_v * inv_v).reshape(nw, 1) * lm['vcsq']
        vargs = (lm['vwqkv'], vqs, vqt, lm['vbkv'], lm['vwo'], lm['vbo'])
    else:   # dummies; the vertical branch is statically skipped in the kernel
        vargs = (jnp.zeros((c, 3 * hd), jnp.bfloat16),
                 jnp.zeros((1, 1), jnp.float32),
                 jnp.zeros((1, hd), jnp.float32),
                 jnp.zeros((1, 2 * hd), jnp.float32),
                 jnp.zeros((hd, 1), jnp.bfloat16),
                 jnp.zeros((1, 1), jnp.float32))

    out_nhwc = _cmt_pallas(x, kv_tok, hwq_run, hbq_run, vargs, params,
                           c1=c1, c2=c2)
    return jnp.transpose(out_nhwc, (0, 3, 1, 2))                       # NCHW


# ----------------------------------------------------------------------------- param init
def init_params(key, *, channels=32, d_k=8, heads=2, R=4.0, alpha=0.75,
                pool_stride=2, window=4, full_attn=False):
    c1 = int(channels * alpha)
    c2 = channels - c1
    hd = heads * d_k
    E = int(channels * R)
    keys = iter(jax.random.split(key, 64))

    def rnd(shape, scale=0.05):
        return jax.random.normal(next(keys), shape, jnp.float32) * scale

    score_scale = d_k ** (-0.5)

    def attn_branch(out_c):
        # Fold the d_k**-0.5 attention score scale into the Q projection.
        wq, bq = rnd((channels, hd)) * score_scale, rnd((1, hd)) * score_scale
        wk, bk = rnd((channels, hd)), rnd((1, hd))
        wv, bv = rnd((channels, hd)), rnd((1, hd))
        wo, bo = rnd((hd, out_c)), rnd((1, out_c))
        return dict(wq=wq, bq=bq, csq=jnp.sum(wq, axis=0, keepdims=True),
                    wk=wk, bk=bk, wv=wv, bv=bv, wo=wo, bo=bo)

    hb = attn_branch(c1)
    lmhsa = dict(
        # horizontal: wq kept f32 (the runtime LN fold rescales and re-casts
        # it to bf16); K|V fused into one matmul weight.
        hwq=hb['wq'], hbq=hb['bq'], hcsq=hb['csq'],
        hwkv=jnp.concatenate([hb['wk'], hb['wv']], axis=1).astype(jnp.bfloat16),
        hbkv=jnp.concatenate([hb['bk'], hb['bv']], axis=1),
        hwo=hb['wo'].astype(jnp.bfloat16), hbo=hb['bo'])
    if c2:
        vb = attn_branch(c2)
        lmhsa.update(
            # vertical: Q|K|V fused (they all see the same raw window tokens).
            vwqkv=jnp.concatenate([vb['wq'], vb['wk'], vb['wv']],
                                  axis=1).astype(jnp.bfloat16),
            vbq=vb['bq'], vcsq=vb['csq'],
            vbkv=jnp.concatenate([vb['bk'], vb['bv']], axis=1),
            vwo=vb['wo'].astype(jnp.bfloat16), vbo=vb['bo'])

    # IRFFN: fold conv bias + eval-mode BatchNorm into per-channel (scale, shift)
    bn_eps = 1e-5

    def bn_fold(nch, conv_bias):
        gamma = 1.0 + rnd((nch,))
        beta = rnd((nch,))
        rmean = rnd((nch,))
        rvar = 1.0 + jnp.abs(rnd((nch,)))
        scale = gamma / jnp.sqrt(rvar + bn_eps)
        shift = (conv_bias - rmean) * scale + beta
        return scale, shift

    w1 = rnd((channels, E)); b1 = rnd((E,))
    s1, t1 = bn_fold(E, b1)
    wdw = rnd((3, 3, E)); bdw = rnd((E,))
    s2, t2 = bn_fold(E, bdw)
    w2 = rnd((E, channels)); b2 = rnd((channels,))
    s3, t3 = bn_fold(channels, b2)

    irffn = dict(
        w1=w1.astype(jnp.bfloat16), s1=s1.reshape(1, E), t1=t1.reshape(1, E),
        wdw=wdw.reshape(9, E),                 # f32: used on the VPU, not the MXU
        s2=s2.reshape(1, E), t2=t2.reshape(1, E),
        w2=w2.astype(jnp.bfloat16), s3=s3.reshape(1, channels),
        t3=t3.reshape(1, channels))

    # vertical_heads is stored but unused in the reference forward pass.
    return dict(lmhsa=lmhsa, irffn=irffn, heads=heads, d_k=d_k,
                pool_stride=pool_stride, window=window, full_attn=full_attn)


# ----------------------------------------------------------------------------- pure-JAX reference
def _reference_forward(x_nchw, params):
    """Pure-JAX (f32, no Pallas) reference of the CMTBlock forward pass."""
    window = params['window']
    heads, d_k = params['heads'], params['d_k']
    hd = heads * d_k
    lm, ir = params['lmhsa'], params['irffn']

    x_nchw = _pre_pad(x_nchw, window)
    b, c, h, w = x_nchw.shape
    x = jnp.transpose(x_nchw, (0, 2, 3, 1)).astype(jnp.float32)
    c1 = lm['hwo'].shape[1]
    c2 = c - c1

    def ln_all(t):
        mu = jnp.mean(t)
        return (t - mu) * lax.rsqrt(jnp.mean(jnp.square(t - mu)) + _LN_EPS)

    def mhsa(q_tok, kv_tok, wq, bq, wkv, bkv, wo, bo):
        q = q_tok @ wq.astype(jnp.float32) + bq
        kv = kv_tok @ wkv.astype(jnp.float32) + bkv
        k, v = kv[..., :hd], kv[..., hd:]
        g, lq, _ = q.shape
        lk = k.shape[1]
        s = jnp.einsum('bqhd,bkhd->bhqk', q.reshape(g, lq, heads, d_k),
                       k.reshape(g, lk, heads, d_k))
        p = jax.nn.softmax(s, axis=-1)
        o = jnp.einsum('bhqk,bkhd->bqhd', p, v.reshape(g, lk, heads, d_k))
        return o.reshape(g, lq, hd) @ wo.astype(jnp.float32) + bo

    ha = mhsa(ln_all(x.reshape(b, h * w, c)), _pool_kv(x, params),
              lm['hwq'], lm['hbq'], lm['hwkv'], lm['hbkv'], lm['hwo'], lm['hbo'])
    ha = ha.reshape(b, h, w, c1)

    if c2 > 0:
        wq_v, wkv_v = lm['vwqkv'][:, :hd], lm['vwqkv'][:, hd:]
        vas = []
        for i in range(0, w, window):
            xx = x[:, :, i:i + window, :].reshape(b, h * window, c)
            o = mhsa(ln_all(xx), xx, wq_v, lm['vbq'], wkv_v, lm['vbkv'],
                     lm['vwo'], lm['vbo'])
            vas.append(o.reshape(b, h, window, c2))
        attn = jnp.concatenate([ha, jnp.concatenate(vas, axis=2)], axis=-1)
    else:
        attn = ha

    r = attn + x
    mu = jnp.mean(r, axis=(1, 2, 3), keepdims=True)
    var = jnp.mean(jnp.square(r - mu), axis=(1, 2, 3), keepdims=True)
    y = (r - mu) * lax.rsqrt(var + _LN_EPS)

    h1 = _gelu(jnp.einsum('bhwc,ce->bhwe', y, ir['w1'].astype(jnp.float32))
               * ir['s1'] + ir['t1'])
    dw = lax.conv_general_dilated(
        h1, ir['wdw'].reshape(3, 3, 1, -1), window_strides=(1, 1),
        padding='SAME', dimension_numbers=('NHWC', 'HWIO', 'NHWC'),
        feature_group_count=h1.shape[-1])
    dw = _gelu(dw * ir['s2'] + ir['t2'])
    h2 = jnp.einsum('bhwe,ec->bhwc', dw, ir['w2'].astype(jnp.float32)) \
        * ir['s3'] + ir['t3']
    return jnp.transpose(y + h2, (0, 3, 1, 2))


# ----------------------------------------------------------------------------- main
if __name__ == "__main__":
    key = jax.random.PRNGKey(0)
    pkey, xkey = jax.random.split(key)

    # CMTBlock(pool_stride=2, vertical_heads=2, d_k=8, num_heads=2, R=4.0,
    #          in_channels=32, alpha=0.75, full_attn=False)
    params = init_params(pkey, channels=32, d_k=8, heads=2, R=4.0, alpha=0.75,
                         pool_stride=2, window=4, full_attn=False)

    x = jax.random.normal(xkey, (2, 32, 8, 8), jnp.float32)            # NCHW
    out = jax.block_until_ready(cmt_block_forward(x, params))
    assert out.shape == (2, 32, 8, 8)
    assert bool(jnp.all(jnp.isfinite(out)))

    ref = jax.block_until_ready(_reference_forward(x, params))
    err = float(jnp.max(jnp.abs(out - ref)))
    assert err < 5e-2, f"kernel vs reference max-abs-err {err}"
    print("KERNEL_OK")
</pallas_src>

<mosaic_0001>
module attributes {stable_mosaic.version = 11 : i64} {
  func.func @_cmt_block_kernel(%arg0: i32, %arg1: memref<1x8x8x32xf32, #tpu.memory_space<vmem>>, %arg2: memref<1x16x32xf32, #tpu.memory_space<vmem>>, %arg3: memref<32x16xbf16, #tpu.memory_space<vmem>>, %arg4: memref<1x16xf32, #tpu.memory_space<vmem>>, %arg5: memref<32x32xbf16, #tpu.memory_space<vmem>>, %arg6: memref<1x32xf32, #tpu.memory_space<vmem>>, %arg7: memref<16x24xbf16, #tpu.memory_space<vmem>>, %arg8: memref<1x24xf32, #tpu.memory_space<vmem>>, %arg9: memref<32x48xbf16, #tpu.memory_space<vmem>>, %arg10: memref<2x1xf32, #tpu.memory_space<vmem>>, %arg11: memref<2x16xf32, #tpu.memory_space<vmem>>, %arg12: memref<1x32xf32, #tpu.memory_space<vmem>>, %arg13: memref<16x8xbf16, #tpu.memory_space<vmem>>, %arg14: memref<1x8xf32, #tpu.memory_space<vmem>>, %arg15: memref<32x128xbf16, #tpu.memory_space<vmem>>, %arg16: memref<1x128xf32, #tpu.memory_space<vmem>>, %arg17: memref<1x128xf32, #tpu.memory_space<vmem>>, %arg18: memref<9x128xf32, #tpu.memory_space<vmem>>, %arg19: memref<1x128xf32, #tpu.memory_space<vmem>>, %arg20: memref<1x128xf32, #tpu.memory_space<vmem>>, %arg21: memref<128x32xbf16, #tpu.memory_space<vmem>>, %arg22: memref<1x32xf32, #tpu.memory_space<vmem>>, %arg23: memref<1x32xf32, #tpu.memory_space<vmem>>, %arg24: memref<1x8x8x32xf32, #tpu.memory_space<vmem>>) attributes {dimension_semantics = [#tpu.dimension_semantics<parallel>], iteration_bounds = array<i64: 2>, scalar_prefetch = 0 : i64, scratch_operands = 0 : i64, tpu.core_type = #tpu.core_type<tc>, window_params = [{transform_indices = @transform_0, window_bounds = array<i64: 1, 8, 8, 32>}, {transform_indices = @transform_1, window_bounds = array<i64: 1, 16, 32>}, {pipeline_mode = #tpu.pipeline_mode<synchronous>, transform_indices = @transform_2, window_bounds = array<i64: 32, 16>}, {pipeline_mode = #tpu.pipeline_mode<synchronous>, transform_indices = @transform_3, window_bounds = array<i64: 1, 16>}, {pipeline_mode = #tpu.pipeline_mode<synchronous>, transform_indices = @transform_4, window_bounds = array<i64: 32, 32>}, {pipeline_mode = #tpu.pipeline_mode<synchronous>, transform_indices = @transform_5, window_bounds = array<i64: 1, 32>}, {pipeline_mode = #tpu.pipeline_mode<synchronous>, transform_indices = @transform_6, window_bounds = array<i64: 16, 24>}, {pipeline_mode = #tpu.pipeline_mode<synchronous>, transform_indices = @transform_7, window_bounds = array<i64: 1, 24>}, {pipeline_mode = #tpu.pipeline_mode<synchronous>, transform_indices = @transform_8, window_bounds = array<i64: 32, 48>}, {pipeline_mode = #tpu.pipeline_mode<synchronous>, transform_indices = @transform_9, window_bounds = array<i64: 2, 1>}, {pipeline_mode = #tpu.pipeline_mode<synchronous>, transform_indices = @transform_10, window_bounds = array<i64: 2, 16>}, {pipeline_mode = #tpu.pipeline_mode<synchronous>, transform_indices = @transform_11, window_bounds = array<i64: 1, 32>}, {pipeline_mode = #tpu.pipeline_mode<synchronous>, transform_indices = @transform_12, window_bounds = array<i64: 16, 8>}, {pipeline_mode = #tpu.pipeline_mode<synchronous>, transform_indices = @transform_13, window_bounds = array<i64: 1, 8>}, {pipeline_mode = #tpu.pipeline_mode<synchronous>, transform_indices = @transform_14, window_bounds = array<i64: 32, 128>}, {pipeline_mode = #tpu.pipeline_mode<synchronous>, transform_indices = @transform_15, window_bounds = array<i64: 1, 128>}, {pipeline_mode = #tpu.pipeline_mode<synchronous>, transform_indices = @transform_16, window_bounds = array<i64: 1, 128>}, {pipeline_mode = #tpu.pipeline_mode<synchronous>, transform_indices = @transform_17, window_bounds = array<i64: 9, 128>}, {pipeline_mode = #tpu.pipeline_mode<synchronous>, transform_indices = @transform_18, window_bounds = array<i64: 1, 128>}, {pipeline_mode = #tpu.pipeline_mode<synchronous>, transform_indices = @transform_19, window_bounds = array<i64: 1, 128>}, {pipeline_mode = #tpu.pipeline_mode<synchronous>, transform_indices = @transform_20, window_bounds = array<i64: 128, 32>}, {pipeline_mode = #tpu.pipeline_mode<synchronous>, transform_indices = @transform_21, window_bounds = array<i64: 1, 32>}, {pipeline_mode = #tpu.pipeline_mode<synchronous>, transform_indices = @transform_22, window_bounds = array<i64: 1, 32>}, {transform_indices = @transform_23, window_bounds = array<i64: 1, 8, 8, 32>}]} {
    %c0 = arith.constant 0 : index
    %c0_0 = arith.constant 0 : index
    %c0_1 = arith.constant 0 : index
    %c0_2 = arith.constant 0 : index
    %0 = vector.load %arg1[%c0, %c0_0, %c0_1, %c0_2] : memref<1x8x8x32xf32, #tpu.memory_space<vmem>>, vector<1x8x8x32xf32>
    %1 = vector.shape_cast %0 : vector<1x8x8x32xf32> to vector<8x8x32xf32>
    %2 = vector.shape_cast %1 : vector<8x8x32xf32> to vector<64x32xf32>
    %3 = arith.truncf %2 : vector<64x32xf32> to vector<64x32xbf16>
    %c0_3 = arith.constant 0 : index
    %c0_4 = arith.constant 0 : index
    %4 = vector.load %arg3[%c0_3, %c0_4] : memref<32x16xbf16, #tpu.memory_space<vmem>>, vector<32x16xbf16>
    %cst = arith.constant dense<0.000000e+00> : vector<64x16xf32>
    %5 = tpu.matmul %3, %4, %cst {dimension_numbers = #tpu.dot_dimension_numbers<[1], [0], [0], [1], [0, 0, 1, 1], [], []>} : vector<64x32xbf16>, vector<32x16xbf16>, vector<64x16xf32> -> vector<64x16xf32>
    %c0_5 = arith.constant 0 : index
    %c0_6 = arith.constant 0 : index
    %6 = vector.load %arg4[%c0_5, %c0_6] : memref<1x16xf32, #tpu.memory_space<vmem>>, vector<1x16xf32>
    %7 = vector.broadcast %6 : vector<1x16xf32> to vector<64x16xf32>
    %8 = arith.addf %5, %7 : vector<64x16xf32>
    %c0_7 = arith.constant 0 : index
    %c0_8 = arith.constant 0 : index
    %c0_9 = arith.constant 0 : index
    %9 = vector.load %arg2[%c0_7, %c0_8, %c0_9] : memref<1x16x32xf32, #tpu.memory_space<vmem>>, vector<1x16x32xf32>
    %10 = vector.shape_cast %9 : vector<1x16x32xf32> to vector<16x32xf32>
    %11 = arith.truncf %10 : vector<16x32xf32> to vector<16x32xbf16>
    %c0_10 = arith.constant 0 : index
    %c0_11 = arith.constant 0 : index
    %12 = vector.load %arg5[%c0_10, %c0_11] : memref<32x32xbf16, #tpu.memory_space<vmem>>, vector<32x32xbf16>
    %cst_12 = arith.constant dense<0.000000e+00> : vector<16x32xf32>
    %13 = tpu.matmul %11, %12, %cst_12 {dimension_numbers = #tpu.dot_dimension_numbers<[1], [0], [0], [1], [0, 0, 1, 1], [], []>} : vector<16x32xbf16>, vector<32x32xbf16>, vector<16x32xf32> -> vector<16x32xf32>
    %c0_13 = arith.constant 0 : index
    %c0_14 = arith.constant 0 : index
    %14 = vector.load %arg6[%c0_13, %c0_14] : memref<1x32xf32, #tpu.memory_space<vmem>>, vector<1x32xf32>
    %15 = vector.broadcast %14 : vector<1x32xf32> to vector<16x32xf32>
    %16 = arith.addf %13, %15 : vector<16x32xf32>
    %17 = vector.shape_cast %8 : vector<64x16xf32> to vector<1x64x16xf32>
    %18 = vector.extract_strided_slice %16 {offsets = [0, 0], sizes = [16, 16], strides = [1, 1]} : vector<16x32xf32> to vector<16x16xf32>
    %19 = vector.shape_cast %18 : vector<16x16xf32> to vector<1x16x16xf32>
    %20 = vector.extract_strided_slice %16 {offsets = [0, 16], sizes = [16, 16], strides = [1, 1]} : vector<16x32xf32> to vector<16x16xf32>
    %21 = vector.shape_cast %20 : vector<16x16xf32> to vector<1x16x16xf32>
    %c0_15 = arith.constant 0 : index
    %c0_16 = arith.constant 0 : index
    %22 = vector.load %arg7[%c0_15, %c0_16] : memref<16x24xbf16, #tpu.memory_space<vmem>>, vector<16x24xbf16>
    %c0_17 = arith.constant 0 : index
    %c0_18 = arith.constant 0 : index
    %23 = vector.load %arg8[%c0_17, %c0_18] : memref<1x24xf32, #tpu.memory_space<vmem>>, vector<1x24xf32>
    %24 = vector.extract_strided_slice %17 {offsets = [0, 0, 0], sizes = [1, 64, 8], strides = [1, 1, 1]} : vector<1x64x16xf32> to vector<1x64x8xf32>
    %25 = vector.extract_strided_slice %17 {offsets = [0, 0, 8], sizes = [1, 64, 8], strides = [1, 1, 1]} : vector<1x64x16xf32> to vector<1x64x8xf32>
    %26 = tpu.concatenate %24, %25 in 0 : vector<1x64x8xf32>, vector<1x64x8xf32> -> vector<2x64x8xf32>
    %27 = vector.extract_strided_slice %19 {offsets = [0, 0, 0], sizes = [1, 16, 8], strides = [1, 1, 1]} : vector<1x16x16xf32> to vector<1x16x8xf32>
    %28 = vector.extract_strided_slice %19 {offsets = [0, 0, 8], sizes = [1, 16, 8], strides = [1, 1, 1]} : vector<1x16x16xf32> to vector<1x16x8xf32>
    %29 = tpu.concatenate %27, %28 in 0 : vector<1x16x8xf32>, vector<1x16x8xf32> -> vector<2x16x8xf32>
    %30 = vector.extract_strided_slice %21 {offsets = [0, 0, 0], sizes = [1, 16, 8], strides = [1, 1, 1]} : vector<1x16x16xf32> to vector<1x16x8xf32>
    %31 = vector.extract_strided_slice %21 {offsets = [0, 0, 8], sizes = [1, 16, 8], strides = [1, 1, 1]} : vector<1x16x16xf32> to vector<1x16x8xf32>
    %32 = tpu.concatenate %30, %31 in 0 : vector<1x16x8xf32>, vector<1x16x8xf32> -> vector<2x16x8xf32>
    %33 = arith.truncf %26 : vector<2x64x8xf32> to vector<2x64x8xbf16>
    %34 = arith.truncf %29 : vector<2x16x8xf32> to vector<2x16x8xbf16>
    "tpu.trace_start"() <{level = 10 : i32, message = "bqd,bkd->bqk"}> : () -> ()
    %cst_19 = arith.constant dense<0.000000e+00> : vector<2x64x16xf32>
    %35 = tpu.matmul %33, %34, %cst_19 {dimension_numbers = #tpu.dot_dimension_numbers<[2], [2], [1], [1], [0, 0, 0, 1, 1, 1], [0], [0]>} : vector<2x64x8xbf16>, vector<2x16x8xbf16>, vector<2x64x16xf32> -> vector<2x64x16xf32>
    "tpu.trace_stop"() : () -> ()
    %cst_20 = arith.constant dense<0xFF800000> : vector<2x64xf32>
    %36 = vector.multi_reduction <maximumf>, %35, %cst_20 [2] : vector<2x64x16xf32> to vector<2x64xf32>
    %37 = vector.shape_cast %36 : vector<2x64xf32> to vector<2x64x1xf32>
    %38 = vector.broadcast %37 : vector<2x64x1xf32> to vector<2x64x16xf32>
    %39 = arith.subf %35, %38 : vector<2x64x16xf32>
    %40 = math.exp %39 : vector<2x64x16xf32>
    %cst_21 = arith.constant dense<0.000000e+00> : vector<2x64xf32>
    %41 = vector.multi_reduction <add>, %40, %cst_21 [2] : vector<2x64x16xf32> to vector<2x64xf32>
    %42 = vector.shape_cast %41 : vector<2x64xf32> to vector<2x64x1xf32>
    %43 = vector.broadcast %42 : vector<2x64x1xf32> to vector<2x64x16xf32>
    %44 = arith.divf %40, %43 : vector<2x64x16xf32>
    %45 = arith.truncf %44 : vector<2x64x16xf32> to vector<2x64x16xbf16>
    %46 = arith.truncf %32 : vector<2x16x8xf32> to vector<2x16x8xbf16>
    "tpu.trace_start"() <{level = 10 : i32, message = "bqk,bkd->bqd"}> : () -> ()
    %cst_22 = arith.constant dense<0.000000e+00> : vector<2x64x8xf32>
    %47 = tpu.matmul %45, %46, %cst_22 {dimension_numbers = #tpu.dot_dimension_numbers<[2], [1], [1], [2], [0, 0, 0, 1, 1, 2], [0], [0]>} : vector<2x64x16xbf16>, vector<2x16x8xbf16>, vector<2x64x8xf32> -> vector<2x64x8xf32>
    "tpu.trace_stop"() : () -> ()
    %48 = vector.extract_strided_slice %47 {offsets = [0, 0, 0], sizes = [1, 64, 8], strides = [1, 1, 1]} : vector<2x64x8xf32> to vector<1x64x8xf32>
    %49 = vector.extract_strided_slice %47 {offsets = [1, 0, 0], sizes = [1, 64, 8], strides = [1, 1, 1]} : vector<2x64x8xf32> to vector<1x64x8xf32>
    %50 = tpu.concatenate %48, %49 in 2 : vector<1x64x8xf32>, vector<1x64x8xf32> -> vector<1x64x16xf32>
    %51 = vector.shape_cast %50 : vector<1x64x16xf32> to vector<64x16xf32>
    %52 = arith.truncf %51 : vector<64x16xf32> to vector<64x16xbf16>
    %cst_23 = arith.constant dense<0.000000e+00> : vector<64x24xf32>
    %53 = tpu.matmul %52, %22, %cst_23 {dimension_numbers = #tpu.dot_dimension_numbers<[1], [0], [0], [1], [0, 0, 1, 1], [], []>} : vector<64x16xbf16>, vector<16x24xbf16>, vector<64x24xf32> -> vector<64x24xf32>
    %54 = vector.broadcast %23 : vector<1x24xf32> to vector<64x24xf32>
    %55 = arith.addf %53, %54 : vector<64x24xf32>
    %56 = vector.shape_cast %55 : vector<64x24xf32> to vector<8x8x24xf32>
    %57 = vector.extract_strided_slice %1 {offsets = [0, 0, 0], sizes = [8, 4, 32], strides = [1, 1, 1]} : vector<8x8x32xf32> to vector<8x4x32xf32>
    %58 = vector.shape_cast %57 : vector<8x4x32xf32> to vector<1x32x32xf32>
    %59 = vector.extract_strided_slice %1 {offsets = [0, 4, 0], sizes = [8, 4, 32], strides = [1, 1, 1]} : vector<8x8x32xf32> to vector<8x4x32xf32>
    %60 = vector.shape_cast %59 : vector<8x4x32xf32> to vector<1x32x32xf32>
    %61 = tpu.concatenate %58, %60 in 0 : vector<1x32x32xf32>, vector<1x32x32xf32> -> vector<2x32x32xf32>
    %62 = vector.shape_cast %61 : vector<2x32x32xf32> to vector<64x32xf32>
    %63 = arith.truncf %62 : vector<64x32xf32> to vector<64x32xbf16>
    %c0_24 = arith.constant 0 : index
    %c0_25 = arith.constant 0 : index
    %64 = vector.load %arg9[%c0_24, %c0_25] : memref<32x48xbf16, #tpu.memory_space<vmem>>, vector<32x48xbf16>
    %cst_26 = arith.constant dense<0.000000e+00> : vector<64x48xf32>
    %65 = tpu.matmul %63, %64, %cst_26 {dimension_numbers = #tpu.dot_dimension_numbers<[1], [0], [0], [1], [0, 0, 1, 1], [], []>} : vector<64x32xbf16>, vector<32x48xbf16>, vector<64x48xf32> -> vector<64x48xf32>
    %66 = vector.shape_cast %65 : vector<64x48xf32> to vector<2x32x48xf32>
    %67 = vector.extract_strided_slice %66 {offsets = [0, 0, 0], sizes = [2, 32, 16], strides = [1, 1, 1]} : vector<2x32x48xf32> to vector<2x32x16xf32>
    %c0_27 = arith.constant 0 : index
    %c0_28 = arith.constant 0 : index
    %68 = vector.load %arg10[%c0_27, %c0_28] : memref<2x1xf32, #tpu.memory_space<vmem>>, vector<2x1xf32>
    %69 = vector.shape_cast %68 : vector<2x1xf32> to vector<2x1x1xf32>
    %70 = vector.broadcast %69 : vector<2x1x1xf32> to vector<2x32x16xf32>
    %71 = arith.mulf %67, %70 : vector<2x32x16xf32>
    %c0_29 = arith.constant 0 : index
    %c0_30 = arith.constant 0 : index
    %72 = vector.load %arg11[%c0_29, %c0_30] : memref<2x16xf32, #tpu.memory_space<vmem>>, vector<2x16xf32>
    %73 = vector.shape_cast %72 : vector<2x16xf32> to vector<2x1x16xf32>
    %74 = vector.broadcast %73 : vector<2x1x16xf32> to vector<2x32x16xf32>
    %75 = arith.addf %71, %74 : vector<2x32x16xf32>
    %76 = vector.extract_strided_slice %66 {offsets = [0, 0, 16], sizes = [2, 32, 32], strides = [1, 1, 1]} : vector<2x32x48xf32> to vector<2x32x32xf32>
    %c0_31 = arith.constant 0 : index
    %c0_32 = arith.constant 0 : index
    %77 = vector.load %arg12[%c0_31, %c0_32] : memref<1x32xf32, #tpu.memory_space<vmem>>, vector<1x32xf32>
    %78 = vector.shape_cast %77 : vector<1x32xf32> to vector<1x1x32xf32>
    %79 = vector.broadcast %78 : vector<1x1x32xf32> to vector<2x32x32xf32>
    %80 = arith.addf %76, %79 : vector<2x32x32xf32>
    %81 = vector.extract_strided_slice %80 {offsets = [0, 0, 0], sizes = [2, 32, 16], strides = [1, 1, 1]} : vector<2x32x32xf32> to vector<2x32x16xf32>
    %82 = vector.extract_strided_slice %80 {offsets = [0, 0, 16], sizes = [2, 32, 16], strides = [1, 1, 1]} : vector<2x32x32xf32> to vector<2x32x16xf32>
    %c0_33 = arith.constant 0 : index
    %c0_34 = arith.constant 0 : index
    %83 = vector.load %arg13[%c0_33, %c0_34] : memref<16x8xbf16, #tpu.memory_space<vmem>>, vector<16x8xbf16>
    %c0_35 = arith.constant 0 : index
    %c0_36 = arith.constant 0 : index
    %84 = vector.load %arg14[%c0_35, %c0_36] : memref<1x8xf32, #tpu.memory_space<vmem>>, vector<1x8xf32>
    %85 = vector.extract_strided_slice %75 {offsets = [0, 0, 0], sizes = [2, 32, 8], strides = [1, 1, 1]} : vector<2x32x16xf32> to vector<2x32x8xf32>
    %86 = vector.extract_strided_slice %75 {offsets = [0, 0, 8], sizes = [2, 32, 8], strides = [1, 1, 1]} : vector<2x32x16xf32> to vector<2x32x8xf32>
    %87 = tpu.concatenate %85, %86 in 0 : vector<2x32x8xf32>, vector<2x32x8xf32> -> vector<4x32x8xf32>
    %88 = vector.extract_strided_slice %81 {offsets = [0, 0, 0], sizes = [2, 32, 8], strides = [1, 1, 1]} : vector<2x32x16xf32> to vector<2x32x8xf32>
    %89 = vector.extract_strided_slice %81 {offsets = [0, 0, 8], sizes = [2, 32, 8], strides = [1, 1, 1]} : vector<2x32x16xf32> to vector<2x32x8xf32>
    %90 = tpu.concatenate %88, %89 in 0 : vector<2x32x8xf32>, vector<2x32x8xf32> -> vector<4x32x8xf32>
    %91 = vector.extract_strided_slice %82 {offsets = [0, 0, 0], sizes = [2, 32, 8], strides = [1, 1, 1]} : vector<2x32x16xf32> to vector<2x32x8xf32>
    %92 = vector.extract_strided_slice %82 {offsets = [0, 0, 8], sizes = [2, 32, 8], strides = [1, 1, 1]} : vector<2x32x16xf32> to vector<2x32x8xf32>
    %93 = tpu.concatenate %91, %92 in 0 : vector<2x32x8xf32>, vector<2x32x8xf32> -> vector<4x32x8xf32>
    %94 = arith.truncf %87 : vector<4x32x8xf32> to vector<4x32x8xbf16>
    %95 = arith.truncf %90 : vector<4x32x8xf32> to vector<4x32x8xbf16>
    "tpu.trace_start"() <{level = 10 : i32, message = "bqd,bkd->bqk"}> : () -> ()
    %cst_37 = arith.constant dense<0.000000e+00> : vector<4x32x32xf32>
    %96 = tpu.matmul %94, %95, %cst_37 {dimension_numbers = #tpu.dot_dimension_numbers<[2], [2], [1], [1], [0, 0, 0, 1, 1, 1], [0], [0]>} : vector<4x32x8xbf16>, vector<4x32x8xbf16>, vector<4x32x32xf32> -> vector<4x32x32xf32>
    "tpu.trace_stop"() : () -> ()
    %cst_38 = arith.constant dense<0xFF800000> : vector<4x32xf32>
    %97 = vector.multi_reduction <maximumf>, %96, %cst_38 [2] : vector<4x32x32xf32> to vector<4x32xf32>
    %98 = vector.shape_cast %97 : vector<4x32xf32> to vector<4x32x1xf32>
    %99 = vector.broadcast %98 : vector<4x32x1xf32> to vector<4x32x32xf32>
    %100 = arith.subf %96, %99 : vector<4x32x32xf32>
    %101 = math.exp %100 : vector<4x32x32xf32>
    %cst_39 = arith.constant dense<0.000000e+00> : vector<4x32xf32>
    %102 = vector.multi_reduction <add>, %101, %cst_39 [2] : vector<4x32x32xf32> to vector<4x32xf32>
    %103 = vector.shape_cast %102 : vector<4x32xf32> to vector<4x32x1xf32>
    %104 = vector.broadcast %103 : vector<4x32x1xf32> to vector<4x32x32xf32>
    %105 = arith.divf %101, %104 : vector<4x32x32xf32>
    %106 = arith.truncf %105 : vector<4x32x32xf32> to vector<4x32x32xbf16>
    %107 = arith.truncf %93 : vector<4x32x8xf32> to vector<4x32x8xbf16>
    "tpu.trace_start"() <{level = 10 : i32, message = "bqk,bkd->bqd"}> : () -> ()
    %cst_40 = arith.constant dense<0.000000e+00> : vector<4x32x8xf32>
    %108 = tpu.matmul %106, %107, %cst_40 {dimension_numbers = #tpu.dot_dimension_numbers<[2], [1], [1], [2], [0, 0, 0, 1, 1, 2], [0], [0]>} : vector<4x32x32xbf16>, vector<4x32x8xbf16>, vector<4x32x8xf32> -> vector<4x32x8xf32>
    "tpu.trace_stop"() : () -> ()
    %109 = vector.extract_strided_slice %108 {offsets = [0, 0, 0], sizes = [2, 32, 8], strides = [1, 1, 1]} : vector<4x32x8xf32> to vector<2x32x8xf32>
    %110 = vector.extract_strided_slice %108 {offsets = [2, 0, 0], sizes = [2, 32, 8], strides = [1, 1, 1]} : vector<4x32x8xf32> to vector<2x32x8xf32>
    %111 = tpu.concatenate %109, %110 in 2 : vector<2x32x8xf32>, vector<2x32x8xf32> -> vector<2x32x16xf32>
    %112 = vector.shape_cast %111 : vector<2x32x16xf32> to vector<64x16xf32>
    %113 = arith.truncf %112 : vector<64x16xf32> to vector<64x16xbf16>
    %cst_41 = arith.constant dense<0.000000e+00> : vector<64x8xf32>
    %114 = tpu.matmul %113, %83, %cst_41 {dimension_numbers = #tpu.dot_dimension_numbers<[1], [0], [0], [1], [0, 0, 1, 1], [], []>} : vector<64x16xbf16>, vector<16x8xbf16>, vector<64x8xf32> -> vector<64x8xf32>
    %115 = vector.broadcast %84 : vector<1x8xf32> to vector<64x8xf32>
    %116 = arith.addf %114, %115 : vector<64x8xf32>
    %117 = vector.extract_strided_slice %116 {offsets = [0, 0], sizes = [32, 8], strides = [1, 1]} : vector<64x8xf32> to vector<32x8xf32>
    %118 = vector.shape_cast %117 : vector<32x8xf32> to vector<8x4x8xf32>
    %119 = vector.extract_strided_slice %116 {offsets = [32, 0], sizes = [32, 8], strides = [1, 1]} : vector<64x8xf32> to vector<32x8xf32>
    %120 = vector.shape_cast %119 : vector<32x8xf32> to vector<8x4x8xf32>
    %121 = tpu.concatenate %118, %120 in 1 : vector<8x4x8xf32>, vector<8x4x8xf32> -> vector<8x8x8xf32>
    %122 = tpu.concatenate %56, %121 in 2 : vector<8x8x24xf32>, vector<8x8x8xf32> -> vector<8x8x32xf32>
    %123 = arith.addf %122, %1 : vector<8x8x32xf32>
    %124 = vector.shape_cast %123 : vector<8x8x32xf32> to vector<1x8x8x32xf32>
    %cst_42 = arith.constant dense<0.000000e+00> : vector<1xf32>
    %125 = vector.multi_reduction <add>, %124, %cst_42 [1, 2, 3] : vector<1x8x8x32xf32> to vector<1xf32>
    %126 = vector.shape_cast %125 : vector<1xf32> to vector<1x1x1x1xf32>
    %127 = vector.extract %126[0, 0, 0, 0] : f32 from vector<1x1x1x1xf32>
    %cst_43 = arith.constant 2.048000e+03 : f32
    %128 = arith.divf %127, %cst_43 : f32
    %129 = vector.broadcast %128 : f32 to vector<8x8x32xf32>
    %130 = arith.subf %123, %129 : vector<8x8x32xf32>
    %131 = arith.mulf %130, %130 : vector<8x8x32xf32>
    %132 = vector.shape_cast %131 : vector<8x8x32xf32> to vector<1x8x8x32xf32>
    %cst_44 = arith.constant dense<0.000000e+00> : vector<1xf32>
    %133 = vector.multi_reduction <add>, %132, %cst_44 [1, 2, 3] : vector<1x8x8x32xf32> to vector<1xf32>
    %134 = vector.shape_cast %133 : vector<1xf32> to vector<1x1x1x1xf32>
    %135 = vector.extract %134[0, 0, 0, 0] : f32 from vector<1x1x1x1xf32>
    %cst_45 = arith.constant 2.048000e+03 : f32
    %136 = arith.divf %135, %cst_45 : f32
    %137 = vector.broadcast %128 : f32 to vector<8x8x32xf32>
    %138 = arith.subf %123, %137 : vector<8x8x32xf32>
    %cst_46 = arith.constant 9.99999974E-6 : f32
    %139 = arith.addf %136, %cst_46 : f32
    %140 = math.rsqrt %139 : f32
    %141 = vector.broadcast %140 : f32 to vector<8x8x32xf32>
    %142 = arith.mulf %138, %141 : vector<8x8x32xf32>
    %143 = vector.shape_cast %142 : vector<8x8x32xf32> to vector<64x32xf32>
    %144 = arith.truncf %143 : vector<64x32xf32> to vector<64x32xbf16>
    %c0_47 = arith.constant 0 : index
    %c0_48 = arith.constant 0 : index
    %145 = vector.load %arg15[%c0_47, %c0_48] : memref<32x128xbf16, #tpu.memory_space<vmem>>, vector<32x128xbf16>
    %cst_49 = arith.constant dense<0.000000e+00> : vector<64x128xf32>
    %146 = tpu.matmul %144, %145, %cst_49 {dimension_numbers = #tpu.dot_dimension_numbers<[1], [0], [0], [1], [0, 0, 1, 1], [], []>} : vector<64x32xbf16>, vector<32x128xbf16>, vector<64x128xf32> -> vector<64x128xf32>
    %c0_50 = arith.constant 0 : index
    %c0_51 = arith.constant 0 : index
    %147 = vector.load %arg16[%c0_50, %c0_51] : memref<1x128xf32, #tpu.memory_space<vmem>>, vector<1x128xf32>
    %148 = vector.broadcast %147 : vector<1x128xf32> to vector<64x128xf32>
    %149 = arith.mulf %146, %148 : vector<64x128xf32>
    %c0_52 = arith.constant 0 : index
    %c0_53 = arith.constant 0 : index
    %150 = vector.load %arg17[%c0_52, %c0_53] : memref<1x128xf32, #tpu.memory_space<vmem>>, vector<1x128xf32>
    %151 = vector.broadcast %150 : vector<1x128xf32> to vector<64x128xf32>
    %152 = arith.addf %149, %151 : vector<64x128xf32>
    %cst_54 = arith.constant 5.000000e-01 : f32
    %153 = vector.broadcast %cst_54 : f32 to vector<64x128xf32>
    %154 = arith.mulf %153, %152 : vector<64x128xf32>
    %cst_55 = arith.constant 0.707106769 : f32
    %155 = vector.broadcast %cst_55 : f32 to vector<64x128xf32>
    %156 = arith.mulf %152, %155 : vector<64x128xf32>
    %157 = math.erf %156 : vector<64x128xf32>
    %cst_56 = arith.constant 1.000000e+00 : f32
    %158 = vector.broadcast %cst_56 : f32 to vector<64x128xf32>
    %159 = arith.addf %158, %157 : vector<64x128xf32>
    %160 = arith.mulf %154, %159 : vector<64x128xf32>
    %161 = vector.shape_cast %160 : vector<64x128xf32> to vector<8x8x128xf32>
    %c0_57 = arith.constant 0 : index
    %c0_58 = arith.constant 0 : index
    %162 = vector.load %arg18[%c0_57, %c0_58] : memref<9x128xf32, #tpu.memory_space<vmem>>, vector<9x128xf32>
    %cst_59 = arith.constant 0.000000e+00 : f32
    %163 = vector.broadcast %cst_59 : f32 to vector<8x1x128xf32>
    %164 = vector.extract_strided_slice %161 {offsets = [0, 0, 0], sizes = [8, 7, 128], strides = [1, 1, 1]} : vector<8x8x128xf32> to vector<8x7x128xf32>
    %165 = tpu.concatenate %163, %164 in 1 : vector<8x1x128xf32>, vector<8x7x128xf32> -> vector<8x8x128xf32>
    %166 = vector.extract_strided_slice %161 {offsets = [0, 1, 0], sizes = [8, 7, 128], strides = [1, 1, 1]} : vector<8x8x128xf32> to vector<8x7x128xf32>
    %167 = tpu.concatenate %166, %163 in 1 : vector<8x7x128xf32>, vector<8x1x128xf32> -> vector<8x8x128xf32>
    %cst_60 = arith.constant 0.000000e+00 : f32
    %168 = vector.broadcast %cst_60 : f32 to vector<1x8x128xf32>
    %169 = vector.extract_strided_slice %165 {offsets = [0, 0, 0], sizes = [7, 8, 128], strides = [1, 1, 1]} : vector<8x8x128xf32> to vector<7x8x128xf32>
    %170 = tpu.concatenate %168, %169 in 0 : vector<1x8x128xf32>, vector<7x8x128xf32> -> vector<8x8x128xf32>
    %171 = vector.extract_strided_slice %162 {offsets = [0, 0], sizes = [1, 128], strides = [1, 1]} : vector<9x128xf32> to vector<1x128xf32>
    %172 = vector.shape_cast %171 : vector<1x128xf32> to vector<128xf32>
    %173 = vector.shape_cast %172 : vector<128xf32> to vector<1x1x128xf32>
    %174 = vector.broadcast %173 : vector<1x1x128xf32> to vector<8x8x128xf32>
    %175 = arith.mulf %170, %174 : vector<8x8x128xf32>
    %176 = vector.extract_strided_slice %161 {offsets = [0, 0, 0], sizes = [7, 8, 128], strides = [1, 1, 1]} : vector<8x8x128xf32> to vector<7x8x128xf32>
    %177 = tpu.concatenate %168, %176 in 0 : vector<1x8x128xf32>, vector<7x8x128xf32> -> vector<8x8x128xf32>
    %178 = vector.extract_strided_slice %162 {offsets = [1, 0], sizes = [1, 128], strides = [1, 1]} : vector<9x128xf32> to vector<1x128xf32>
    %179 = vector.shape_cast %178 : vector<1x128xf32> to vector<128xf32>
    %180 = vector.shape_cast %179 : vector<128xf32> to vector<1x1x128xf32>
    %181 = vector.broadcast %180 : vector<1x1x128xf32> to vector<8x8x128xf32>
    %182 = arith.mulf %177, %181 : vector<8x8x128xf32>
    %183 = arith.addf %175, %182 : vector<8x8x128xf32>
    %184 = vector.extract_strided_slice %167 {offsets = [0, 0, 0], sizes = [7, 8, 128], strides = [1, 1, 1]} : vector<8x8x128xf32> to vector<7x8x128xf32>
    %185 = tpu.concatenate %168, %184 in 0 : vector<1x8x128xf32>, vector<7x8x128xf32> -> vector<8x8x128xf32>
    %186 = vector.extract_strided_slice %162 {offsets = [2, 0], sizes = [1, 128], strides = [1, 1]} : vector<9x128xf32> to vector<1x128xf32>
    %187 = vector.shape_cast %186 : vector<1x128xf32> to vector<128xf32>
    %188 = vector.shape_cast %187 : vector<128xf32> to vector<1x1x128xf32>
    %189 = vector.broadcast %188 : vector<1x1x128xf32> to vector<8x8x128xf32>
    %190 = arith.mulf %185, %189 : vector<8x8x128xf32>
    %191 = arith.addf %183, %190 : vector<8x8x128xf32>
    %192 = vector.extract_strided_slice %162 {offsets = [3, 0], sizes = [1, 128], strides = [1, 1]} : vector<9x128xf32> to vector<1x128xf32>
    %193 = vector.shape_cast %192 : vector<1x128xf32> to vector<128xf32>
    %194 = vector.shape_cast %193 : vector<128xf32> to vector<1x1x128xf32>
    %195 = vector.broadcast %194 : vector<1x1x128xf32> to vector<8x8x128xf32>
    %196 = arith.mulf %165, %195 : vector<8x8x128xf32>
    %197 = arith.addf %191, %196 : vector<8x8x128xf32>
    %198 = vector.extract_strided_slice %162 {offsets = [4, 0], sizes = [1, 128], strides = [1, 1]} : vector<9x128xf32> to vector<1x128xf32>
    %199 = vector.shape_cast %198 : vector<1x128xf32> to vector<128xf32>
    %200 = vector.shape_cast %199 : vector<128xf32> to vector<1x1x128xf32>
    %201 = vector.broadcast %200 : vector<1x1x128xf32> to vector<8x8x128xf32>
    %202 = arith.mulf %161, %201 : vector<8x8x128xf32>
    %203 = arith.addf %197, %202 : vector<8x8x128xf32>
    %204 = vector.extract_strided_slice %162 {offsets = [5, 0], sizes = [1, 128], strides = [1, 1]} : vector<9x128xf32> to vector<1x128xf32>
    %205 = vector.shape_cast %204 : vector<1x128xf32> to vector<128xf32>
    %206 = vector.shape_cast %205 : vector<128xf32> to vector<1x1x128xf32>
    %207 = vector.broadcast %206 : vector<1x1x128xf32> to vector<8x8x128xf32>
    %208 = arith.mulf %167, %207 : vector<8x8x128xf32>
    %209 = arith.addf %203, %208 : vector<8x8x128xf32>
    %210 = vector.extract_strided_slice %165 {offsets = [1, 0, 0], sizes = [7, 8, 128], strides = [1, 1, 1]} : vector<8x8x128xf32> to vector<7x8x128xf32>
    %211 = tpu.concatenate %210, %168 in 0 : vector<7x8x128xf32>, vector<1x8x128xf32> -> vector<8x8x128xf32>
    %212 = vector.extract_strided_slice %162 {offsets = [6, 0], sizes = [1, 128], strides = [1, 1]} : vector<9x128xf32> to vector<1x128xf32>
    %213 = vector.shape_cast %212 : vector<1x128xf32> to vector<128xf32>
    %214 = vector.shape_cast %213 : vector<128xf32> to vector<1x1x128xf32>
    %215 = vector.broadcast %214 : vector<1x1x128xf32> to vector<8x8x128xf32>
    %216 = arith.mulf %211, %215 : vector<8x8x128xf32>
    %217 = arith.addf %209, %216 : vector<8x8x128xf32>
    %218 = vector.extract_strided_slice %161 {offsets = [1, 0, 0], sizes = [7, 8, 128], strides = [1, 1, 1]} : vector<8x8x128xf32> to vector<7x8x128xf32>
    %219 = tpu.concatenate %218, %168 in 0 : vector<7x8x128xf32>, vector<1x8x128xf32> -> vector<8x8x128xf32>
    %220 = vector.extract_strided_slice %162 {offsets = [7, 0], sizes = [1, 128], strides = [1, 1]} : vector<9x128xf32> to vector<1x128xf32>
    %221 = vector.shape_cast %220 : vector<1x128xf32> to vector<128xf32>
    %222 = vector.shape_cast %221 : vector<128xf32> to vector<1x1x128xf32>
    %223 = vector.broadcast %222 : vector<1x1x128xf32> to vector<8x8x128xf32>
    %224 = arith.mulf %219, %223 : vector<8x8x128xf32>
    %225 = arith.addf %217, %224 : vector<8x8x128xf32>
    %226 = vector.extract_strided_slice %167 {offsets = [1, 0, 0], sizes = [7, 8, 128], strides = [1, 1, 1]} : vector<8x8x128xf32> to vector<7x8x128xf32>
    %227 = tpu.concatenate %226, %168 in 0 : vector<7x8x128xf32>, vector<1x8x128xf32> -> vector<8x8x128xf32>
    %228 = vector.extract_strided_slice %162 {offsets = [8, 0], sizes = [1, 128], strides = [1, 1]} : vector<9x128xf32> to vector<1x128xf32>
    %229 = vector.shape_cast %228 : vector<1x128xf32> to vector<128xf32>
    %230 = vector.shape_cast %229 : vector<128xf32> to vector<1x1x128xf32>
    %231 = vector.broadcast %230 : vector<1x1x128xf32> to vector<8x8x128xf32>
    %232 = arith.mulf %227, %231 : vector<8x8x128xf32>
    %233 = arith.addf %225, %232 : vector<8x8x128xf32>
    %c0_61 = arith.constant 0 : index
    %c0_62 = arith.constant 0 : index
    %234 = vector.load %arg19[%c0_61, %c0_62] : memref<1x128xf32, #tpu.memory_space<vmem>>, vector<1x128xf32>
    %235 = vector.shape_cast %234 : vector<1x128xf32> to vector<1x1x128xf32>
    %236 = vector.broadcast %235 : vector<1x1x128xf32> to vector<8x8x128xf32>
    %237 = arith.mulf %233, %236 : vector<8x8x128xf32>
    %c0_63 = arith.constant 0 : index
    %c0_64 = arith.constant 0 : index
    %238 = vector.load %arg20[%c0_63, %c0_64] : memref<1x128xf32, #tpu.memory_space<vmem>>, vector<1x128xf32>
    %239 = vector.shape_cast %238 : vector<1x128xf32> to vector<1x1x128xf32>
    %240 = vector.broadcast %239 : vector<1x1x128xf32> to vector<8x8x128xf32>
    %241 = arith.addf %237, %240 : vector<8x8x128xf32>
    %cst_65 = arith.constant 5.000000e-01 : f32
    %242 = vector.broadcast %cst_65 : f32 to vector<8x8x128xf32>
    %243 = arith.mulf %242, %241 : vector<8x8x128xf32>
    %cst_66 = arith.constant 0.707106769 : f32
    %244 = vector.broadcast %cst_66 : f32 to vector<8x8x128xf32>
    %245 = arith.mulf %241, %244 : vector<8x8x128xf32>
    %246 = math.erf %245 : vector<8x8x128xf32>
    %cst_67 = arith.constant 1.000000e+00 : f32
    %247 = vector.broadcast %cst_67 : f32 to vector<8x8x128xf32>
    %248 = arith.addf %247, %246 : vector<8x8x128xf32>
    %249 = arith.mulf %243, %248 : vector<8x8x128xf32>
    %250 = vector.shape_cast %249 : vector<8x8x128xf32> to vector<64x128xf32>
    %251 = arith.truncf %250 : vector<64x128xf32> to vector<64x128xbf16>
    %c0_68 = arith.constant 0 : index
    %c0_69 = arith.constant 0 : index
    %252 = vector.load %arg21[%c0_68, %c0_69] : memref<128x32xbf16, #tpu.memory_space<vmem>>, vector<128x32xbf16>
    %cst_70 = arith.constant dense<0.000000e+00> : vector<64x32xf32>
    %253 = tpu.matmul %251, %252, %cst_70 {dimension_numbers = #tpu.dot_dimension_numbers<[1], [0], [0], [1], [0, 0, 1, 1], [], []>} : vector<64x128xbf16>, vector<128x32xbf16>, vector<64x32xf32> -> vector<64x32xf32>
    %c0_71 = arith.constant 0 : index
    %c0_72 = arith.constant 0 : index
    %254 = vector.load %arg22[%c0_71, %c0_72] : memref<1x32xf32, #tpu.memory_space<vmem>>, vector<1x32xf32>
    %255 = vector.broadcast %254 : vector<1x32xf32> to vector<64x32xf32>
    %256 = arith.mulf %253, %255 : vector<64x32xf32>
    %c0_73 = arith.constant 0 : index
    %c0_74 = arith.constant 0 : index
    %257 = vector.load %arg23[%c0_73, %c0_74] : memref<1x32xf32, #tpu.memory_space<vmem>>, vector<1x32xf32>
    %258 = vector.broadcast %257 : vector<1x32xf32> to vector<64x32xf32>
    %259 = arith.addf %256, %258 : vector<64x32xf32>
    %260 = vector.shape_cast %259 : vector<64x32xf32> to vector<8x8x32xf32>
    %261 = arith.addf %142, %260 : vector<8x8x32xf32>
    %c0_75 = arith.constant 0 : index
    %c0_76 = arith.constant 0 : index
    %c0_77 = arith.constant 0 : index
    %c0_78 = arith.constant 0 : index
    %262 = vector.load %arg24[%c0_75, %c0_76, %c0_77, %c0_78] : memref<1x8x8x32xf32, #tpu.memory_space<vmem>>, vector<1x8x8x32xf32>
    %263 = vector.shape_cast %262 : vector<1x8x8x32xf32> to vector<8x8x32xf32>
    %264 = vector.shape_cast %261 : vector<8x8x32xf32> to vector<1x8x8x32xf32>
    tpu.vector_store %arg24[%c0_75, %c0_76, %c0_77, %c0_78], %264 {strides = array<i32>} : memref<1x8x8x32xf32, #tpu.memory_space<vmem>>, vector<1x8x8x32xf32>,
    return
  }
  func.func @transform_0(%arg0: i32) -> (i32, i32, i32, i32) {
    %c0_i32 = arith.constant 0 : i32
    %c0_i32_0 = arith.constant 0 : i32
    %c0_i32_1 = arith.constant 0 : i32
    %c0_i32_2 = arith.constant 0 : i32
    return %arg0, %c0_i32, %c0_i32_0, %c0_i32_1 : i32, i32, i32, i32
  }
  func.func @transform_1(%arg0: i32) -> (i32, i32, i32) {
    %c0_i32 = arith.constant 0 : i32
    %c0_i32_0 = arith.constant 0 : i32
    %c0_i32_1 = arith.constant 0 : i32
    return %arg0, %c0_i32, %c0_i32_0 : i32, i32, i32
  }
  func.func @transform_2(%arg0: i32) -> (i32, i32) {
    %c0_i32 = arith.constant 0 : i32
    %c0_i32_0 = arith.constant 0 : i32
    %c0_i32_1 = arith.constant 0 : i32
    return %c0_i32, %c0_i32_0 : i32, i32
  }
  func.func @transform_3(%arg0: i32) -> (i32, i32) {
    %c0_i32 = arith.constant 0 : i32
    %c0_i32_0 = arith.constant 0 : i32
    %c0_i32_1 = arith.constant 0 : i32
    return %c0_i32, %c0_i32_0 : i32, i32
  }
  func.func @transform_4(%arg0: i32) -> (i32, i32) {
    %c0_i32 = arith.constant 0 : i32
    %c0_i32_0 = arith.constant 0 : i32
    %c0_i32_1 = arith.constant 0 : i32
    return %c0_i32, %c0_i32_0 : i32, i32
  }
  func.func @transform_5(%arg0: i32) -> (i32, i32) {
    %c0_i32 = arith.constant 0 : i32
    %c0_i32_0 = arith.constant 0 : i32
    %c0_i32_1 = arith.constant 0 : i32
    return %c0_i32, %c0_i32_0 : i32, i32
  }
  func.func @transform_6(%arg0: i32) -> (i32, i32) {
    %c0_i32 = arith.constant 0 : i32
    %c0_i32_0 = arith.constant 0 : i32
    %c0_i32_1 = arith.constant 0 : i32
    return %c0_i32, %c0_i32_0 : i32, i32
  }
  func.func @transform_7(%arg0: i32) -> (i32, i32) {
    %c0_i32 = arith.constant 0 : i32
    %c0_i32_0 = arith.constant 0 : i32
    %c0_i32_1 = arith.constant 0 : i32
    return %c0_i32, %c0_i32_0 : i32, i32
  }
  func.func @transform_8(%arg0: i32) -> (i32, i32) {
    %c0_i32 = arith.constant 0 : i32
    %c0_i32_0 = arith.constant 0 : i32
    %c0_i32_1 = arith.constant 0 : i32
    return %c0_i32, %c0_i32_0 : i32, i32
  }
  func.func @transform_9(%arg0: i32) -> (i32, i32) {
    %c0_i32 = arith.constant 0 : i32
    %c0_i32_0 = arith.constant 0 : i32
    %c0_i32_1 = arith.constant 0 : i32
    return %c0_i32, %c0_i32_0 : i32, i32
  }
  func.func @transform_10(%arg0: i32) -> (i32, i32) {
    %c0_i32 = arith.constant 0 : i32
    %c0_i32_0 = arith.constant 0 : i32
    %c0_i32_1 = arith.constant 0 : i32
    return %c0_i32, %c0_i32_0 : i32, i32
  }
  func.func @transform_11(%arg0: i32) -> (i32, i32) {
    %c0_i32 = arith.constant 0 : i32
    %c0_i32_0 = arith.constant 0 : i32
    %c0_i32_1 = arith.constant 0 : i32
    return %c0_i32, %c0_i32_0 : i32, i32
  }
  func.func @transform_12(%arg0: i32) -> (i32, i32) {
    %c0_i32 = arith.constant 0 : i32
    %c0_i32_0 = arith.constant 0 : i32
    %c0_i32_1 = arith.constant 0 : i32
    return %c0_i32, %c0_i32_0 : i32, i32
  }
  func.func @transform_13(%arg0: i32) -> (i32, i32) {
    %c0_i32 = arith.constant 0 : i32
    %c0_i32_0 = arith.constant 0 : i32
    %c0_i32_1 = arith.constant 0 : i32
    return %c0_i32, %c0_i32_0 : i32, i32
  }
  func.func @transform_14(%arg0: i32) -> (i32, i32) {
    %c0_i32 = arith.constant 0 : i32
    %c0_i32_0 = arith.constant 0 : i32
    %c0_i32_1 = arith.constant 0 : i32
    return %c0_i32, %c0_i32_0 : i32, i32
  }
  func.func @transform_15(%arg0: i32) -> (i32, i32) {
    %c0_i32 = arith.constant 0 : i32
    %c0_i32_0 = arith.constant 0 : i32
    %c0_i32_1 = arith.constant 0 : i32
    return %c0_i32, %c0_i32_0 : i32, i32
  }
  func.func @transform_16(%arg0: i32) -> (i32, i32) {
    %c0_i32 = arith.constant 0 : i32
    %c0_i32_0 = arith.constant 0 : i32
    %c0_i32_1 = arith.constant 0 : i32
    return %c0_i32, %c0_i32_0 : i32, i32
  }
  func.func @transform_17(%arg0: i32) -> (i32, i32) {
    %c0_i32 = arith.constant 0 : i32
    %c0_i32_0 = arith.constant 0 : i32
    %c0_i32_1 = arith.constant 0 : i32
    return %c0_i32, %c0_i32_0 : i32, i32
  }
  func.func @transform_18(%arg0: i32) -> (i32, i32) {
    %c0_i32 = arith.constant 0 : i32
    %c0_i32_0 = arith.constant 0 : i32
    %c0_i32_1 = arith.constant 0 : i32
    return %c0_i32, %c0_i32_0 : i32, i32
  }
  func.func @transform_19(%arg0: i32) -> (i32, i32) {
    %c0_i32 = arith.constant 0 : i32
    %c0_i32_0 = arith.constant 0 : i32
    %c0_i32_1 = arith.constant 0 : i32
    return %c0_i32, %c0_i32_0 : i32, i32
  }
  func.func @transform_20(%arg0: i32) -> (i32, i32) {
    %c0_i32 = arith.constant 0 : i32
    %c0_i32_0 = arith.constant 0 : i32
    %c0_i32_1 = arith.constant 0 : i32
    return %c0_i32, %c0_i32_0 : i32, i32
  }
  func.func @transform_21(%arg0: i32) -> (i32, i32) {
    %c0_i32 = arith.constant 0 : i32
    %c0_i32_0 = arith.constant 0 : i32
    %c0_i32_1 = arith.constant 0 : i32
    return %c0_i32, %c0_i32_0 : i32, i32
  }
  func.func @transform_22(%arg0: i32) -> (i32, i32) {
    %c0_i32 = arith.constant 0 : i32
    %c0_i32_0 = arith.constant 0 : i32
    %c0_i32_1 = arith.constant 0 : i32
    return %c0_i32, %c0_i32_0 : i32, i32
  }
  func.func @transform_23(%arg0: i32) -> (i32, i32, i32, i32) {
    %c0_i32 = arith.constant 0 : i32
    %c0_i32_0 = arith.constant 0 : i32
    %c0_i32_1 = arith.constant 0 : i32
    %c0_i32_2 = arith.constant 0 : i32
    return %arg0, %c0_i32, %c0_i32_0, %c0_i32_1 : i32, i32, i32, i32
  }
}

</mosaic_0001>

<bundles_post_ra>
// kernel: tpu_custom_call.1
= control target key start
LH: loop header
LB: loop body
LE: loop exit
PB: predicated region body
PF: predicated region fallthrough
CT: control target
= control target key end

     0   :  { %s7754_s0 = inlined_call_operand.hbm [shape: f32[2,8,8,32], index: 0, kind: input, shape index: {}]   ;;  %s7755_s1 = inlined_call_operand.hbm [shape: f32[2,16,32], index: 1, kind: input, shape index: {}]   ;;  %s7756_s2 = inlined_call_operand.hbm [shape: bf16[32,16], index: 2, kind: input, shape index: {}]   ;;  %s7757_s3 = inlined_call_operand.hbm [shape: f32[1,16], index: 3, kind: input, shape index: {}]   ;;  %s7758_s4 = inlined_call_operand.hbm [shape: bf16[32,32], index: 4, kind: input, shape index: {}]   ;;  %s7759_s5 = inlined_call_operand.hbm [shape: f32[1,32], index: 5, kind: input, shape index: {}]   ;;  %s7760_s6 = inlined_call_operand.hbm [shape: bf16[16,24], index: 6, kind: input, shape index: {}]   ;;  %s7761_s7 = inlined_call_operand.hbm [shape: f32[1,24], index: 7, kind: input, shape index: {}]   ;;  %s7762_s8 = inlined_call_operand.hbm [shape: bf16[32,48], index: 8, kind: input, shape index: {}]   ;;  %s7763_s9 = inlined_call_operand.hbm [shape: f32[2,1], index: 9, kind: input, shape index: {}]   ;;  %s7764_s10 = inlined_call_operand.hbm [shape: f32[2,16], index: 10, kind: input, shape index: {}]   ;;  %s7765_s11 = inlined_call_operand.hbm [shape: f32[1,32], index: 11, kind: input, shape index: {}]   ;;  %s7766_s12 = inlined_call_operand.hbm [shape: bf16[16,8], index: 12, kind: input, shape index: {}]   ;;  %s7767_s13 = inlined_call_operand.hbm [shape: f32[1,8], index: 13, kind: input, shape index: {}]   ;;  %s7768_s14 = inlined_call_operand.hbm [shape: bf16[32,128], index: 14, kind: input, shape index: {}]   ;;  %s7769_s15 = inlined_call_operand.hbm [shape: f32[1,128], index: 15, kind: input, shape index: {}]   ;;  %s7770_s16 = inlined_call_operand.hbm [shape: f32[1,128], index: 16, kind: input, shape index: {}]   ;;  %s7771_s17 = inlined_call_operand.hbm [shape: f32[9,128], index: 17, kind: input, shape index: {}]   ;;  %s7772_s18 = inlined_call_operand.hbm [shape: f32[1,128], index: 18, kind: input, shape index: {}]   ;;  %s7773_s19 = inlined_call_operand.hbm [shape: f32[1,128], index: 19, kind: input, shape index: {}]   ;;  %s7774_s20 = inlined_call_operand.hbm [shape: bf16[128,32], index: 20, kind: input, shape index: {}]   ;;  %s7775_s21 = inlined_call_operand.hbm [shape: f32[1,32], index: 21, kind: input, shape index: {}]   ;;  %s7776_s22 = inlined_call_operand.hbm [shape: f32[1,32], index: 22, kind: input, shape index: {}]   ;;  %s7777_s23 = inlined_call_operand.hbm [shape: f32[2,8,8,32], index: 23, kind: output, shape index: {}]  }
   0x1   :  { %7819 = sst [smem:[#allocation64_spill]] %s7754_s0 }
   0x2   :  { %7820 = sst [smem:[#allocation65_spill]] %s7755_s1 }
   0x3   :  { %7821 = sst [smem:[#allocation66_spill]] %s7756_s2 }
   0x4   :  { %7822 = sst [smem:[#allocation67_spill]] %s7757_s3 }
   0x5   :  { %7823 = sst [smem:[#allocation68_spill]] %s7758_s4 }
   0x6   :  { %7824 = sst [smem:[#allocation69_spill]] %s7759_s5 }
   0x7   :  { %7825 = sst [smem:[#allocation70_spill]] %s7760_s6 }
   0x8   :  { %7826 = sst [smem:[#allocation71_spill]] %s7761_s7 }
   0x9   :  { %7827 = sst [smem:[#allocation72_spill]] %s7762_s8 }
   0xa   :  { %7828 = sst [smem:[#allocation73_spill]] %s7763_s9 }
   0xb   :  { %7829 = sst [smem:[#allocation74_spill]] %s7764_s10 }
   0xc   :  { %7830 = sst [smem:[#allocation75_spill]] %s7765_s11 }
   0xd   :  { %7831 = sst [smem:[#allocation76_spill]] %s7766_s12 }
   0xe   :  { %7832 = sst [smem:[#allocation77_spill]] %s7767_s13 }
   0xf   :  { %7833 = sst [smem:[#allocation78_spill]] %s7768_s14 }
  0x10   :  { %7834 = sst [smem:[#allocation79_spill]] %s7769_s15 }
  0x11   :  { %7835 = sst [smem:[#allocation80_spill]] %s7770_s16 }
  0x12   :  { %7836 = sst [smem:[#allocation81_spill]] %s7771_s17 }
  0x13   :  { %7837 = sst [smem:[#allocation82_spill]] %s7772_s18 }
  0x14   :  { %7838 = sst [smem:[#allocation83_spill]] %s7774_s20 }
  0x15   :  { %7839 = sst [smem:[#allocation84_spill]] %s7776_s22 }
  0x16   :  { %7840 = sst [smem:[#allocation85_spill]] %s7777_s23 }
  0x17   :  { %28 = vsyncpa [#allocation3], 0 }
  0x18   :  { %30 = vsyncpa [#allocation3 + $0x1], 0 }
  0x19   :  { %31 = vsyncpa [#allocation6], 0 }
  0x1a   :  { %33 = vsyncpa [#allocation6 + $0x1], 0 }
  0x1b   :  { %34 = vsyncpa [#allocation9], 0 }
  0x1c   :  { %35 = vsyncpa [#allocation12], 0 }
  0x1d   :  { %36 = vsyncpa [#allocation15], 0 }
  0x1e   :  { %37 = vsyncpa [#allocation18], 0 }
  0x1f   :  { %38 = vsyncpa [#allocation21], 0 }
  0x20   :  { %39 = vsyncpa [#allocation24], 0 }
  0x21   :  { %40 = vsyncpa [#allocation27], 0 }
  0x22   :  { %41 = vsyncpa [#allocation30], 0 }
  0x23   :  { %42 = vsyncpa [#allocation33], 0 }
  0x24   :  { %43 = vsyncpa [#allocation36], 0 }
  0x25   :  { %44 = vsyncpa [#allocation4], 0 }
  0x26   :  { %46 = vsyncpa [#allocation4 + $0x1], 0  ;;  %s6170_s4 = smov 0   ;;  %s6172_s30 = smov 0  }
  0x27   :  { %s6174_s24 = smov 0   ;;  %s6176_s25 = smov 0  }
  0x28 LB: > { %7841 = sst [smem:[#allocation53_spill]] %s5997_s4  ;;  %s6011_s5 = smov [#allocation7]   ;;  %s6009_s25 = sphi %s6176_s25, %s6642_s25   ;;  %s6005_s24 = sphi %s6174_s24, %s7931_s24   ;;  %s6001_s30 = sphi %s6172_s30, %s7930_s30   ;;  %s5997_s4 = sphi %s6170_s4, %s7929_s4  }
  0x29   : > { %7842 = sst [smem:[#allocation54_spill]] %s6001_s30  ;;  %s588_s1 = sshll.u32 %s6011_s5, 4  ;;  %s6196_s1 = int_to_ptr.vmem [resolvable:$true] %s588_s1 }
  0x2a   : > { %7843 = sst [smem:[#allocation55_spill]] %s6005_s24  ;;  %s6191_s26 = sadd.s32 4294967295, %s6009_s25  }
  0x2b   : > { %7844 = sst [smem:[#allocation56_spill]] %s6009_s25  ;;  %p4209_p0 = scmp.ge.s32.totalorder %s6009_s25, 1 }
  0x2c   : > { %7845 = sst [smem:[#allocation57_spill]] %s6191_s26  ;;  %p7802_p1 = scmp.eq.s32.totalorder %s6191_s26, 0 }
  0x2d   : > { %p576_p2 = scmp.lt.s32.totalorder %s6009_s25, 3  ;;  %s6012_s6 = smov [#allocation8]  }
  0x2e   : > { %s602_s27 = sshll.u32 %s6012_s6, 4  ;;  %s6013_s28 = smov [#allocation11]   ;;  %s6211_s27 = int_to_ptr.vmem [resolvable:$true] %s602_s27 }
  0x2f   : > { %p6198_p3 = pnand %p4209_p0, %p576_p2  ;;  %s626_s29 = sshll.u32 %s6013_s28, 4  ;;  %s6213_s29 = int_to_ptr.vmem [resolvable:$true] %s626_s29 }
  0x30   : > { %s7849_s5 = sld [smem:[#allocation66_spill]] }
  0x31   : > { %s7846_s2 = scalar_select %p6198_p3, 1, 0 }
  0x32   : > { %p4757_p5 = pneg %p6198_p3 }
  0x33   : > { %7847 = sst [smem:[#allocation58_spill]] %s7846_s2 }
  0x34   : > { %p6207_p6 = pnand %p4757_p5, %p7802_p1 }
  0x36   : > { %s5247_s23 = scalar_lea.hbm %s7849_s5, 256  ;;  %p6223_p8 = pneg %p6207_p6 }
  0x37   : > { %p5248_p7 = scmp.ne.s32.totalorder %s7849_s5, %s5247_s23  ;;  %p5254_p11 = scmp.lt.u32.totalorder %s5247_s23, %s7849_s5 }
  0x39   : > { %p5250_p9 = pnand %p6223_p8, %p5248_p7 }
  0x3b   : > { %p5251_p10 = pneg %p5250_p9 }
  0x3d   : > { %p5256_p12 = pnand %p5254_p11, %p5251_p10 }
  0x3f   : > { %5259 = shalt.err (!%p5256_p12)
}
  0x40   : > { %s5260_s4 = scalar_lea.vmem %s6196_s1, 256  ;;  %p5268_p5 = scmp.lt.s32.totalorder %s6196_s1, %s6196_s1 }
  0x41   : > { %p5261_p13 = scmp.ne.s32.totalorder %s6196_s1, %s5260_s4  ;;  %p5269_p4 = scmp.lt.s32.totalorder %s5260_s4, %s5260_s4 }
  0x43   : > { %p5263_p0 = pnand %p5261_p13, %p6223_p8  ;;  %p5270_p7 = por %p5269_p4, %p5268_p5 }
  0x45   : > { %p5264_p2 = pneg %p5263_p0 }
  0x47   : > { %p5271_p9 = pnand %p5270_p7, %p5264_p2 }
  0x49   : > { %5274 = shalt.err (!%p5271_p9)
}
  0x4a   : > { %s7798_s2 = smov 64   ;;  %s7800_s23 = smov 4  }
  0x4b   : > { %4760 = dma.hbm_to_vmem [thread:$0]  (!%p6207_p6), %s7849_s5, 256, %s6196_s1, [#allocation6], %s7798_s2, %s7798_s2, %s7800_s23  }
  0x4c   : > { %s7851_s30 = sld [smem:[#allocation67_spill]] }
  0x52   : > { %s7852_s22 = smov %s7851_s30  ;;  %s5275_s4 = scalar_lea.hbm %s7851_s30, 16 }
  0x53   : > { %p5276_p4 = scmp.ne.s32.totalorder %s7852_s22, %s5275_s4  ;;  %p5282_p12 = scmp.lt.u32.totalorder %s5275_s4, %s7852_s22 }
  0x55   : > { %p5278_p10 = pnand %p5276_p4, %p6223_p8 }
  0x57   : > { %p5279_p11 = pneg %p5278_p10 }
  0x59   : > { %p5284_p13 = pnand %p5282_p12, %p5279_p11 }
  0x5b   : > { %5287 = shalt.err (!%p5284_p13)
}
  0x5c   : > { %s5288_s1 = scalar_lea.vmem %s6211_s27, 16  ;;  %s5295_s30 = scalar_lea.vmem %s6211_s27, 32 }
  0x5d   : > { %p5289_p0 = scmp.ne.s32.totalorder %s6211_s27, %s5288_s1  ;;  %p5296_p7 = scmp.lt.s32.totalorder %s6211_s27, %s6211_s27 }
  0x5e   : > { %p5297_p9 = scmp.lt.s32.totalorder %s5295_s30, %s5288_s1 }
  0x5f   : > { %p5291_p2 = pnand %p5289_p0, %p6223_p8 }
  0x60   : > { %p5298_p4 = por %p5297_p9, %p5296_p7 }
  0x61   : > { %p5292_p5 = pneg %p5291_p2 }
  0x63   : > { %p5299_p10 = pnand %p5298_p4, %p5292_p5 }
  0x65   : > { %5302 = shalt.err (!%p5299_p10)
}
  0x66   : > { %4763 = dma.hbm_to_vmem [thread:$0]  (!%p6207_p6), %s7852_s22, 16, %s6211_s27, [#allocation9]  }
  0x67   : > { %s7853_s26 = sld [smem:[#allocation69_spill]] }
  0x6d   : > { %s5303_s3 = scalar_lea.hbm %s7853_s26, 16 }
  0x6e   : > { %p5304_p11 = scmp.ne.s32.totalorder %s7853_s26, %s5303_s3  ;;  %p5310_p0 = scmp.lt.u32.totalorder %s5303_s3, %s7853_s26 }
  0x70   : > { %p5306_p12 = pnand %p5304_p11, %p6223_p8 }
  0x72   : > { %p5307_p13 = pneg %p5306_p12 }
  0x74   : > { %p5312_p2 = pnand %p5310_p0, %p5307_p13 }
  0x76   : > { %5315 = shalt.err (!%p5312_p2)
}
  0x77   : > { %s5316_s27 = scalar_lea.vmem %s6213_s29, 16  ;;  %s5323_s30 = scalar_lea.vmem %s6213_s29, 32 }
  0x78   : > { %p5317_p5 = scmp.ne.s32.totalorder %s6213_s29, %s5316_s27  ;;  %p5324_p4 = scmp.lt.s32.totalorder %s6213_s29, %s6213_s29 }
  0x79   : > { %p5325_p10 = scmp.lt.s32.totalorder %s5323_s30, %s5316_s27 }
  0x7a   : > { %p5319_p7 = pnand %p5317_p5, %p6223_p8 }
  0x7b   : > { %p5326_p11 = por %p5325_p10, %p5324_p4 }
  0x7c   : > { %p5320_p9 = pneg %p5319_p7 }
  0x7e   : > { %p5327_p12 = pnand %p5326_p11, %p5320_p9 }
  0x80   : > { %5330 = shalt.err (!%p5327_p12)
}
  0x81   : > { %4769 = dma.hbm_to_vmem [thread:$0]  (!%p6207_p6), %s7853_s26, 16, %s6213_s29, [#allocation12]  }
  0x82   : > { %s6016_s24 = smov [#allocation14]   ;;  %s6017_s3 = smov [#allocation17]  }
  0x83   : > { %s650_s25 = sshll.u32 %s6016_s24, 4  ;;  %s674_s0 = sshll.u32 %s6017_s3, 4  ;;  %s651_s25 = int_to_ptr.vmem [resolvable:$true] %s650_s25  ;;  %s675_s0 = int_to_ptr.vmem [resolvable:$true] %s674_s0 }
  0x84   : > { %s7854_s1 = sld [smem:[#allocation71_spill]] }
  0x8a   : > { %s5331_s27 = scalar_lea.hbm %s7854_s1, 16 }
  0x8b   : > { %p5332_p13 = scmp.ne.s32.totalorder %s7854_s1, %s5331_s27  ;;  %p5338_p5 = scmp.lt.u32.totalorder %s5331_s27, %s7854_s1 }
  0x8d   : > { %p5334_p0 = pnand %p5332_p13, %p6223_p8 }
  0x8f   : > { %p5335_p2 = pneg %p5334_p0 }
  0x91   : > { %p5340_p7 = pnand %p5338_p5, %p5335_p2 }
  0x93   : > { %5343 = shalt.err (!%p5340_p7)
}
  0x94   : > { %s5344_s29 = scalar_lea.vmem %s651_s25, 16  ;;  %s5351_s20 = scalar_lea.vmem %s651_s25, 32 }
  0x95   : > { %p5345_p9 = scmp.ne.s32.totalorder %s651_s25, %s5344_s29  ;;  %p5352_p11 = scmp.lt.s32.totalorder %s651_s25, %s651_s25 }
  0x96   : > { %p5353_p12 = scmp.lt.s32.totalorder %s5351_s20, %s5344_s29 }
  0x97   : > { %p5347_p4 = pnand %p5345_p9, %p6223_p8 }
  0x98   : > { %p5354_p1 = por %p5353_p12, %p5352_p11 }
  0x99   : > { %p5348_p10 = pneg %p5347_p4 }
  0x9b   : > { %p5355_p3 = pnand %p5354_p1, %p5348_p10 }
  0x9d   : > { %5358 = shalt.err (!%p5355_p3)
}
  0x9e   : > { %4775 = dma.hbm_to_vmem [thread:$0]  (!%p6207_p6), %s7854_s1, 16, %s651_s25, [#allocation15]  }
  0x9f   : > { %s7855_s9 = sld [smem:[#allocation73_spill]] }
  0xa5   : > { %s5359_s28 = scalar_lea.hbm %s7855_s9, 32 }
  0xa6   : > { %p5360_p13 = scmp.ne.s32.totalorder %s7855_s9, %s5359_s28  ;;  %p5366_p3 = scmp.lt.u32.totalorder %s5359_s28, %s7855_s9 }
  0xa8   : > { %p5362_p0 = pnand %p5360_p13, %p6223_p8 }
  0xaa   : > { %p5363_p1 = pneg %p5362_p0 }
  0xac   : > { %p5368_p2 = pnand %p5366_p3, %p5363_p1 }
  0xae   : > { %5371 = shalt.err (!%p5368_p2)
}
  0xaf   : > { %s5372_s29 = scalar_lea.vmem %s675_s0, 32  ;;  %p5380_p4 = scmp.lt.s32.totalorder %s675_s0, %s675_s0 }
  0xb0   : > { %p5373_p5 = scmp.ne.s32.totalorder %s675_s0, %s5372_s29  ;;  %p5381_p10 = scmp.lt.s32.totalorder %s5372_s29, %s5372_s29 }
  0xb2   : > { %p5375_p7 = pnand %p5373_p5, %p6223_p8  ;;  %p5382_p11 = por %p5381_p10, %p5380_p4 }
  0xb4   : > { %p5376_p9 = pneg %p5375_p7 }
  0xb6   : > { %p5383_p12 = pnand %p5382_p11, %p5376_p9 }
  0xb8   : > { %5386 = shalt.err (!%p5383_p12)
}
  0xb9   : > { %4781 = dma.hbm_to_vmem [thread:$0]  (!%p6207_p6), %s7855_s9, 32, %s675_s0, [#allocation18]  }
  0xba   : > { %s6018_s2 = smov [#allocation20]   ;;  %s6019_s23 = smov [#allocation23]  }
  0xbb   : > { %s696_s24 = sshll.u32 %s6018_s2, 4  ;;  %s720_s3 = sshll.u32 %s6019_s23, 4  ;;  %s697_s24 = int_to_ptr.vmem [resolvable:$true] %s696_s24  ;;  %s721_s3 = int_to_ptr.vmem [resolvable:$true] %s720_s3 }
  0xbc   : > { %s7856_s11 = sld [smem:[#allocation75_spill]] }
  0xc2   : > { %s5387_s27 = scalar_lea.hbm %s7856_s11, 16 }
  0xc3   : > { %p5388_p13 = scmp.ne.s32.totalorder %s7856_s11, %s5387_s27  ;;  %p5394_p3 = scmp.lt.u32.totalorder %s5387_s27, %s7856_s11 }
  0xc5   : > { %p5390_p0 = pnand %p5388_p13, %p6223_p8 }
  0xc7   : > { %p5391_p1 = pneg %p5390_p0 }
  0xc9   : > { %p5396_p2 = pnand %p5394_p3, %p5391_p1 }
  0xcb   : > { %5399 = shalt.err (!%p5396_p2)
}
  0xcc   : > { %s5400_s0 = scalar_lea.vmem %s697_s24, 16  ;;  %s5407_s20 = scalar_lea.vmem %s697_s24, 32 }
  0xcd   : > { %p5401_p5 = scmp.ne.s32.totalorder %s697_s24, %s5400_s0  ;;  %p5408_p4 = scmp.lt.s32.totalorder %s697_s24, %s697_s24 }
  0xce   : > { %p5409_p10 = scmp.lt.s32.totalorder %s5407_s20, %s5400_s0 }
  0xcf   : > { %p5403_p7 = pnand %p5401_p5, %p6223_p8 }
  0xd0   : > { %p5410_p11 = por %p5409_p10, %p5408_p4 }
  0xd1   : > { %p5404_p9 = pneg %p5403_p7 }
  0xd3   : > { %p5411_p12 = pnand %p5410_p11, %p5404_p9 }
  0xd5   : > { %5414 = shalt.err (!%p5411_p12)
}
  0xd6   : > { %4787 = dma.hbm_to_vmem [thread:$0]  (!%p6207_p6), %s7856_s11, 16, %s697_s24, [#allocation21]  }
  0xd7   : > { %s7857_s13 = sld [smem:[#allocation77_spill]] }
  0xdd   : > { %s5415_s27 = scalar_lea.hbm %s7857_s13, 16 }
  0xde   : > { %p5416_p13 = scmp.ne.s32.totalorder %s7857_s13, %s5415_s27  ;;  %p5422_p3 = scmp.lt.u32.totalorder %s5415_s27, %s7857_s13 }
  0xe0   : > { %p5418_p0 = pnand %p5416_p13, %p6223_p8 }
  0xe2   : > { %p5419_p1 = pneg %p5418_p0 }
  0xe4   : > { %p5424_p2 = pnand %p5422_p3, %p5419_p1 }
  0xe6   : > { %5427 = shalt.err (!%p5424_p2)
}
  0xe7   : > { %s5428_s0 = scalar_lea.vmem %s721_s3, 16  ;;  %s5435_s24 = scalar_lea.vmem %s721_s3, 32 }
  0xe8   : > { %p5429_p5 = scmp.ne.s32.totalorder %s721_s3, %s5428_s0  ;;  %p5436_p4 = scmp.lt.s32.totalorder %s721_s3, %s721_s3 }
  0xe9   : > { %p5437_p10 = scmp.lt.s32.totalorder %s5435_s24, %s5428_s0 }
  0xea   : > { %p5431_p7 = pnand %p5429_p5, %p6223_p8 }
  0xeb   : > { %p5438_p11 = por %p5437_p10, %p5436_p4 }
  0xec   : > { %p5432_p9 = pneg %p5431_p7 }
  0xee   : > { %p5439_p12 = pnand %p5438_p11, %p5432_p9 }
  0xf0   : > { %5442 = shalt.err (!%p5439_p12)
}
  0xf1   : > { %4793 = dma.hbm_to_vmem [thread:$0]  (!%p6207_p6), %s7857_s13, 16, %s721_s3, [#allocation24]  }
  0xf2   : > { %s6020_s23 = smov [#allocation26]   ;;  %s6021_s4 = smov [#allocation29]  }
  0xf3   : > { %s744_s28 = sshll.u32 %s6020_s23, 4  ;;  %s765_s27 = sshll.u32 %s6021_s4, 4  ;;  %s745_s28 = int_to_ptr.vmem [resolvable:$true] %s744_s28  ;;  %s766_s27 = int_to_ptr.vmem [resolvable:$true] %s765_s27 }
  0xf4   : > { %s7858_s15 = sld [smem:[#allocation79_spill]] }
  0xfa   : > { %s5443_s29 = scalar_lea.hbm %s7858_s15, 16 }
  0xfb   : > { %p5444_p13 = scmp.ne.s32.totalorder %s7858_s15, %s5443_s29  ;;  %p5450_p3 = scmp.lt.u32.totalorder %s5443_s29, %s7858_s15 }
  0xfd   : > { %p5446_p0 = pnand %p5444_p13, %p6223_p8 }
  0xff   : > { %p5447_p1 = pneg %p5446_p0 }
 0x101   : > { %p5452_p2 = pnand %p5450_p3, %p5447_p1 }
 0x103   : > { %5455 = shalt.err (!%p5452_p2)
}
 0x104   : > { %s5456_s3 = scalar_lea.vmem %s745_s28, 16  ;;  %s5463_s2 = scalar_lea.vmem %s745_s28, 32 }
 0x105   : > { %p5457_p5 = scmp.ne.s32.totalorder %s745_s28, %s5456_s3  ;;  %p5464_p4 = scmp.lt.s32.totalorder %s745_s28, %s745_s28 }
 0x106   : > { %p5465_p10 = scmp.lt.s32.totalorder %s5463_s2, %s5456_s3 }
 0x107   : > { %p5459_p7 = pnand %p5457_p5, %p6223_p8 }
 0x108   : > { %p5466_p11 = por %p5465_p10, %p5464_p4 }
 0x109   : > { %p5460_p9 = pneg %p5459_p7 }
 0x10b   : > { %p5467_p12 = pnand %p5466_p11, %p5460_p9 }
 0x10d   : > { %5470 = shalt.err (!%p5467_p12)
}
 0x10e   : > { %4799 = dma.hbm_to_vmem [thread:$0]  (!%p6207_p6), %s7858_s15, 16, %s745_s28, [#allocation27]  }
 0x10f   : > { %s7859_s17 = sld [smem:[#allocation81_spill]] }
 0x115   : > { %s5471_s29 = scalar_lea.hbm %s7859_s17, 256 }
 0x116   : > { %p5472_p13 = scmp.ne.s32.totalorder %s7859_s17, %s5471_s29  ;;  %p5478_p3 = scmp.lt.u32.totalorder %s5471_s29, %s7859_s17 }
 0x118   : > { %p5474_p0 = pnand %p5472_p13, %p6223_p8 }
 0x11a   : > { %p5475_p1 = pneg %p5474_p0 }
 0x11c   : > { %p5480_p2 = pnand %p5478_p3, %p5475_p1 }
 0x11e   : > { %5483 = shalt.err (!%p5480_p2)
}
 0x11f   : > { %s5484_s3 = scalar_lea.vmem %s766_s27, 256  ;;  %p5492_p4 = scmp.lt.s32.totalorder %s766_s27, %s766_s27 }
 0x120   : > { %p5485_p5 = scmp.ne.s32.totalorder %s766_s27, %s5484_s3  ;;  %p5493_p10 = scmp.lt.s32.totalorder %s5484_s3, %s5484_s3 }
 0x122   : > { %p5487_p7 = pnand %p5485_p5, %p6223_p8  ;;  %p5494_p11 = por %p5493_p10, %p5492_p4 }
 0x124   : > { %p5488_p9 = pneg %p5487_p7 }
 0x126   : > { %p5495_p12 = pnand %p5494_p11, %p5488_p9 }
 0x128   : > { %5498 = shalt.err (!%p5495_p12)
}
 0x129   : > { %s7806_s28 = smov 128   ;;  %s7808_s2 = smov 8  }
 0x12a   : > { %4805 = dma.hbm_to_vmem [thread:$0]  (!%p6207_p6), %s7859_s17, 256, %s766_s27, [#allocation30], %s7806_s28, %s7806_s28, %s7808_s2  }
 0x12b   : > { %s6024_s30 = smov [#allocation32]   ;;  %s6025_s29 = smov [#allocation35]  }
 0x12c   : > { %s790_s18 = sshll.u32 %s6024_s30, 4  ;;  %s814_s25 = sshll.u32 %s6025_s29, 4  ;;  %s791_s18 = int_to_ptr.vmem [resolvable:$true] %s790_s18  ;;  %s815_s25 = int_to_ptr.vmem [resolvable:$true] %s814_s25 }
 0x12d   : > { %s5499_s20 = scalar_lea.hbm %s7773_s19, 16 }
 0x12e   : > { %p5500_p13 = scmp.ne.s32.totalorder %s7773_s19, %s5499_s20  ;;  %p5506_p3 = scmp.lt.u32.totalorder %s5499_s20, %s7773_s19 }
 0x130   : > { %p5502_p0 = pnand %p5500_p13, %p6223_p8 }
 0x132   : > { %p5503_p1 = pneg %p5502_p0 }
 0x134   : > { %p5508_p2 = pnand %p5506_p3, %p5503_p1 }
 0x136   : > { %5511 = shalt.err (!%p5508_p2)
}
 0x137   : > { %s5512_s27 = scalar_lea.vmem %s791_s18, 16  ;;  %s5519_s23 = scalar_lea.vmem %s791_s18, 32 }
 0x138   : > { %p5513_p5 = scmp.ne.s32.totalorder %s791_s18, %s5512_s27  ;;  %p5520_p4 = scmp.lt.s32.totalorder %s791_s18, %s791_s18 }
 0x139   : > { %p5521_p10 = scmp.lt.s32.totalorder %s5519_s23, %s5512_s27 }
 0x13a   : > { %p5515_p7 = pnand %p5513_p5, %p6223_p8 }
 0x13b   : > { %p5522_p11 = por %p5521_p10, %p5520_p4 }
 0x13c   : > { %p5516_p9 = pneg %p5515_p7 }
 0x13e   : > { %p5523_p12 = pnand %p5522_p11, %p5516_p9 }
 0x140   : > { %5526 = shalt.err (!%p5523_p12)
}
 0x141   : > { %4811 = dma.hbm_to_vmem [thread:$0]  (!%p6207_p6), %s7773_s19, 16, %s791_s18, [#allocation33]  }
 0x142   : > { %s5527_s30 = scalar_lea.hbm %s7775_s21, 16 }
 0x143   : > { %p5528_p13 = scmp.ne.s32.totalorder %s7775_s21, %s5527_s30  ;;  %p5534_p3 = scmp.lt.u32.totalorder %s5527_s30, %s7775_s21 }
 0x145   : > { %p5530_p0 = pnand %p5528_p13, %p6223_p8 }
 0x147   : > { %p5531_p1 = pneg %p5530_p0 }
 0x149   : > { %p5536_p2 = pnand %p5534_p3, %p5531_p1 }
 0x14b   : > { %5539 = shalt.err (!%p5536_p2)
}
 0x14c   : > { %s5540_s3 = scalar_lea.vmem %s815_s25, 16  ;;  %s5547_s18 = scalar_lea.vmem %s815_s25, 32 }
 0x14d   : > { %p5541_p5 = scmp.ne.s32.totalorder %s815_s25, %s5540_s3  ;;  %p5548_p4 = scmp.lt.s32.totalorder %s815_s25, %s815_s25 }
 0x14e   : > { %p5549_p10 = scmp.lt.s32.totalorder %s5547_s18, %s5540_s3 }
 0x14f   : > { %p5543_p7 = pnand %p5541_p5, %p6223_p8 }
 0x150   : > { %p5550_p11 = por %p5549_p10, %p5548_p4 }
 0x151   : > { %p5544_p9 = pneg %p5543_p7 }
 0x153   : > { %p5551_p12 = pnand %p5550_p11, %p5544_p9 }
 0x155   : > { %5554 = shalt.err (!%p5551_p12)
}
 0x156   : > { %4817 = dma.hbm_to_vmem [thread:$0]  (!%p6207_p6), %s7775_s21, 16, %s815_s25, [#allocation36]  }
 0x157   : > { %s6026_s1 = smov [#allocation10]   ;;  %s6027_s9 = smov [#allocation13]  }
 0x158   : > { %s612_s4 = sshll.u32 %s6026_s1, 4  ;;  %s636_s5 = sshll.u32 %s6027_s9, 4  ;;  %s613_s4 = int_to_ptr.vmem [resolvable:$true] %s612_s4  ;;  %s637_s5 = int_to_ptr.vmem [resolvable:$true] %s636_s5 }
 0x159   : > { %s7860_s0 = sld [smem:[#allocation68_spill]] }
 0x15f   : > { %s5555_s24 = scalar_lea.hbm %s7860_s0, 256 }
 0x160   : > { %p5556_p13 = scmp.ne.s32.totalorder %s7860_s0, %s5555_s24  ;;  %p5562_p3 = scmp.lt.u32.totalorder %s5555_s24, %s7860_s0 }
 0x162   : > { %p5558_p0 = pnand %p5556_p13, %p6223_p8 }
 0x164   : > { %p5559_p1 = pneg %p5558_p0 }
 0x166   : > { %p5564_p2 = pnand %p5562_p3, %p5559_p1 }
 0x168   : > { %5567 = shalt.err (!%p5564_p2)
}
 0x169   : > { %s5568_s25 = scalar_lea.vmem %s613_s4, 256  ;;  %p5576_p4 = scmp.lt.s32.totalorder %s613_s4, %s613_s4 }
 0x16a   : > { %p5569_p5 = scmp.ne.s32.totalorder %s613_s4, %s5568_s25  ;;  %p5577_p10 = scmp.lt.s32.totalorder %s5568_s25, %s5568_s25 }
 0x16c   : > { %p5571_p7 = pnand %p5569_p5, %p6223_p8  ;;  %p5578_p11 = por %p5577_p10, %p5576_p4 }
 0x16e   : > { %p5572_p9 = pneg %p5571_p7 }
 0x170   : > { %p5579_p12 = pnand %p5578_p11, %p5572_p9 }
 0x172   : > { %5582 = shalt.err (!%p5579_p12)
}
 0x173   : > { %s7861_s23 = smov 4   ;;  %s7862_s1 = smov 64  }
 0x174   : > { %4766 = dma.hbm_to_vmem [thread:$0]  (!%p6207_p6), %s7860_s0, 256, %s613_s4, [#allocation9], %s7862_s1, %s7862_s1, %s7861_s23  }
 0x175   : > { %s7863_s20 = sld [smem:[#allocation70_spill]] }
 0x17b   : > { %s5583_s3 = scalar_lea.hbm %s7863_s20, 128 }
 0x17c   : > { %p5584_p13 = scmp.ne.s32.totalorder %s7863_s20, %s5583_s3  ;;  %p5590_p3 = scmp.lt.u32.totalorder %s5583_s3, %s7863_s20 }
 0x17e   : > { %p5586_p0 = pnand %p5584_p13, %p6223_p8 }
 0x180   : > { %p5587_p1 = pneg %p5586_p0 }
 0x182   : > { %p5592_p2 = pnand %p5590_p3, %p5587_p1 }
 0x184   : > { %5595 = shalt.err (!%p5592_p2)
}
 0x185   : > { %s5596_s9 = scalar_lea.vmem %s637_s5, 128  ;;  %p5604_p4 = scmp.lt.s32.totalorder %s637_s5, %s637_s5 }
 0x186   : > { %p5597_p5 = scmp.ne.s32.totalorder %s637_s5, %s5596_s9  ;;  %p5605_p10 = scmp.lt.s32.totalorder %s5596_s9, %s5596_s9 }
 0x188   : > { %p5599_p7 = pnand %p5597_p5, %p6223_p8  ;;  %p5606_p11 = por %p5605_p10, %p5604_p4 }
 0x18a   : > { %p5600_p9 = pneg %p5599_p7 }
 0x18c   : > { %p5607_p12 = pnand %p5606_p11, %p5600_p9 }
 0x18e   : > { %5610 = shalt.err (!%p5607_p12)
}
 0x18f   : > { %4772 = dma.hbm_to_vmem [thread:$0]  (!%p6207_p6), %s7863_s20, 128, %s637_s5, [#allocation12], %s7862_s1, %s7862_s1, %s7861_s23  }
 0x190   : > { %s6028_s30 = smov [#allocation16]   ;;  %s6029_s24 = smov [#allocation19]  }
 0x191   : > { %s660_s29 = sshll.u32 %s6028_s30, 4  ;;  %s685_s3 = sshll.u32 %s6029_s24, 4  ;;  %s661_s29 = int_to_ptr.vmem [resolvable:$true] %s660_s29  ;;  %s686_s3 = int_to_ptr.vmem [resolvable:$true] %s685_s3 }
 0x192   : > { %s7864_s8 = sld [smem:[#allocation72_spill]] }
 0x198   : > { %s5611_s25 = scalar_lea.hbm %s7864_s8, 256 }
 0x199   : > { %p5612_p13 = scmp.ne.s32.totalorder %s7864_s8, %s5611_s25  ;;  %p5618_p3 = scmp.lt.u32.totalorder %s5611_s25, %s7864_s8 }
 0x19b   : > { %p5614_p0 = pnand %p5612_p13, %p6223_p8 }
 0x19d   : > { %p5615_p1 = pneg %p5614_p0 }
 0x19f   : > { %p5620_p2 = pnand %p5618_p3, %p5615_p1 }
 0x1a1   : > { %5623 = shalt.err (!%p5620_p2)
}
 0x1a2   : > { %s5624_s5 = scalar_lea.vmem %s661_s29, 256  ;;  %p5632_p4 = scmp.lt.s32.totalorder %s661_s29, %s661_s29 }
 0x1a3   : > { %p5625_p5 = scmp.ne.s32.totalorder %s661_s29, %s5624_s5  ;;  %p5633_p10 = scmp.lt.s32.totalorder %s5624_s5, %s5624_s5 }
 0x1a5   : > { %p5627_p7 = pnand %p5625_p5, %p6223_p8  ;;  %p5634_p11 = por %p5633_p10, %p5632_p4 }
 0x1a7   : > { %p5628_p9 = pneg %p5627_p7 }
 0x1a9   : > { %p5635_p12 = pnand %p5634_p11, %p5628_p9 }
 0x1ab   : > { %5638 = shalt.err (!%p5635_p12)
}
 0x1ac   : > { %4778 = dma.hbm_to_vmem [thread:$0]  (!%p6207_p6), %s7864_s8, 256, %s661_s29, [#allocation15], %s7862_s1, %s7862_s1, %s7861_s23  }
 0x1ad   : > { %s7865_s10 = sld [smem:[#allocation74_spill]] }
 0x1b3   : > { %s5639_s24 = scalar_lea.hbm %s7865_s10, 32 }
 0x1b4   : > { %p5640_p13 = scmp.ne.s32.totalorder %s7865_s10, %s5639_s24  ;;  %p5646_p3 = scmp.lt.u32.totalorder %s5639_s24, %s7865_s10 }
 0x1b6   : > { %p5642_p0 = pnand %p5640_p13, %p6223_p8 }
 0x1b8   : > { %p5643_p1 = pneg %p5642_p0 }
 0x1ba   : > { %p5648_p2 = pnand %p5646_p3, %p5643_p1 }
 0x1bc   : > { %5651 = shalt.err (!%p5648_p2)
}
 0x1bd   : > { %s5652_s28 = scalar_lea.vmem %s686_s3, 32  ;;  %p5660_p4 = scmp.lt.s32.totalorder %s686_s3, %s686_s3 }
 0x1be   : > { %p5653_p5 = scmp.ne.s32.totalorder %s686_s3, %s5652_s28  ;;  %p5661_p10 = scmp.lt.s32.totalorder %s5652_s28, %s5652_s28 }
 0x1c0   : > { %p5655_p7 = pnand %p5653_p5, %p6223_p8  ;;  %p5662_p11 = por %p5661_p10, %p5660_p4 }
 0x1c2   : > { %p5656_p9 = pneg %p5655_p7 }
 0x1c4   : > { %p5663_p12 = pnand %p5662_p11, %p5656_p9 }
 0x1c6   : > { %5666 = shalt.err (!%p5663_p12)
}
 0x1c7   : > { %4784 = dma.hbm_to_vmem [thread:$0]  (!%p6207_p6), %s7865_s10, 32, %s686_s3, [#allocation18]  }
 0x1c8   : > { %s6030_s2 = smov [#allocation22]   ;;  %s6031_s4 = smov [#allocation25]  }
 0x1c9   : > { %s706_s0 = sshll.u32 %s6030_s2, 4  ;;  %s730_s30 = sshll.u32 %s6031_s4, 4  ;;  %s707_s0 = int_to_ptr.vmem [resolvable:$true] %s706_s0  ;;  %s731_s30 = int_to_ptr.vmem [resolvable:$true] %s730_s30 }
 0x1ca   : > { %s7866_s12 = sld [smem:[#allocation76_spill]] }
 0x1d0   : > { %s5667_s27 = scalar_lea.hbm %s7866_s12, 128 }
 0x1d1   : > { %p5668_p13 = scmp.ne.s32.totalorder %s7866_s12, %s5667_s27  ;;  %p5674_p3 = scmp.lt.u32.totalorder %s5667_s27, %s7866_s12 }
 0x1d3   : > { %p5670_p0 = pnand %p5668_p13, %p6223_p8 }
 0x1d5   : > { %p5671_p1 = pneg %p5670_p0 }
 0x1d7   : > { %p5676_p2 = pnand %p5674_p3, %p5671_p1 }
 0x1d9   : > { %5679 = shalt.err (!%p5676_p2)
}
 0x1da   : > { %s5680_s3 = scalar_lea.vmem %s707_s0, 128  ;;  %p5688_p4 = scmp.lt.s32.totalorder %s707_s0, %s707_s0 }
 0x1db   : > { %p5681_p5 = scmp.ne.s32.totalorder %s707_s0, %s5680_s3  ;;  %p5689_p10 = scmp.lt.s32.totalorder %s5680_s3, %s5680_s3 }
 0x1dd   : > { %p5683_p7 = pnand %p5681_p5, %p6223_p8  ;;  %p5690_p11 = por %p5689_p10, %p5688_p4 }
 0x1df   : > { %p5684_p9 = pneg %p5683_p7 }
 0x1e1   : > { %p5691_p12 = pnand %p5690_p11, %p5684_p9 }
 0x1e3   : > { %5694 = shalt.err (!%p5691_p12)
}
 0x1e4   : > { %4790 = dma.hbm_to_vmem [thread:$0]  (!%p6207_p6), %s7866_s12, 128, %s707_s0, [#allocation21], %s7862_s1, %s7862_s1, %s7861_s23  }
 0x1e5   : > { %s7867_s14 = sld [smem:[#allocation78_spill]] }
 0x1eb   : > { %s5695_s18 = scalar_lea.hbm %s7867_s14, 256 }
 0x1ec   : > { %p5696_p13 = scmp.ne.s32.totalorder %s7867_s14, %s5695_s18  ;;  %p5702_p3 = scmp.lt.u32.totalorder %s5695_s18, %s7867_s14 }
 0x1ee   : > { %p5698_p0 = pnand %p5696_p13, %p6223_p8 }
 0x1f0   : > { %p5699_p1 = pneg %p5698_p0 }
 0x1f2   : > { %p5704_p2 = pnand %p5702_p3, %p5699_p1 }
 0x1f4   : > { %5707 = shalt.err (!%p5704_p2)
}
 0x1f5   : > { %s5708_s29 = scalar_lea.vmem %s731_s30, 256  ;;  %p5716_p4 = scmp.lt.s32.totalorder %s731_s30, %s731_s30 }
 0x1f6   : > { %p5709_p5 = scmp.ne.s32.totalorder %s731_s30, %s5708_s29  ;;  %p5717_p10 = scmp.lt.s32.totalorder %s5708_s29, %s5708_s29 }
 0x1f8   : > { %p5711_p7 = pnand %p5709_p5, %p6223_p8  ;;  %p5718_p11 = por %p5717_p10, %p5716_p4 }
 0x1fa   : > { %p5712_p9 = pneg %p5711_p7 }
 0x1fc   : > { %p5719_p12 = pnand %p5718_p11, %p5712_p9 }
 0x1fe   : > { %5722 = shalt.err (!%p5719_p12)
}
 0x1ff   : > { %4796 = dma.hbm_to_vmem [thread:$0]  (!%p6207_p6), %s7867_s14, 256, %s731_s30, [#allocation24], %s7862_s1, %s7862_s1, %s7861_s23  }
 0x200   : > { %s6032_s5 = smov [#allocation28]   ;;  %s6033_s4 = smov [#allocation31]  }
 0x201   : > { %s755_s2 = sshll.u32 %s6032_s5, 4  ;;  %s779_s24 = sshll.u32 %s6033_s4, 4  ;;  %s756_s2 = int_to_ptr.vmem [resolvable:$true] %s755_s2  ;;  %s780_s24 = int_to_ptr.vmem [resolvable:$true] %s779_s24 }
 0x202   : > { %s7868_s16 = sld [smem:[#allocation80_spill]] }
 0x208   : > { %s5723_s25 = scalar_lea.hbm %s7868_s16, 16 }
 0x209   : > { %p5724_p13 = scmp.ne.s32.totalorder %s7868_s16, %s5723_s25  ;;  %p5730_p3 = scmp.lt.u32.totalorder %s5723_s25, %s7868_s16 }
 0x20b   : > { %p5726_p0 = pnand %p5724_p13, %p6223_p8 }
 0x20d   : > { %p5727_p1 = pneg %p5726_p0 }
 0x20f   : > { %p5732_p2 = pnand %p5730_p3, %p5727_p1 }
 0x211   : > { %5735 = shalt.err (!%p5732_p2)
}
 0x212   : > { %s5736_s30 = scalar_lea.vmem %s756_s2, 16  ;;  %s5743_s3 = scalar_lea.vmem %s756_s2, 32 }
 0x213   : > { %p5737_p5 = scmp.ne.s32.totalorder %s756_s2, %s5736_s30  ;;  %p5744_p4 = scmp.lt.s32.totalorder %s756_s2, %s756_s2 }
 0x214   : > { %p5745_p10 = scmp.lt.s32.totalorder %s5743_s3, %s5736_s30 }
 0x215   : > { %p5739_p7 = pnand %p5737_p5, %p6223_p8 }
 0x216   : > { %p5746_p11 = por %p5745_p10, %p5744_p4 }
 0x217   : > { %p5740_p9 = pneg %p5739_p7 }
 0x219   : > { %p5747_p12 = pnand %p5746_p11, %p5740_p9 }
 0x21b   : > { %5750 = shalt.err (!%p5747_p12)
}
 0x21c   : > { %4802 = dma.hbm_to_vmem [thread:$0]  (!%p6207_p6), %s7868_s16, 16, %s756_s2, [#allocation27]  }
 0x21d   : > { %s7869_s25 = sld [smem:[#allocation82_spill]] }
 0x223   : > { %s7870_s9 = smov %s7869_s25  ;;  %s5751_s28 = scalar_lea.hbm %s7869_s25, 16 }
 0x224   : > { %p5752_p13 = scmp.ne.s32.totalorder %s7870_s9, %s5751_s28  ;;  %p5758_p3 = scmp.lt.u32.totalorder %s5751_s28, %s7870_s9 }
 0x226   : > { %p5754_p0 = pnand %p5752_p13, %p6223_p8 }
 0x228   : > { %p5755_p1 = pneg %p5754_p0 }
 0x22a   : > { %p5760_p2 = pnand %p5758_p3, %p5755_p1 }
 0x22c   : > { %5763 = shalt.err (!%p5760_p2)
}
 0x22d   : > { %s5764_s5 = scalar_lea.vmem %s780_s24, 16  ;;  %s5771_s2 = scalar_lea.vmem %s780_s24, 32 }
 0x22e   : > { %p5765_p5 = scmp.ne.s32.totalorder %s780_s24, %s5764_s5  ;;  %p5772_p4 = scmp.lt.s32.totalorder %s780_s24, %s780_s24 }
 0x22f   : > { %p5773_p10 = scmp.lt.s32.totalorder %s5771_s2, %s5764_s5 }
 0x230   : > { %p5767_p7 = pnand %p5765_p5, %p6223_p8 }
 0x231   : > { %p5774_p11 = por %p5773_p10, %p5772_p4 }
 0x232   : > { %p5768_p9 = pneg %p5767_p7 }
 0x234   : > { %p5775_p12 = pnand %p5774_p11, %p5768_p9 }
 0x236   : > { %5778 = shalt.err (!%p5775_p12)
}
 0x237   : > { %4808 = dma.hbm_to_vmem [thread:$0]  (!%p6207_p6), %s7870_s9, 16, %s780_s24, [#allocation30]  }
 0x238   : > { %s6034_s27 = smov [#allocation34]   ;;  %s6035_s28 = smov [#allocation37]  }
 0x239   : > { %s800_s25 = sshll.u32 %s6034_s27, 4  ;;  %s825_s29 = sshll.u32 %s6035_s28, 4  ;;  %s801_s25 = int_to_ptr.vmem [resolvable:$true] %s800_s25  ;;  %s826_s29 = int_to_ptr.vmem [resolvable:$true] %s825_s29 }
 0x23a   : > { %s7871_s3 = sld [smem:[#allocation83_spill]] }
 0x240   : > { %s5779_s8 = scalar_lea.hbm %s7871_s3, 1024 }
 0x241   : > { %p5780_p13 = scmp.ne.s32.totalorder %s7871_s3, %s5779_s8  ;;  %p5786_p3 = scmp.lt.u32.totalorder %s5779_s8, %s7871_s3 }
 0x243   : > { %p5782_p0 = pnand %p5780_p13, %p6223_p8 }
 0x245   : > { %p5783_p1 = pneg %p5782_p0 }
 0x247   : > { %p5788_p2 = pnand %p5786_p3, %p5783_p1 }
 0x249   : > { %5791 = shalt.err (!%p5788_p2)
}
 0x24a   : > { %s5792_s24 = scalar_lea.vmem %s801_s25, 1024  ;;  %p5800_p4 = scmp.lt.s32.totalorder %s801_s25, %s801_s25 }
 0x24b   : > { %p5793_p5 = scmp.ne.s32.totalorder %s801_s25, %s5792_s24  ;;  %p5801_p10 = scmp.lt.s32.totalorder %s5792_s24, %s5792_s24 }
 0x24d   : > { %p5795_p7 = pnand %p5793_p5, %p6223_p8  ;;  %p5802_p11 = por %p5801_p10, %p5800_p4 }
 0x24f   : > { %p5796_p9 = pneg %p5795_p7 }
 0x251   : > { %p5803_p12 = pnand %p5802_p11, %p5796_p9 }
 0x253   : > { %5806 = shalt.err (!%p5803_p12)
}
 0x254   : > { %4814 = dma.hbm_to_vmem [thread:$0]  (!%p6207_p6), %s7871_s3, 1024, %s801_s25, [#allocation33], %s7862_s1, %s7862_s1, %s7861_s23  }
 0x255   : > { %s7872_s28 = sld [smem:[#allocation84_spill]] }
 0x25b   : > { %s5807_s0 = scalar_lea.hbm %s7872_s28, 16 }
 0x25c   : > { %p5808_p13 = scmp.ne.s32.totalorder %s7872_s28, %s5807_s0  ;;  %p5814_p3 = scmp.lt.u32.totalorder %s5807_s0, %s7872_s28 }
 0x25e   : > { %p5810_p0 = pnand %p5808_p13, %p6223_p8 }
 0x260   : > { %p5811_p1 = pneg %p5810_p0 }
 0x262   : > { %p5816_p2 = pnand %p5814_p3, %p5811_p1 }
 0x264   : > { %5819 = shalt.err (!%p5816_p2)
}
 0x265   : > { %s5820_s24 = scalar_lea.vmem %s826_s29, 16  ;;  %s5827_s23 = scalar_lea.vmem %s826_s29, 32 }
 0x266   : > { %p5821_p5 = scmp.ne.s32.totalorder %s826_s29, %s5820_s24  ;;  %p5828_p4 = scmp.lt.s32.totalorder %s826_s29, %s826_s29 }
 0x267   : > { %p5829_p10 = scmp.lt.s32.totalorder %s5827_s23, %s5820_s24 }
 0x268   : > { %p5823_p7 = pnand %p5821_p5, %p6223_p8 }
 0x269   : > { %p5830_p11 = por %p5829_p10, %p5828_p4 }
 0x26a   : > { %p5824_p9 = pneg %p5823_p7 }
 0x26c   : > { %p5831_p12 = pnand %p5830_p11, %p5824_p9 }
 0x26e   : > { %5834 = shalt.err (!%p5831_p12)
}
 0x26f   : > { %s7873_s10 = sld [smem:[#allocation56_spill]]  ;;  %s7874_s8 = sld [smem:[#allocation55_spill]] }
 0x270   : > { %s7875_s18 = sld [smem:[#allocation54_spill]]  ;;  %s7876_s6 = sld [smem:[#allocation53_spill]] }
 0x271   : > { %s7877_s27 = sld [smem:[#allocation57_spill]] }
 0x272   : > { %4820 = dma.hbm_to_vmem [thread:$0]  (!%p6207_p6), %s7872_s28, 16, %s826_s29, [#allocation36]  }
 0x275   : > { %s4208_s0 = sadd.s32 4294967294, %s7873_s10   ;;  %s6642_s25 = sadd.s32 1, %s7873_s10  }
 0x276   : > { %s59_s7 = sadd.s32 1, %s7874_s8  ;;  %s56_s30 = ssub.s32 %s7873_s10, %s6642_s25 }
 0x277   : > { %p66_p8 = scmp.ne.s32.totalorder %s7874_s8, %s7875_s18  ;;  %p57_p13 = scmp.eq.s32.totalorder %s56_s30, 0 }
 0x278   : > { %p67_p0 = scmp.eq.s32.totalorder %s7873_s10, 0  ;;  %p72_p1 = scmp.ne.s32.totalorder %s7875_s18, %s7876_s6 }
 0x279   : > { %p563_p3 = scmp.eq.s32.totalorder %s7877_s27, 1  ;;  %p7878_p5 = scmp.eq.s32.totalorder %s7877_s27, 0 }
 0x27a   : > { %s6654_s5 = scalar_select %p57_p13, %s7874_s8, %s59_s7  }
 0x27b   : > { %p68_p2 = por %p67_p0, %p66_p8  ;;  %p6658_p7 = por %p7878_p5, %p72_p1 }
 0x27c   : > { %p6662_p6 = por %p563_p3, %p66_p8  ;;  %p569_p9 = scmp.eq.s32.totalorder %s4208_s0, 1 }
 0x27d   : > { %p4853_p4 = scmp.lt.s32.totalorder %s7873_s10, 2  ;;  %s6668_s4 = sand.u32 1, %s7874_s8  }
 0x27e   : > { %s7880_s2 = scalar_select %p6662_p6, 1, 0 }
 0x27f   : > { %p6670_p10 = por %p569_p9, %p72_p1  ;;  %s4232_s23 = sshll.u32 %s6668_s4, 6 }
 0x280   : > { %s4361_s1 = sshll.u32 %s7873_s10, 10  ;;  %s7882_s27 = sld [smem:[#allocation64_spill]] }
 0x281   : > { %s7881_s24 = scalar_select %p6670_p10, 1, 0 }
 0x282   : > { %s840_s0 = scalar_lea.vmem [#allocation2], %s4232_s23  ;;  %p6681_p11 = pnand %p4853_p4, %p68_p2 }
 0x283   : > { %s847_s8 = sshll.u32 %s840_s0, 4  ;;  %s837_s9 = scalar_lea.sflag [#allocation3], %s6668_s4  ;;  %s6685_s8 = int_to_ptr.vmem [resolvable:$true] %s847_s8 }
 0x284   : > { %p5837_p8 = pneg %p6681_p11 }
 0x286   : > { %s6679_s7 = scalar_lea.hbm %s7882_s27, %s4361_s1  ;;  %s5840_s18 = scalar_lea.hbm %s7882_s27, 2048 }
 0x287   : > { %s5835_s11 = scalar_lea.hbm %s6679_s7, 1024  ;;  %p5841_p1 = scmp.lt.u32.totalorder %s6679_s7, %s7882_s27 }
 0x288   : > { %p5836_p12 = scmp.ne.s32.totalorder %s6679_s7, %s5835_s11  ;;  %p5842_p3 = scmp.lt.u32.totalorder %s5840_s18, %s5835_s11 }
 0x289   : > { %p5844_p5 = scmp.lt.u32.totalorder %s5835_s11, %s6679_s7 }
 0x28a   : > { %p5838_p13 = pnand %p5837_p8, %p5836_p12  ;;  %p5843_p2 = por %p5842_p3, %p5841_p1 }
 0x28c   : > { %p5839_p0 = pneg %p5838_p13  ;;  %p5845_p9 = por %p5844_p5, %p5843_p2 }
 0x28e   : > { %p5846_p4 = pnand %p5845_p9, %p5839_p0 }
 0x290   : > { %5849 = shalt.err (!%p5846_p4)
}
 0x291   : > { %s5850_s3 = scalar_lea.vmem %s6685_s8, 1024  ;;  %s6036_s23 = smov [#allocation2]  }
 0x292   : > { %p5851_p12 = scmp.ne.s32.totalorder %s6685_s8, %s5850_s3  ;;  %s5855_s1 = sshll.u32 %s6036_s23, 4  ;;  %s5856_s1 = int_to_ptr.vmem [resolvable:$false] %s5855_s1 }
 0x293   : > { %s5857_s6 = scalar_lea.vmem %s5856_s1, 2048  ;;  %p5858_p6 = scmp.lt.s32.totalorder %s6685_s8, %s5856_s1 }
 0x294   : > { %p5853_p13 = pnand %p5851_p12, %p5837_p8  ;;  %p5859_p1 = scmp.lt.s32.totalorder %s5857_s6, %s5850_s3 }
 0x296   : > { %p5854_p10 = pneg %p5853_p13  ;;  %p5860_p3 = por %p5859_p1, %p5858_p6 }
 0x298   : > { %p5861_p2 = pnand %p5860_p3, %p5854_p10 }
 0x29a   : > { %5864 = shalt.err (!%p5861_p2)
}
 0x29b   : > { %s7884_s11 = smov 8   ;;  %s7885_s18 = smov 128  }
 0x29c   : > { %4824 = dma.hbm_to_vmem [thread:$0]  (!%p6681_p11), %s6679_s7, 1024, %s6685_s8, %s837_s9, %s7885_s18, %s7885_s18, %s7884_s11  }
 0x29d   : > { %s4235_s0 = sshll.u32 %s6668_s4, 4  ;;  %s4362_s23 = sshll.u32 %s7873_s10, 8 }
 0x29e   : > { %s7886_s6 = sld [smem:[#allocation65_spill]]  ;;  %s861_s13 = scalar_lea.vmem [#allocation5], %s4235_s0 }
 0x29f   : > { %s868_s14 = sshll.u32 %s861_s13, 4  ;;  %s7887_s15 = sand.u32 1, %s7873_s10   ;;  %s6726_s14 = int_to_ptr.vmem [resolvable:$true] %s868_s14 }
 0x2a0   : > { %s6730_s16 = scalar_lea.sflag [#allocation6], %s7887_s15 }
 0x2a4   : > { %s6724_s12 = scalar_lea.hbm %s7886_s6, %s4362_s23  ;;  %s5870_s7 = scalar_lea.hbm %s7886_s6, 512 }
 0x2a5   : > { %s5865_s17 = scalar_lea.hbm %s6724_s12, 256  ;;  %p5871_p5 = scmp.lt.u32.totalorder %s6724_s12, %s7886_s6 }
 0x2a6   : > { %p5866_p6 = scmp.ne.s32.totalorder %s6724_s12, %s5865_s17  ;;  %p5872_p9 = scmp.lt.u32.totalorder %s5870_s7, %s5865_s17 }
 0x2a7   : > { %p5874_p12 = scmp.lt.u32.totalorder %s5865_s17, %s6724_s12 }
 0x2a8   : > { %p5868_p10 = pnand %p5866_p6, %p5837_p8  ;;  %p5873_p4 = por %p5872_p9, %p5871_p5 }
 0x2aa   : > { %p5869_p0 = pneg %p5868_p10  ;;  %p5875_p13 = por %p5874_p12, %p5873_p4 }
 0x2ac   : > { %p5876_p1 = pnand %p5875_p13, %p5869_p0 }
 0x2ae   : > { %5879 = shalt.err (!%p5876_p1)
}
 0x2af   : > { %s5880_s13 = scalar_lea.vmem %s6726_s14, 256  ;;  %s6037_s15 = smov [#allocation5]  }
 0x2b0   : > { %p5881_p3 = scmp.ne.s32.totalorder %s6726_s14, %s5880_s13  ;;  %s5885_s10 = sshll.u32 %s6037_s15, 4  ;;  %s5886_s10 = int_to_ptr.vmem [resolvable:$false] %s5885_s10 }
 0x2b1   : > { %s5887_s0 = scalar_lea.vmem %s5886_s10, 512  ;;  %p5888_p10 = scmp.lt.s32.totalorder %s6726_s14, %s5886_s10 }
 0x2b2   : > { %p5883_p2 = pnand %p5881_p3, %p5837_p8  ;;  %p5889_p5 = scmp.lt.s32.totalorder %s5887_s0, %s5880_s13 }
 0x2b4   : > { %p5884_p6 = pneg %p5883_p2  ;;  %p5890_p9 = por %p5889_p5, %p5888_p10 }
 0x2b6   : > { %p5891_p4 = pnand %p5890_p9, %p5884_p6 }
 0x2b8   : > { %5894 = shalt.err (!%p5891_p4)
}
 0x2b9   : > { %4827 = dma.hbm_to_vmem [thread:$0]  (!%p6681_p11), %s6724_s12, 256, %s6726_s14, %s6730_s16, %s7885_s18, %s7885_s18, %s7884_s11  }
 0x2ba   : > { %s7888_s17 = sld [smem:[#allocation58_spill]] }
 0x2c0   : > { %p7889_p8 = scmp.ne.s32.totalorder %s7888_s17, 0 }
 0x2c2   : > { %880 = sbr.rel (%p7889_p8) target bundleno = 4455 (0x1167), region = 112 }
 0x2c9   : > { %s7890_s3 = sld [smem:[#allocation54_spill]] }
 0x2cf   : > { %s6762_s1 = sand.u32 1, %s7890_s3  }
 0x2d0   : > { %s4239_s9 = sshll.u32 %s6762_s1, 6  ;;  %s883_s4 = scalar_lea.sflag [#allocation3], %s6762_s1 }
 0x2d1   : > { %s6768_s30 = scalar_lea.vmem [#allocation2], %s4239_s9 }
 0x2d2   : > { %5940 = dma.done.wait (%p6658_p7), %s883_s4, 1024  }
 0x2d3   : > { %5942 = vsyncadd (%p6658_p7), %s883_s4, 4294966272  ;;  %s7891_s12 = sld [smem:[#allocation57_spill]]  ;;  %s4240_s16 = sshll.u32 %s6762_s1, 4 }
 0x2d4   : > { %s6776_s18 = scalar_lea.vmem [#allocation5], %s4240_s16 }
 0x2d9   : > { %s891_s14 = sand.u32 1, %s7891_s12  }
 0x2da   : > { %s892_s11 = scalar_lea.sflag [#allocation6], %s891_s14 }
 0x2db   : > { %5944 = dma.done.wait (%p6658_p7), %s892_s11, 256  }
 0x2dc   : > { %5946 = vsyncadd (%p6658_p7), %s892_s11, 4294967040  ;;  %p7892_p11 = scmp.eq.s32.totalorder %s7891_s12, 0 }
 0x2de   : > { %5948 = dma.done.wait (%p7892_p11), [#allocation6], 256   ;;  %p7893_p0 = pmov %p7892_p11 }
 0x2e0   : > { %5950 = vsyncadd (%p7893_p0), [#allocation6], 4294967040  ;;  %p7894_p12 = pmov %p7893_p0 }
 0x2e1   : > { %p7895_p13 = pmov %p7893_p0 }
 0x2e2   : > { %5952 = dma.done.wait (%p7894_p12), [#allocation9], 272  }
 0x2e3   : > { %5954 = vsyncadd (%p7895_p13), [#allocation9], 4294967024  ;;  %p7896_p1 = pmov %p7893_p0 }
 0x2e4   : > { %p7897_p3 = pmov %p7893_p0 }
 0x2e5   : > { %5956 = dma.done.wait (%p7896_p1), [#allocation12], 144  }
 0x2e6   : > { %5958 = vsyncadd (%p7897_p3), [#allocation12], 4294967152  ;;  %p7898_p7 = pmov %p7893_p0 }
 0x2e7   : > { %p7899_p2 = pmov %p7893_p0 }
 0x2e8   : > { %5960 = dma.done.wait (%p7898_p7), [#allocation15], 272  }
 0x2e9   : > { %5962 = vsyncadd (%p7899_p2), [#allocation15], 4294967024  ;;  %p7900_p6 = pmov %p7893_p0 }
 0x2ea   : > { %p7901_p10 = pmov %p7893_p0 }
 0x2eb   : > { %5964 = dma.done.wait (%p7900_p6), [#allocation18], 64  }
 0x2ec   : > { %5966 = vsyncadd (%p7901_p10), [#allocation18], 4294967232  ;;  %p7902_p5 = pmov %p7893_p0 }
 0x2ed   : > { %p7903_p9 = pmov %p7893_p0 }
 0x2ee   : > { %5968 = dma.done.wait (%p7902_p5), [#allocation21], 144  }
 0x2ef   : > { %5970 = vsyncadd (%p7903_p9), [#allocation21], 4294967152  ;;  %p7904_p4 = pmov %p7893_p0 }
 0x2f0   : > { %p7905_p8 = pmov %p7893_p0 }
 0x2f1   : > { %5972 = dma.done.wait (%p7904_p4), [#allocation24], 272  }
 0x2f2   : > { %5974 = vsyncadd (%p7905_p8), [#allocation24], 4294967024  ;;  %p7906_p11 = pmov %p7893_p0 }
 0x2f4   : > { %5976 = dma.done.wait (%p7906_p11), [#allocation27], 32  }
 0x2f5   : > { %5978 = vsyncadd (%p7893_p0), [#allocation27], 4294967264  ;;  %p7907_p12 = pmov %p7893_p0 }
 0x2f6   : > { %p7908_p13 = pmov %p7893_p0 }
 0x2f7   : > { %5980 = dma.done.wait (%p7907_p12), [#allocation30], 272  }
 0x2f8   : > { %5982 = vsyncadd (%p7908_p13), [#allocation30], 4294967024  ;;  %p7909_p1 = pmov %p7893_p0 }
 0x2f9   : > { %p7910_p3 = pmov %p7893_p0 }
 0x2fa   : > { %5984 = dma.done.wait (%p7909_p1), [#allocation33], 1040  }
 0x2fb   : > { %5986 = vsyncadd (%p7910_p3), [#allocation33], 4294966256  ;;  %p7911_p7 = pmov %p7893_p0 }
 0x2fc   : > { %p7912_p2 = pmov %p7893_p0 }
 0x2fd   : > { %5988 = dma.done.wait (%p7911_p7), [#allocation36], 32  }
 0x2fe   : > { %5990 = vsyncadd (%p7912_p2), [#allocation36], 4294967264  ;;  %v5051_v0 = vld [vmem:[#allocation7] sm:$0xff]   ;;  %v5052_v1 = vld [vmem:[#allocation7 + $0x8] sm:$0xff]   ;;  %vm1083_vm0 = vcmask 261120   ;;  %v6038_v12 = vmov 0.0  }
 0x2ff   : > { %4459 = vmatprep.subr.bf16.mxu0 %v5051_v0  ;;  %v6827_v2 = vld [vmem:[%s6768_s30] sm:$0xff]  ;;  %v6830_v3 = vld [vmem:[%s6768_s30 + $0x8] sm:$0xff]  ;;  %v6835_v5 = vld [vmem:[%s6768_s30 + $0x10] sm:$0xff]  ;;  %vm6039_vm1 = vmmov 0   ;;  %vm1284_vm2 = vcmask 64512   ;;  %s6040_s29 = smov 120  }
 0x300   : > { %4460 = vmatpush3.bf16.msra.mxu0 %v5051_v0  ;;  %v1056_v4 = vpack.c.bf16 %v6830_v3, %v6827_v2  ;;  %v6838_v6 = vld [vmem:[%s6768_s30 + $0x18] sm:$0xff]  ;;  %v6841_v7 = vld [vmem:[%s6768_s30 + $0x20] sm:$0xff]  ;;  %v6844_v8 = vld [vmem:[%s6768_s30 + $0x28] sm:$0xff]  ;;  %vm1445_vm3 = vcmask 130048   ;;  %s6041_s7 = smov 112   ;;  %s6042_s8 = smov 16  }
 0x301   : > { %4461 = vmatprep.subr.bf16.mxu0 %v5052_v1  ;;  %v1057_v9 = vpack.c.bf16 %v6838_v6, %v6835_v5  ;;  %v1058_v10 = vpack.c.bf16 %v6844_v8, %v6841_v7  ;;  %v5055_v11 = vld [vmem:[#allocation10] sm:$0xff]   ;;  %v5056_v15 = vld [vmem:[#allocation10 + $0x8] sm:$0xff]   ;;  %v4263_v21 = vld [vmem:[#allocation8] ss:$0 sm:$0xff]  ;;  %s6045_s23 = smov 8   ;;  %s6046_s13 = smov 96  }
 0x302   : > { %4463 = vmatprep.mubr.msk.bf16.mxu0 %vm1083_vm0, %v1056_v4  ;;  %v6852_v13 = vld [vmem:[%s6768_s30 + $0x30] sm:$0xff]  ;;  %v6855_v14 = vld [vmem:[%s6768_s30 + $0x38] sm:$0xff]  ;;  %v4270_v45 = vld [vmem:[#allocation11] ss:$0 sm:$0xff]  ;;  %vm3109_vm4 = vcmask 1043456   ;;  %s6047_s15 = smov 24  }
 0x303   : > { %v1059_v16 = vpack.c.bf16 %v6855_v14, %v6852_v13  ;;  %v1161_v17 = vld [vmem:[%s6776_s18] sm:$0xff]  ;;  %v1162_v18 = vld [vmem:[%s6776_s18 + $0x8] sm:$0xff]  ;;  %vm3150_vm5 = vcmask 195584   ;;  %vm3444_vm6 = vcmask 1040384   ;;  %vm3469_vm7 = vcmask 1046528   ;;  %s1046_s14 = scalar_lea.vmem [#allocation38], %s4239_s9 }
 0x304   : > { %4462 = vmatpush3.bf16.msra.mxu0 %v5052_v1  ;;  %v1163_v19 = vpack.c.bf16 %v1162_v18, %v1161_v17  ;;  %s4363_s9 = sshll.u32 %s7891_s12, 10  ;;  %s3913_s16 = sshll.u32 %s1046_s14, 4  ;;  %s7707_s16 = int_to_ptr.vmem [resolvable:$true] %s3913_s16 }
 0x305   : > { %4471 = vmatprep.subr.bf16.mxu0 %v6038_v12  ;;  %s3900_s12 = scalar_lea.sflag [#allocation4], %s6762_s1  ;;  %p7924_p10 = scmp.ne.s32.totalorder %s7880_s2, 0 }
 0x307   : > { %4464 = vmatmul.mubr.msk.bf16.vlgmr.msra.gmra.mrb[0].mxu0 %vm1083_vm0, %v1057_v9 }
 0x308   : > { %4467 = vmatprep.mubr.msk.bf16.mxu0 %vm1083_vm0, %v1058_v10  ;;  %4472 = vmatpush3.bf16.msra.mxu0 %v5055_v11 }
 0x309   : > { %4473 = vmatprep.subr.bf16.mxu0 %v6038_v12 }
 0x30c   : > { %4474 = vmatpush3.bf16.msra.mxu0 %v5056_v15 }
 0x30f   : > { %4468 = vmatmul.mubr.msk.bf16.gmra.mrb[4].mxu0 %vm1083_vm0, %v1059_v16 }
 0x310   : > { %4475 = vmatprep.mubr.msk.bf16.mxu0 %vm6039_vm1, %v6038_v12 }
 0x317   : > { %4476 = vmatmul.mubr.msk.bf16.vlgmr.msra.gmra.mrb[8].mxu0 %vm1083_vm0, %v1163_v19 }
 0x3da   : > { %v4465_v20 = vpop.f32.mrb[0].mxu0 }
 0x3db   : > { %v1130_v22 = vpop.f32.mrb[1].mxu0  ;;  %v1139_v24 = vadd.f32 %v4465_v20, %v4263_v21 }
 0x3dc   : > { %v4466_v23 = vpop.f32.mrb[2].mxu0  ;;  %v1131_v27 = vadd.f32 %v4263_v21, %v1130_v22 }
 0x3dd   : > { %v1142_v25 = vadd.f32 %v4466_v23, %v4263_v21  ;;  %v1133_v26 = vpop.f32.mrb[3].mxu0 }
 0x3de   : > { %v1134_v28 = vadd.f32 %v4263_v21, %v1133_v26 }
 0x3df   : > { %v1275_v29 = vpack.c.bf16 %v1142_v25, %v1139_v24  ;;  %v4954_v30 = vpack.i.bf16 %v1142_v25, %v1139_v24 }
 0x3e0   : > { %v4949_v31 = vpack.i.bf16 %v1134_v28, %v1131_v27  ;;  %v1274_v32 = vpack.c.bf16 %v1134_v28, %v1131_v27 }
 0x3e1   : > { %4955 = vrot.lane.b32.xlu1 %v4954_v30, %s6040_s29 }
 0x3e2   : > { %v4469_v33 = vpop.f32.mrb[4].mxu0  ;;  %4481 = vmatprep.mubr.msk.bf16.mxu1 %vm1284_vm2, %v1274_v32 }
 0x3e3   : > { %v1146_v34 = vpop.f32.mrb[5].mxu0  ;;  %v1155_v36 = vadd.f32 %v4469_v33, %v4263_v21 }
 0x3e4   : > { %v4470_v35 = vpop.f32.mrb[6].mxu0  ;;  %v1147_v39 = vadd.f32 %v4263_v21, %v1146_v34 }
 0x3e5   : > { %v1158_v37 = vadd.f32 %v4470_v35, %v4263_v21  ;;  %v1149_v38 = vpop.f32.mrb[7].mxu0 }
 0x3e6   : > { %v1150_v40 = vadd.f32 %v4263_v21, %v1149_v38 }
 0x3e7   : > { %v4964_v41 = vpack.i.bf16 %v1158_v37, %v1155_v36  ;;  %v1277_v42 = vpack.c.bf16 %v1158_v37, %v1155_v36 }
 0x3e8   : > { %v4959_v43 = vpack.i.bf16 %v1150_v40, %v1147_v39  ;;  %v1276_v44 = vpack.c.bf16 %v1150_v40, %v1147_v39 }
 0x3ea   : > { %v1224_v46 = vpop.f32.mrb[8].mxu0  ;;  %4960 = vrot.lane.b32.xlu1 %v4959_v43, %s6040_s29 }
 0x3eb   : > { %v4477_v47 = vpop.f32.mrb[9].mxu0  ;;  %v1225_v49 = vadd.f32 %v4270_v45, %v1224_v46 }
 0x3ec   : > { %v1227_v48 = vpop.f32.mrb[10].mxu0 }
 0x3ed   : > { %v1228_v50 = vadd.f32 %v4270_v45, %v1227_v48  ;;  %v4478_v51 = vpop.f32.mrb[11].mxu0 }
 0x3ef   : > { %v6868_v52 = vpack.c.bf16 %v1228_v50, %v1225_v49  ;;  %v4944_v53 = vpack.i.bf16 %v1228_v50, %v1225_v49 }
 0x3f1   : > { %4945 = vrot.lane.b32.xlu0 %v4944_v53, %s6040_s29  ;;  %4651 = vmatprep.subr.msk.bf16.mxu1 %vm1284_vm2, %v6868_v52  ;;  %v1298_v54 = vsel %vm1284_vm2, %v6868_v52, 0 }
 0x3f2   : > { %4480 = vmatpush3.bf16.xpose.msra.mxu1 %v1298_v54 }
 0x3f5   : > { %4950 = vrot.lane.b32.xlu0 %v4949_v31, %s6040_s29 }
 0x3f9   : > { %4965 = vrot.lane.b32.xlu0 %v4964_v41, %s6040_s29  ;;  %4482 = vmatmul.mubr.msk.bf16.vlgmr.msra.gmra.mrb[0].mxu1 %vm1284_vm2, %v1275_v29 }
 0x3fa   : > { %4485 = vmatprep.mubr.msk.bf16.mxu1 %vm1284_vm2, %v1276_v44 }
 0x401   : > { %4486 = vmatmul.mubr.msk.bf16.gmra.mrb[4].mxu1 %vm1284_vm2, %v1277_v42 }
 0x453   : > { %v4956_v56 = vpop.permute.xlu1 %4955 }
 0x454   : > { %v4958_v1 = vunpack.i.h.bf16 %v4956_v56  ;;  %v4957_v4 = vunpack.i.l.bf16 %v4956_v56 }
 0x456   : > { %v1279_v12 = vpack.c.bf16 %v4958_v1, %v4957_v4 }
 0x45c   : > { %v4961_v61 = vpop.permute.xlu1 %4960 }
 0x45d   : > { %v4963_v10 = vunpack.i.h.bf16 %v4961_v61  ;;  %v4962_v11 = vunpack.i.l.bf16 %v4961_v61 }
 0x45f   : > { %v1280_v15 = vpack.c.bf16 %v4963_v10, %v4962_v11 }
 0x463   : > { %v4946_v55 = vpop.permute.xlu0 %4945 }
 0x464   : > { %v4948_v57 = vunpack.i.h.bf16 %v4946_v55  ;;  %v4947_v58 = vunpack.i.l.bf16 %v4946_v55 }
 0x466   : > { %v6880_v59 = vpack.c.bf16 %v4948_v57, %v4947_v58 }
 0x467   : > { %v4951_v60 = vpop.permute.xlu0 %4950 }
 0x468   : > { %v4953_v62 = vunpack.i.h.bf16 %v4951_v60  ;;  %v4952_v63 = vunpack.i.l.bf16 %v4951_v60  ;;  %4652 = vmatprep.subr.msk.bf16.mxu0 %vm1284_vm2, %v6880_v59  ;;  %v1378_v0 = vsel %vm1284_vm2, %v6880_v59, 0 }
 0x469   : > { %4490 = vmatpush3.bf16.xpose.msra.mxu0 %v1378_v0 }
 0x46a   : > { %v1278_v9 = vpack.c.bf16 %v4953_v62, %v4952_v63 }
 0x46b   : > { %v4966_v16 = vpop.permute.xlu0 %4965 }
 0x46c   : > { %4491 = vmatprep.mubr.msk.bf16.mxu0 %vm1284_vm2, %v1278_v9  ;;  %v4968_v17 = vunpack.i.h.bf16 %v4966_v16  ;;  %v4967_v18 = vunpack.i.l.bf16 %v4966_v16 }
 0x46e   : > { %v1281_v19 = vpack.c.bf16 %v4968_v17, %v4967_v18 }
 0x470   : > { %4492 = vmatmul.mubr.msk.bf16.vlgmr.msra.gmra.mrb[12].mxu0 %vm1284_vm2, %v1279_v12 }
 0x471   : > { %4495 = vmatprep.mubr.msk.bf16.mxu0 %vm1284_vm2, %v1280_v15 }
 0x478   : > { %4496 = vmatmul.mubr.msk.bf16.gmra.mrb[16].mxu0 %vm1284_vm2, %v1281_v19 }
 0x4cc   : > { %v6890_v20 = vpop.f32.mrb[0].mxu1 }
 0x4cd   : > { %v6892_v21 = vpop.f32.mrb[1].mxu1 }
 0x4ce   : > { %v6894_v22 = vpop.f32.mrb[2].mxu1 }
 0x4cf   : > { %v6896_v23 = vpop.f32.mrb[3].mxu1 }
 0x4d4   : > { %v6898_v24 = vpop.f32.mrb[4].mxu1 }
 0x4d5   : > { %v6900_v25 = vpop.f32.mrb[5].mxu1 }
 0x4d6   : > { %v6902_v26 = vpop.f32.mrb[6].mxu1 }
 0x4d7   : > { %v6904_v27 = vpop.f32.mrb[7].mxu1 }
 0x543   : > { %v4493_v28 = vpop.f32.mrb[12].mxu0 }
 0x544   : > { %v1414_v29 = vpop.f32.mrb[13].mxu0  ;;  %v1476_v36 = vsel %vm1445_vm3, %v4493_v28, -inf }
 0x545   : > { %v4494_v30 = vpop.f32.mrb[14].mxu0  ;;  %v1470_v31 = vsel %vm1445_vm3, %v1414_v29, -inf }
 0x546   : > { %1471 = vmax.xlane.f32.xlu1 %v1470_v31  ;;  %v1417_v32 = vpop.f32.mrb[15].mxu0  ;;  %v1479_v34 = vsel %vm1445_vm3, %v4494_v30, -inf }
 0x547   : > { %v1473_v33 = vsel %vm1445_vm3, %v1417_v32, -inf }
 0x548   : > { %1474 = vmax.xlane.f32.xlu0 %v1473_v33 }
 0x54a   : > { %1480 = vmax.xlane.f32.xlu1 %v1479_v34 }
 0x54b   : > { %v4497_v35 = vpop.f32.mrb[16].mxu0 }
 0x54c   : > { %1477 = vmax.xlane.f32.xlu0 %v1476_v36  ;;  %v1430_v37 = vpop.f32.mrb[17].mxu0  ;;  %v1488_v42 = vsel %vm1445_vm3, %v4497_v35, -inf }
 0x54d   : > { %v4498_v38 = vpop.f32.mrb[18].mxu0  ;;  %v1482_v40 = vsel %vm1445_vm3, %v1430_v37, -inf }
 0x54e   : > { %v1433_v39 = vpop.f32.mrb[19].mxu0  ;;  %v1491_v43 = vsel %vm1445_vm3, %v4498_v38, -inf }
 0x54f   : > { %v1485_v41 = vsel %vm1445_vm3, %v1433_v39, -inf }
 0x550   : > { %1483 = vmax.xlane.f32.xlu0 %v1482_v40  ;;  %1486 = vmax.xlane.f32.xlu1 %v1485_v41  ;;  %v1452_v40 = vsel %vm1445_vm3, %v6890_v20, -inf  ;;  %v1455_v41 = vsel %vm1445_vm3, %v6894_v22, -inf }
 0x554   : > { %1489 = vmax.xlane.f32.xlu0 %v1488_v42  ;;  %1492 = vmax.xlane.f32.xlu1 %v1491_v43  ;;  %v1458_v42 = vsel %vm1445_vm3, %v6900_v25, -inf  ;;  %v1461_v43 = vsel %vm1445_vm3, %v6904_v27, -inf }
 0x5d3   : > { %v1472_v44 = vpop.xlane.xlu1 %1471 }
 0x5d4   : > { %v1502_v48 = vsub.f32 %v1414_v29, %v1472_v44  ;;  %v1467_v44 = vsel %vm1445_vm3, %v6902_v26, -inf }
 0x5d5   : > { %v1475_v45 = vpop.xlane.xlu0 %1474 }
 0x5d6   : > { %v1503_v46 = vsub.f32 %v1417_v32, %v1475_v45  ;;  %v1526_v55 = vmul.f32 1.442695, %v1502_v48  ;;  %v1464_v45 = vsel %vm1445_vm3, %v6898_v24, -inf }
 0x5d7   : > { %v1481_v47 = vpop.xlane.xlu1 %1480 }
 0x5d8   : > { %v1528_v49 = vmul.f32 1.442695, %v1503_v46  ;;  %v1505_v50 = vsub.f32 %v4494_v30, %v1481_v47 }
 0x5d9   : > { %v1478_v51 = vpop.xlane.xlu0 %1477 }
 0x5da   : > { %5077 = vpow2.f32 %v1528_v49  ;;  %v1532_v53 = vmul.f32 1.442695, %v1505_v50  ;;  %v1504_v54 = vsub.f32 %v4493_v28, %v1478_v51 }
 0x5dc   : > { %5079 = vpow2.f32 %v1532_v53  ;;  %v1530_v56 = vmul.f32 1.442695, %v1504_v54 }
 0x5dd   : > { %v1484_v57 = vpop.xlane.xlu0 %1483  ;;  %v1487_v58 = vpop.xlane.xlu1 %1486 }
 0x5de   : > { %5081 = vpow2.f32 %v1530_v56  ;;  %v1507_v60 = vsub.f32 %v1433_v39, %v1487_v58  ;;  %v1506_v61 = vsub.f32 %v1430_v37, %v1484_v57  ;;  %v1449_v39 = vsel %vm1445_vm3, %v6896_v23, -inf }
 0x5df   : > { %5083 = vpow2.f32 %v1526_v55 }
 0x5e0   : > { %v1536_v62 = vmul.f32 1.442695, %v1507_v60  ;;  %v1534_v10 = vmul.f32 1.442695, %v1506_v61 }
 0x5e1   : > { %v1490_v63 = vpop.xlane.xlu0 %1489  ;;  %v1493_v0 = vpop.xlane.xlu1 %1492 }
 0x5e2   : > { %v1508_v1 = vsub.f32 %v4497_v35, %v1490_v63  ;;  %v1509_v4 = vsub.f32 %v4498_v38, %v1493_v0  ;;  %5085 = vpow2.f32 %v1536_v62  ;;  %v1446_v38 = vsel %vm1445_vm3, %v6892_v21, -inf  ;;  %v5057_v63 = vld [vmem:[#allocation16] sm:$0xff]  }
 0x5e4   : > { %v6914_v9 = vpop.eup %5077  ;;  %v1538_v11 = vmul.f32 1.442695, %v1508_v1  ;;  %v1540_v12 = vmul.f32 1.442695, %v1509_v4 }
 0x5e5   : > { %v1569_v15 = vsel %vm1445_vm3, %v6914_v9, 0.0 }
 0x5e6   : > { %v6918_v16 = vpop.eup %5079  ;;  %5087 = vpow2.f32 %v1538_v11  ;;  %1570 = vadd.xlane.f32.xlu1 %v1569_v15 }
 0x5e7   : > { %5089 = vpow2.f32 %v1540_v12  ;;  %v1575_v19 = vsel %vm1445_vm3, %v6918_v16, 0.0 }
 0x5e8   : > { %v5082_v17 = vpop.eup %5081  ;;  %5091 = vpow2.f32 %v1534_v10 }
 0x5e9   : > { %v1572_v18 = vsel %vm1445_vm3, %v5082_v17, 0.0  ;;  %v5084_v28 = vpop.eup %5083 }
 0x5ea   : > { %1573 = vadd.xlane.f32.xlu0 %v1572_v18  ;;  %1576 = vadd.xlane.f32.xlu1 %v1575_v19  ;;  %v1566_v30 = vsel %vm1445_vm3, %v5084_v28, 0.0 }
 0x5ec   : > { %v6923_v29 = vpop.eup %5085 }
 0x5ed   : > { %v1581_v31 = vsel %vm1445_vm3, %v6923_v29, 0.0 }
 0x5ee   : > { %1567 = vadd.xlane.f32.xlu0 %v1566_v30  ;;  %1582 = vadd.xlane.f32.xlu1 %v1581_v31 }
 0x5f0   : > { %v6928_v32 = vpop.eup %5087 }
 0x5f1   : > { %v6930_v33 = vpop.eup %5089  ;;  %v1584_v34 = vsel %vm1445_vm3, %v6928_v32, 0.0 }
 0x5f2   : > { %v6934_v35 = vpop.eup %5091  ;;  %1585 = vadd.xlane.f32.xlu0 %v1584_v34  ;;  %v1587_v36 = vsel %vm1445_vm3, %v6930_v33, 0.0 }
 0x5f3   : > { %1588 = vadd.xlane.f32.xlu1 %v1587_v36  ;;  %v1578_v37 = vsel %vm1445_vm3, %v6934_v35, 0.0 }
 0x5f6   : > { %1579 = vadd.xlane.f32.xlu0 %v1578_v37 }
 0x5f7   : > { %1447 = vmax.xlane.f32.xlu1 %v1446_v38 }
 0x5fb   : > { %1450 = vmax.xlane.f32.xlu1 %v1449_v39 }
 0x5ff   : > { %1453 = vmax.xlane.f32.xlu1 %v1452_v40 }
 0x603   : > { %1456 = vmax.xlane.f32.xlu1 %v1455_v41 }
 0x607   : > { %1459 = vmax.xlane.f32.xlu1 %v1458_v42 }
 0x60b   : > { %1462 = vmax.xlane.f32.xlu1 %v1461_v43 }
 0x60c   : > { %1712 = vrot.lane.b32.xlu0 %v6880_v59, %s6041_s7 }
 0x60f   : > { %1468 = vmax.xlane.f32.xlu1 %v1467_v44 }
 0x62b   : > { %1465 = vmax.xlane.f32.xlu0 %v1464_v45 }
 0x673   : > { %v1571_v46 = vpop.xlane.xlu1 %1570 }
 0x677   : > { %v1574_v47 = vpop.xlane.xlu0 %1573  ;;  %v1577_v48 = vpop.xlane.xlu1 %1576 }
 0x678   : > { %5093 = vrcp.f32 %v1574_v47  ;;  %v4296_v47 = vcombine.high %v6827_v2, %v6830_v3 }
 0x679   : > { %5095 = vrcp.f32 %v1577_v48  ;;  %v4297_v48 = vcombine.high %v6835_v5, %v6838_v6 }
 0x67a   : > { %5097 = vrcp.f32 %v1571_v46 }
 0x67b   : > { %v1568_v49 = vpop.xlane.xlu0 %1567  ;;  %v1583_v50 = vpop.xlane.xlu1 %1582 }
 0x67c   : > { %5099 = vrcp.f32 %v1568_v49 }
 0x67f   : > { %v1586_v51 = vpop.xlane.xlu0 %1585 }
 0x680   : > { %5101 = vrcp.f32 %v1586_v51  ;;  %v1589_v59 = vpop.xlane.xlu1 %1588 }
 0x681   : > { %5103 = vrcp.f32 %v1589_v59 }
 0x682   : > { %v5094_v53 = vpop.eup %5093  ;;  %5105 = vrcp.f32 %v1583_v50 }
 0x683   : > { %v5096_v54 = vpop.eup %5095  ;;  %v1580_v55 = vpop.xlane.xlu0 %1579  ;;  %v1611_v61 = vmul.f32 %v5094_v53, %v5082_v17 }
 0x684   : > { %v5098_v56 = vpop.eup %5097  ;;  %5107 = vrcp.f32 %v1580_v55  ;;  %v1448_v57 = vpop.xlane.xlu1 %1447  ;;  %v1613_v62 = vmul.f32 %v5096_v54, %v6918_v16 }
 0x685   : > { %v1494_v58 = vsub.f32 %v6892_v21, %v1448_v57  ;;  %v1609_v10 = vmul.f32 %v5098_v56, %v6914_v9  ;;  %v5058_v21 = vld [vmem:[#allocation16 + $0x8] sm:$0xff]  }
 0x686   : > { %v5100_v60 = vpop.eup %5099  ;;  %v1627_v19 = vpack.c.bf16 %v1613_v62, %v1611_v61 }
 0x687   : > { %v1510_v0 = vmul.f32 1.442695, %v1494_v58  ;;  %v1713_v1 = vpop.permute.xlu0 %1712  ;;  %v1607_v4 = vmul.f32 %v5100_v60, %v5084_v28  ;;  %v1942_v28 = vcombine.low %v6835_v5, %v6838_v6  ;;  %v4299_v5 = vcombine.high %v6852_v13, %v6855_v14 }
 0x688   : > { %v1451_v11 = vpop.xlane.xlu1 %1450  ;;  %4509 = vmatprep.subr.bf16.mxu0 %v1713_v1 }
 0x689   : > { %5109 = vpow2.f32 %v1510_v0  ;;  %v1495_v12 = vsub.f32 %v6896_v23, %v1451_v11  ;;  %4510 = vmatpush3.bf16.msra.mxu0 %v1713_v1  ;;  %v1626_v15 = vpack.c.bf16 %v1609_v10, %v1607_v4  ;;  %v1941_v23 = vcombine.low %v6827_v2, %v6830_v3  ;;  %v4308_v4 = vld [vmem:[#allocation20] ss:$0 sm:$0xff] }
 0x68a   : > { %v5102_v18 = vpop.eup %5101  ;;  %4529 = vmatprep.subr.bf16.mxu0 %v5057_v63  ;;  %v4298_v3 = vcombine.high %v6841_v7, %v6844_v8 }
 0x68b   : > { %v5104_v17 = vpop.eup %5103  ;;  %v1512_v30 = vmul.f32 1.442695, %v1495_v12  ;;  %4511 = vmatprep.mubr.msk.bf16.mxu0 %vm1445_vm3, %v1626_v15  ;;  %v1619_v36 = vmul.f32 %v5102_v18, %v6928_v32  ;;  %v1957_v43 = vpack.c.bf16 %v1942_v28, %v1941_v23  ;;  %v1943_v32 = vcombine.low %v6841_v7, %v6844_v8 }
 0x68c   : > { %v5106_v16 = vpop.eup %5105  ;;  %v1454_v31 = vpop.xlane.xlu1 %1453  ;;  %4512 = vmatmul.mubr.msk.bf16.vlgmr.msra.gmra.mrb[20].mxu0 %vm1445_vm3, %v1627_v19  ;;  %v1621_v37 = vmul.f32 %v5104_v17, %v6930_v33  ;;  %v1944_v33 = vcombine.low %v6852_v13, %v6855_v14  ;;  %v1960_v61 = vpack.c.bf16 %v4299_v5, %v4298_v3  ;;  %v6043_v12 = vmov 0  }
 0x68d   : > { %5111 = vpow2.f32 %v1512_v30  ;;  %v1496_v9 = vsub.f32 %v6890_v20, %v1454_v31  ;;  %4530 = vmatpush3.bf16.msra.mxu0 %v5057_v63  ;;  %v1617_v40 = vmul.f32 %v5106_v16, %v6923_v29  ;;  %4985 = vset.pattern.permute.xlu0 %v6043_v12 }
 0x68e   : > { %v5108_v34 = vpop.eup %5107  ;;  %4531 = vmatprep.subr.bf16.mxu0 %v5058_v21  ;;  %v1629_v44 = vpack.c.bf16 %v1621_v37, %v1619_v36  ;;  %v1958_v53 = vpack.c.bf16 %v1944_v33, %v1943_v32  ;;  %4974 = vset.pattern.permute.xlu1 %v6043_v12 }
 0x68f   : > { %v1514_v38 = vmul.f32 1.442695, %v1496_v9  ;;  %v1615_v39 = vmul.f32 %v5108_v34, %v6934_v35 }
 0x690   : > { %v1457_v41 = vpop.xlane.xlu1 %1456 }
 0x691   : > { %5113 = vpow2.f32 %v1514_v38  ;;  %v1497_v20 = vsub.f32 %v6894_v22, %v1457_v41  ;;  %v1628_v42 = vpack.c.bf16 %v1617_v40, %v1615_v39  ;;  %4532 = vmatpush3.bf16.msra.mxu0 %v5058_v21 }
 0x693   : > { %v6974_v45 = vpop.eup %5109  ;;  %v1516_v46 = vmul.f32 1.442695, %v1497_v20  ;;  %4515 = vmatprep.mubr.msk.bf16.mxu0 %vm1445_vm3, %v1628_v42 }
 0x694   : > { %v1460_v29 = vpop.xlane.xlu1 %1459  ;;  %4516 = vmatmul.mubr.msk.bf16.gmra.mrb[24].mxu0 %vm1445_vm3, %v1629_v44  ;;  %v1542_v22 = vsel %vm1445_vm3, %v6974_v45, 0.0 }
 0x695   : > { %5115 = vpow2.f32 %v1516_v46  ;;  %v1498_v35 = vsub.f32 %v6900_v25, %v1460_v29  ;;  %1543 = vadd.xlane.f32.xlu1 %v1542_v22  ;;  %4533 = vmatprep.mubr.msk.bf16.mxu0 %vm1083_vm0, %v1957_v43  ;;  %v1959_v25 = vpack.c.bf16 %v4297_v48, %v4296_v47 }
 0x697   : > { %v5112_v49 = vpop.eup %5111  ;;  %v1518_v50 = vmul.f32 1.442695, %v1498_v35 }
 0x698   : > { %v1463_v51 = vpop.xlane.xlu1 %1462  ;;  %v1545_v59 = vsel %vm1445_vm3, %v5112_v49, 0.0 }
 0x699   : > { %5117 = vpow2.f32 %v1518_v50  ;;  %v1499_v54 = vsub.f32 %v6904_v27, %v1463_v51  ;;  %1546 = vadd.xlane.f32.xlu1 %v1545_v59  ;;  %v6044_v51 = vmov 1966171168  }
 0x69a   : > { %v2065_v59 = vunpack.c.l.s4 %v6044_v51 }
 0x69b   : > { %v6992_v55 = vpop.eup %5113  ;;  %v1520_v56 = vmul.f32 1.442695, %v1499_v54 }
 0x69c   : > { %v1469_v57 = vpop.xlane.xlu1 %1468  ;;  %4534 = vmatmul.mubr.msk.bf16.vlgmr.msra.gmra.mrb[28].mxu0 %vm1083_vm0, %v1958_v53  ;;  %v1548_v2 = vsel %vm1445_vm3, %v6992_v55, 0.0  ;;  %v2067_v53 = vlaneseq }
 0x69d   : > { %5119 = vpow2.f32 %v1520_v56  ;;  %v1501_v6 = vsub.f32 %v6902_v26, %v1469_v57  ;;  %1549 = vadd.xlane.f32.xlu1 %v1548_v2  ;;  %4537 = vmatprep.mubr.msk.bf16.mxu0 %vm1083_vm0, %v1959_v25  ;;  %v2066_v2 = vunpack.c.0.s8 %v2065_v59 }
 0x69e   : > { %v7021_v3 = vshrl.u32 %v2067_v53, 7 }
 0x69f   : > { %v5116_v27 = vpop.eup %5115  ;;  %v1524_v58 = vmul.f32 1.442695, %v1501_v6  ;;  %v4306_v6 = vld.sshfl [vmem:[#allocation17] sm:$0x11 pattern:$0x75316420] }
 0x6a0   : > { %v1551_v60 = vsel %vm1445_vm3, %v5116_v27, 0.0 }
 0x6a1   : > { %5121 = vpow2.f32 %v1524_v58  ;;  %1552 = vadd.xlane.f32.xlu1 %v1551_v60  ;;  %v7024_v58 = vsub.s32 %v2066_v2, %v7021_v3 }
 0x6a3   : > { %v5118_v62 = vpop.eup %5117 }
 0x6a4   : > { %4538 = vmatmul.mubr.msk.bf16.gmra.mrb[32].mxu0 %vm1083_vm0, %v1960_v61  ;;  %v1554_v7 = vsel %vm1445_vm3, %v5118_v62, 0.0 }
 0x6a5   : > { %1555 = vadd.xlane.f32.xlu1 %v1554_v7 }
 0x6a7   : > { %v5120_v8 = vpop.eup %5119 }
 0x6a8   : > { %v1557_v13 = vsel %vm1445_vm3, %v5120_v8, 0.0 }
 0x6a9   : > { %1558 = vadd.xlane.f32.xlu1 %v1557_v13 }
 0x6ab   : > { %v5122_v14 = vpop.eup %5121 }
 0x6ac   : > { %v1563_v26 = vsel %vm1445_vm3, %v5122_v14, 0.0 }
 0x6ad   : > { %1564 = vadd.xlane.f32.xlu1 %v1563_v26 }
 0x6b8   : > { %v1466_v63 = vpop.xlane.xlu0 %1465 }
 0x6b9   : > { %v1500_v0 = vsub.f32 %v6898_v24, %v1466_v63  ;;  %v7038_v63 = vsub.s32 0, %v7021_v3 }
 0x6bb   : > { %v1522_v1 = vmul.f32 1.442695, %v1500_v0 }
 0x6bd   : > { %5123 = vpow2.f32 %v1522_v1 }
 0x6be   : > { %2150 = vrot.lane.b32.xlu1 %v4308_v4, %s6042_s8  ;;  %v2070_v4 = vrot.slane %v4306_v6, %v7024_v58  ;;  %s5895_s8 = scalar_lea.vmem %s7707_s16, 1024 }
 0x6bf   : > { %p5896_p6 = scmp.ne.s32.totalorder %s7707_s16, %s5895_s8 }
 0x6c1   : > { %p5897_p5 = pnand %p5896_p6, %p7924_p10 }
 0x6c3   : > { %p5898_p9 = pneg %p5897_p5 }
 0x6c7   : > { %v5124_v10 = vpop.eup %5123 }
 0x6c8   : > { %v1560_v11 = vsel %vm1445_vm3, %v5124_v10, 0.0 }
 0x6c9   : > { %1561 = vadd.xlane.f32.xlu0 %v1560_v11 }
 0x6df   : > { %1631 = vrot.lane.b32.xlu0 %v6868_v52, %s6041_s7 }
 0x722   : > { %v1544_v15 = vpop.xlane.xlu1 %1543 }
 0x723   : > { %5125 = vrcp.f32 %v1544_v15 }
 0x726   : > { %v1547_v18 = vpop.xlane.xlu1 %1546 }
 0x727   : > { %5127 = vrcp.f32 %v1547_v18 }
 0x72a   : > { %v1550_v16 = vpop.xlane.xlu1 %1549 }
 0x72d   : > { %v5126_v24 = vpop.eup %5125 }
 0x72e   : > { %v1591_v21 = vmul.f32 %v5126_v24, %v6974_v45  ;;  %v1553_v31 = vpop.xlane.xlu1 %1552 }
 0x72f   : > { %5129 = vrcp.f32 %v1553_v31 }
 0x731   : > { %v5128_v19 = vpop.eup %5127 }
 0x732   : > { %v1593_v17 = vmul.f32 %v5128_v19, %v5112_v49  ;;  %v1556_v9 = vpop.xlane.xlu1 %1555  ;;  %v2081_v19 = vrot.slane %v2070_v4, %v7038_v63 }
 0x734   : > { %v1622_v30 = vpack.c.bf16 %v1593_v17, %v1591_v21 }
 0x736   : > { %4501 = vmatprep.mubr.msk.bf16.mxu1 %vm1445_vm3, %v1622_v30  ;;  %v1559_v23 = vpop.xlane.xlu1 %1558 }
 0x737   : > { %5131 = vrcp.f32 %v1559_v23 }
 0x738   : > { %5133 = vrcp.f32 %v1550_v16 }
 0x739   : > { %5135 = vrcp.f32 %v1556_v9  ;;  %v5130_v28 = vpop.eup %5129 }
 0x73a   : > { %v1565_v52 = vpop.xlane.xlu1 %1564  ;;  %v1597_v39 = vmul.f32 %v5130_v28, %v5116_v27  ;;  %v2063_v27 = vcombine.high %v4306_v6, %v4306_v6 }
 0x73b   : > { %5137 = vrcp.f32 %v1565_v52 }
 0x73c   : > { %v2077_v26 = vrot.slane %v2063_v27, %v7024_v58 }
 0x73e   : > { %v2151_v61 = vpop.permute.xlu1 %2150  ;;  %v2085_v18 = vrot.slane %v2077_v26, %v7038_v63 }
 0x741   : > { %v5132_v36 = vpop.eup %5131 }
 0x742   : > { %v5134_v37 = vpop.eup %5133  ;;  %v1601_v41 = vmul.f32 %v5132_v36, %v5120_v8 }
 0x743   : > { %v5136_v38 = vpop.eup %5135  ;;  %v1595_v20 = vmul.f32 %v5134_v37, %v6992_v55  ;;  %v5065_v37 = vld [vmem:[#allocation13] sm:$0xff]  }
 0x744   : > { %v1599_v42 = vmul.f32 %v5136_v38, %v5118_v62 }
 0x745   : > { %v1623_v43 = vpack.c.bf16 %v1597_v39, %v1595_v20  ;;  %v5138_v45 = vpop.eup %5137 }
 0x746   : > { %v1624_v44 = vpack.c.bf16 %v1601_v41, %v1599_v42  ;;  %v1605_v48 = vmul.f32 %v5138_v45, %v5122_v14  ;;  %v4307_v45 = vld.sshfl [vmem:[#allocation19] sm:$0x11 pattern:$0x75316420] }
 0x756   : > { %v1562_v34 = vpop.xlane.xlu0 %1561 }
 0x757   : > { %5139 = vrcp.f32 %v1562_v34 }
 0x75a   : > { %v1632_v40 = vpop.permute.xlu0 %1631 }
 0x75b   : > { %4499 = vmatprep.subr.bf16.mxu1 %v1632_v40 }
 0x75c   : > { %4500 = vmatpush3.bf16.msra.mxu1 %v1632_v40 }
 0x75d   : > { %4519 = vmatprep.subr.bf16.mxu1 %v5065_v37 }
 0x75f   : > { %4502 = vmatmul.mubr.msk.bf16.vlgmr.msra.gmra.mrb[8].mxu1 %vm1445_vm3, %v1623_v43  ;;  %v4513_v46 = vpop.f32.mrb[20].mxu0 }
 0x760   : > { %4505 = vmatprep.mubr.msk.bf16.mxu1 %vm1445_vm3, %v1624_v44  ;;  %v7017_v32 = vpop.f32.mrb[21].mxu0  ;;  %4520 = vmatpush3.bf16.msra.mxu1 %v5065_v37 }
 0x761   : > { %v5140_v33 = vpop.eup %5139  ;;  %v4514_v29 = vpop.f32.mrb[22].mxu0 }
 0x762   : > { %v4996_v22 = vpack.i.bf16 %v4514_v29, %v4513_v46  ;;  %v1764_v35 = vpop.f32.mrb[23].mxu0  ;;  %v1603_v47 = vmul.f32 %v5140_v33, %v5124_v10  ;;  %v2111_v46 = vcombine.high %v4307_v45, %v4307_v45  ;;  %v2118_v33 = vrot.slane %v4307_v45, %v7024_v58 }
 0x763   : > { %v4991_v49 = vpack.i.bf16 %v1764_v35, %v7017_v32 }
 0x764   : > { %v1625_v50 = vpack.c.bf16 %v1605_v48, %v1603_v47  ;;  %v2125_v32 = vrot.slane %v2111_v46, %v7024_v58  ;;  %v2129_v35 = vrot.slane %v2118_v33, %v7038_v63 }
 0x766   : > { %v2133_v29 = vrot.slane %v2125_v32, %v7038_v63 }
 0x767   : > { %4506 = vmatmul.mubr.msk.bf16.gmra.mrb[12].mxu1 %vm1445_vm3, %v1625_v50  ;;  %v4517_v54 = vpop.f32.mrb[24].mxu0 }
 0x768   : > { %v1777_v25 = vpop.f32.mrb[25].mxu0 }
 0x769   : > { %v4518_v55 = vpop.f32.mrb[26].mxu0 }
 0x76a   : > { %v5006_v56 = vpack.i.bf16 %v4518_v55, %v4517_v54  ;;  %v1780_v57 = vpop.f32.mrb[27].mxu0 }
 0x76b   : > { %v5001_v5 = vpack.i.bf16 %v1780_v57, %v1777_v25 }
 0x76f   : > { %v7026_v60 = vpop.f32.mrb[28].mxu0 }
 0x770   : > { %v7028_v62 = vpop.f32.mrb[29].mxu0  ;;  %v2155_v13 = vadd.f32 %v7026_v60, %v2151_v61 }
 0x771   : > { %v7030_v7 = vpop.f32.mrb[30].mxu0  ;;  %v2153_v0 = vadd.f32 %v2151_v61, %v7028_v62 }
 0x772   : > { %v7032_v8 = vpop.f32.mrb[31].mxu0  ;;  %v2156_v14 = vadd.f32 %v7030_v7, %v2151_v61 }
 0x773   : > { %v2154_v1 = vadd.f32 %v2151_v61, %v7032_v8 }
 0x774   : > { %v4975_v10 = vpack.i.bf16 %v2156_v14, %v2155_v13  ;;  %v7043_v11 = vpack.c.bf16 %v2156_v14, %v2155_v13 }
 0x775   : > { %v4969_v12 = vpack.i.bf16 %v2154_v1, %v2153_v0  ;;  %v7045_v15 = vpack.c.bf16 %v2154_v1, %v2153_v0 }
 0x776   : > { %4976 = vrot.lane.b32.xlu0 %v4975_v10, %s6040_s29 }
 0x777   : > { %v4539_v24 = vpop.f32.mrb[32].mxu0  ;;  %4970 = vrot.lane.b32.xlu1 %v4969_v12, %s6040_s29 }
 0x778   : > { %v2039_v21 = vpop.f32.mrb[33].mxu0  ;;  %v2159_v30 = vadd.f32 %v4539_v24, %v2151_v61 }
 0x779   : > { %v4540_v17 = vpop.f32.mrb[34].mxu0  ;;  %v2157_v9 = vadd.f32 %v2151_v61, %v2039_v21 }
 0x77a   : > { %v2160_v16 = vadd.f32 %v4540_v17, %v2151_v61  ;;  %v2042_v31 = vpop.f32.mrb[35].mxu0  ;;  %2091 = vperm.xlu0 %4985, %v2085_v18  }
 0x77b   : > { %v2158_v23 = vadd.f32 %v2151_v61, %v2042_v31  ;;  %2087 = vperm.xlu1 %4974, %v2081_v19  }
 0x77c   : > { %v4986_v52 = vpack.i.bf16 %v2160_v16, %v2159_v30  ;;  %v7051_v28 = vpack.c.bf16 %v2160_v16, %v2159_v30 }
 0x77d   : > { %v4980_v34 = vpack.i.bf16 %v2158_v23, %v2157_v9  ;;  %v7053_v36 = vpack.c.bf16 %v2158_v23, %v2157_v9 }
 0x77e   : > { %4997 = vrot.lane.b32.xlu0 %v4996_v22, %s6045_s23 }
 0x77f   : > { %4981 = vrot.lane.b32.xlu1 %v4980_v34, %s6040_s29 }
 0x782   : > { %5002 = vrot.lane.b32.xlu0 %v5001_v5, %s6045_s23 }
 0x783   : > { %4987 = vrot.lane.b32.xlu1 %v4986_v52, %s6040_s29 }
 0x786   : > { %2248 = vrot.lane.b32.xlu0 %v7043_v11, %s6041_s7 }
 0x787   : > { %4992 = vrot.lane.b32.xlu1 %v4991_v49, %s6045_s23 }
 0x78a   : > { %2315 = vrot.lane.b32.xlu0 %v7051_v28, %s6041_s7 }
 0x78b   : > { %2246 = vrot.lane.b32.xlu1 %v7045_v15, %s6041_s7 }
 0x78f   : > { %5007 = vrot.lane.b32.xlu1 %v5006_v56, %s6045_s23 }
 0x793   : > { %2313 = vrot.lane.b32.xlu1 %v7053_v36, %s6041_s7 }
 0x7e8   : > { %v4977_v38 = vpop.permute.xlu0 %4976 }
 0x7e9   : > { %v4971_v39 = vpop.permute.xlu1 %4970  ;;  %v4979_v40 = vunpack.i.h.bf16 %v4977_v38  ;;  %v4978_v41 = vunpack.i.l.bf16 %v4977_v38 }
 0x7ea   : > { %v4973_v20 = vunpack.i.h.bf16 %v4971_v39  ;;  %v4972_v42 = vunpack.i.l.bf16 %v4971_v39 }
 0x7eb   : > { %v7069_v43 = vpack.c.bf16 %v4979_v40, %v4978_v41 }
 0x7ec   : > { %v7071_v44 = vpack.c.bf16 %v4973_v20, %v4972_v42 }
 0x7ed   : > { %2382 = vrot.lane.b32.xlu0 %v7069_v43, %s6041_s7 }
 0x7ee   : > { %2380 = vrot.lane.b32.xlu1 %v7071_v44, %s6041_s7 }
 0x7f9   : > { %v2092_v22 = vpop.permute.xlu0 %2091 }
 0x7fa   : > { %v2098_v47 = vmul.f32 %v2092_v22, %v2039_v21  ;;  %v2099_v48 = vmul.f32 %v2092_v22, %v2042_v31  ;;  %v2100_v49 = vmul.f32 %v4539_v24, %v2092_v22  ;;  %v2101_v50 = vmul.f32 %v4540_v17, %v2092_v22  ;;  %v2088_v51 = vpop.permute.xlu1 %2087 }
 0x7fb   : > { %v2094_v59 = vmul.f32 %v2088_v51, %v7028_v62  ;;  %v2095_v53 = vmul.f32 %v2088_v51, %v7032_v8  ;;  %v2096_v54 = vmul.f32 %v7026_v60, %v2088_v51  ;;  %v2097_v25 = vmul.f32 %v7030_v7, %v2088_v51 }
 0x7fc   : > { %v2140_v55 = vadd.f32 %v2133_v29, %v2098_v47  ;;  %v2141_v56 = vadd.f32 %v2133_v29, %v2099_v48  ;;  %v2142_v57 = vadd.f32 %v2133_v29, %v2100_v49  ;;  %v2143_v2 = vadd.f32 %v2133_v29, %v2101_v50 }
 0x7fd   : > { %v7085_v5 = vadd.f32 %v2129_v35, %v2094_v59  ;;  %v7087_v6 = vadd.f32 %v2129_v35, %v2095_v53  ;;  %v7089_v27 = vadd.f32 %v2129_v35, %v2096_v54  ;;  %v7091_v58 = vadd.f32 %v2129_v35, %v2097_v25  ;;  %v4998_v12 = vpop.permute.xlu0 %4997 }
 0x7fe   : > { %v4982_v61 = vpop.permute.xlu1 %4981  ;;  %v2230_v62 = vpack.c.bf16 %v2141_v56, %v2140_v55  ;;  %v5026_v13 = vpack.i.bf16 %v2143_v2, %v2142_v57  ;;  %v2231_v0 = vpack.c.bf16 %v2143_v2, %v2142_v57  ;;  %v5021_v1 = vpack.i.bf16 %v2141_v56, %v2140_v55 }
 0x7ff   : > { %v4984_v8 = vunpack.i.h.bf16 %v4982_v61  ;;  %v4983_v14 = vunpack.i.l.bf16 %v4982_v61  ;;  %v5011_v60 = vpack.i.bf16 %v7087_v6, %v7085_v5  ;;  %v5016_v7 = vpack.i.bf16 %v7091_v58, %v7089_v27 }
 0x800   : > { %4553 = vmatprep.mubr.msk.bf16.mxu0 %vm1284_vm2, %v2230_v62  ;;  %v2229_v26 = vpack.c.bf16 %v7091_v58, %v7089_v27  ;;  %v2228_v4 = vpack.c.bf16 %v7087_v6, %v7085_v5  ;;  %v5000_v39 = vunpack.i.h.bf16 %v4998_v12  ;;  %v4999_v40 = vunpack.i.l.bf16 %v4998_v12 }
 0x801   : > { %v7102_v10 = vpack.c.bf16 %v4984_v8, %v4983_v14  ;;  %5012 = vrot.lane.b32.xlu0 %v5011_v60, %s6040_s29  ;;  %v5003_v30 = vpop.permute.xlu0 %5002 }
 0x802   : > { %v4988_v18 = vpop.permute.xlu1 %4987  ;;  %v5005_v59 = vunpack.i.h.bf16 %v5003_v30  ;;  %v5004_v53 = vunpack.i.l.bf16 %v5003_v30 }
 0x803   : > { %v4990_v24 = vunpack.i.h.bf16 %v4988_v18  ;;  %v4989_v19 = vunpack.i.l.bf16 %v4988_v18  ;;  %2447 = vrot.lane.b32.xlu1 %v7102_v10, %s6041_s7 }
 0x805   : > { %v7107_v21 = vpack.c.bf16 %v4990_v24, %v4989_v19  ;;  %v2249_v31 = vpop.permute.xlu0 %2248 }
 0x806   : > { %v4993_v17 = vpop.permute.xlu1 %4992 }
 0x807   : > { %2449 = vrot.lane.b32.xlu0 %v7107_v21, %s6041_s7  ;;  %5017 = vrot.lane.b32.xlu1 %v5016_v7, %s6040_s29  ;;  %v4995_v20 = vunpack.i.h.bf16 %v4993_v17 }
 0x809   : > { %v2316_v34 = vpop.permute.xlu0 %2315 }
 0x80a   : > { %v2247_v16 = vpop.permute.xlu1 %2246  ;;  %v2327_v37 = vsel %vm1284_vm2, %v2316_v34, 0 }
 0x80b   : > { %5027 = vrot.lane.b32.xlu0 %v5026_v13, %s6040_s29  ;;  %5022 = vrot.lane.b32.xlu1 %v5021_v1, %s6040_s29  ;;  %v2257_v47 = vsel %vm1284_vm2, %v2247_v16, 0  ;;  %v2260_v13 = vsel %vm1284_vm2, %v2249_v31, 0  ;;  %s7922_s29 = sld [smem:[#allocation85_spill]] }
 0x80c   : > { %4653 = vmatprep.subr.msk.bf16.mxu1 %vm1284_vm2, %v2247_v16 }
 0x80e   : > { %v5008_v9 = vpop.permute.xlu1 %5007 }
 0x80f   : > { %2696 = vrot.lane.b32.xlu1 %v7045_v15, %s6046_s13  ;;  %v4994_v15 = vunpack.i.l.bf16 %v4993_v17  ;;  %v5010_v49 = vunpack.i.h.bf16 %v5008_v9  ;;  %v5009_v50 = vunpack.i.l.bf16 %v5008_v9 }
 0x811   : > { %s7703_s7 = scalar_lea.hbm %s7922_s29, %s4363_s9 }
 0x812   : > { %v2314_v23 = vpop.permute.xlu1 %2313 }
 0x813   : > { %v2324_v52 = vsel %vm1284_vm2, %v2314_v23, 0  ;;  %4655 = vmatprep.subr.msk.bf16.mxu0 %vm1284_vm2, %v2314_v23 }
 0x814   : > { %4550 = vmatpush3.bf16.xpose.msra.mxu0 %v2324_v52 }
 0x815   : > { %4656 = vmatprep.subr.msk.bf16.mxu0 %vm1284_vm2, %v2316_v34 }
 0x81c   : > { %4552 = vmatpush3.bf16.xpose.msra.mxu0 %v2327_v37 }
 0x823   : > { %4554 = vmatmul.mubr.msk.bf16.vlgmr.msra.gmra.mrb[36].mxu0 %vm1284_vm2, %v2231_v0 }
 0x832   : > { %v4503_v38 = vpop.f32.mrb[8].mxu1 }
 0x833   : > { %v1680_v41 = vpop.f32.mrb[9].mxu1  ;;  %v1826_v45 = vsel %vm1284_vm2, %v4503_v38, %v4999_v40 }
 0x834   : > { %v4504_v42 = vpop.f32.mrb[10].mxu1  ;;  %v1824_v33 = vsel %vm1284_vm2, %v1680_v41, %v4994_v15 }
 0x835   : > { %v1827_v46 = vsel %vm1284_vm2, %v4504_v42, %v5000_v39  ;;  %v1683_v32 = vpop.f32.mrb[11].mxu1 }
 0x836   : > { %v1833_v29 = vpack.c.bf16 %v1827_v46, %v1826_v45  ;;  %v1825_v22 = vsel %vm1284_vm2, %v1683_v32, %v4995_v20 }
 0x837   : > { %v1832_v35 = vpack.c.bf16 %v1825_v22, %v1824_v33 }
 0x839   : > { %4521 = vmatprep.mubr.msk.bf16.mxu1 %vm1445_vm3, %v1832_v35 }
 0x83a   : > { %v4507_v48 = vpop.f32.mrb[12].mxu1  ;;  %4522 = vmatmul.mubr.msk.bf16.vlgmr.msra.gmra.mrb[16].mxu1 %vm1445_vm3, %v1833_v29 }
 0x83b   : > { %4542 = vmatpush3.bf16.xpose.msra.mxu1 %v2257_v47  ;;  %v1696_v51 = vpop.f32.mrb[13].mxu1  ;;  %v1830_v25 = vsel %vm1284_vm2, %v4507_v48, %v5009_v50 }
 0x83c   : > { %4654 = vmatprep.subr.msk.bf16.mxu1 %vm1284_vm2, %v2249_v31  ;;  %v4508_v54 = vpop.f32.mrb[14].mxu1  ;;  %v1828_v57 = vsel %vm1284_vm2, %v1696_v51, %v5004_v53 }
 0x83d   : > { %v1831_v55 = vsel %vm1284_vm2, %v4508_v54, %v5010_v49  ;;  %v1699_v56 = vpop.f32.mrb[15].mxu1 }
 0x83e   : > { %v1835_v2 = vpack.c.bf16 %v1831_v55, %v1830_v25  ;;  %v1829_v61 = vsel %vm1284_vm2, %v1699_v56, %v5005_v59 }
 0x83f   : > { %v1834_v62 = vpack.c.bf16 %v1829_v61, %v1828_v57 }
 0x841   : > { %4525 = vmatprep.mubr.msk.bf16.mxu1 %vm1445_vm3, %v1834_v62 }
 0x842   : > { %4526 = vmatmul.mubr.msk.bf16.gmra.mrb[20].mxu1 %vm1445_vm3, %v1835_v2 }
 0x843   : > { %4544 = vmatpush3.bf16.xpose.msra.mxu1 %v2260_v13  ;;  %4545 = vmatprep.mubr.msk.bf16.mxu1 %vm1284_vm2, %v2228_v4 }
 0x84a   : > { %4546 = vmatmul.mubr.msk.bf16.vlgmr.msra.gmra.mrb[24].mxu1 %vm1284_vm2, %v2229_v26 }
 0x85f   : > { %v2383_v60 = vpop.permute.xlu0 %2382 }
 0x860   : > { %v2381_v8 = vpop.permute.xlu1 %2380  ;;  %v2394_v7 = vsel %vm1284_vm2, %v2383_v60, 0 }
 0x861   : > { %v2391_v14 = vsel %vm1284_vm2, %v2381_v8, 0  ;;  %4657 = vmatprep.subr.msk.bf16.mxu1 %vm1284_vm2, %v2381_v8 }
 0x862   : > { %4558 = vmatpush3.bf16.xpose.msra.mxu1 %v2391_v14 }
 0x863   : > { %4658 = vmatprep.subr.msk.bf16.mxu1 %vm1284_vm2, %v2383_v60 }
 0x86a   : > { %4560 = vmatpush3.bf16.xpose.msra.mxu1 %v2394_v7 }
 0x873   : > { %v5013_v5 = vpop.permute.xlu0 %5012 }
 0x874   : > { %v5015_v6 = vunpack.i.h.bf16 %v5013_v5  ;;  %v5014_v0 = vunpack.i.l.bf16 %v5013_v5 }
 0x875   : > { %v2448_v1 = vpop.permute.xlu1 %2447 }
 0x876   : > { %v2232_v4 = vpack.c.bf16 %v5015_v6, %v5014_v0  ;;  %v2458_v27 = vsel %vm1284_vm2, %v2448_v1, 0  ;;  %4659 = vmatprep.subr.msk.bf16.mxu0 %vm1284_vm2, %v2448_v1 }
 0x877   : > { %4566 = vmatpush3.bf16.xpose.msra.mxu0 %v2458_v27 }
 0x878   : > { %4561 = vmatprep.mubr.msk.bf16.mxu1 %vm1284_vm2, %v2232_v4 }
 0x879   : > { %v2450_v58 = vpop.permute.xlu0 %2449  ;;  %v5018_v26 = vpop.permute.xlu1 %5017 }
 0x87a   : > { %v5020_v12 = vunpack.i.h.bf16 %v5018_v26  ;;  %v5019_v18 = vunpack.i.l.bf16 %v5018_v26  ;;  %4660 = vmatprep.subr.msk.bf16.mxu0 %vm1284_vm2, %v2450_v58  ;;  %v2461_v30 = vsel %vm1284_vm2, %v2450_v58, 0 }
 0x87c   : > { %v2233_v24 = vpack.c.bf16 %v5020_v12, %v5019_v18 }
 0x87d   : > { %v5028_v19 = vpop.permute.xlu0 %5027  ;;  %v5023_v17 = vpop.permute.xlu1 %5022 }
 0x87e   : > { %v5025_v16 = vunpack.i.h.bf16 %v5023_v17  ;;  %v5024_v31 = vunpack.i.l.bf16 %v5023_v17  ;;  %4562 = vmatmul.mubr.msk.bf16.vlgmr.msra.gmra.mrb[28].mxu1 %vm1284_vm2, %v2233_v24  ;;  %v5030_v9 = vunpack.i.h.bf16 %v5028_v19  ;;  %v5029_v23 = vunpack.i.l.bf16 %v5028_v19 }
 0x87f   : > { %4568 = vmatpush3.bf16.xpose.msra.mxu0 %v2461_v30 }
 0x880   : > { %v2234_v52 = vpack.c.bf16 %v5025_v16, %v5024_v31  ;;  %v2235_v37 = vpack.c.bf16 %v5030_v9, %v5029_v23 }
 0x881   : > { %v2697_v34 = vpop.permute.xlu1 %2696 }
 0x882   : > { %4569 = vmatprep.mubr.msk.bf16.mxu0 %vm1284_vm2, %v2234_v52  ;;  %4573 = vmatprep.subr.bf16.mxu1 %v2697_v34 }
 0x883   : > { %4574 = vmatpush3.bf16.msra.mxu1 %v2697_v34 }
 0x886   : > { %4570 = vmatmul.mubr.msk.bf16.vlgmr.msra.gmra.mrb[40].mxu0 %vm1284_vm2, %v2235_v37 }
 0x8f6   : > { %v7157_v38 = vpop.f32.mrb[36].mxu0 }
 0x8f7   : > { %v7159_v39 = vpop.f32.mrb[37].mxu0  ;;  %v2530_v59 = vsel %vm1083_vm0, %v7157_v38, -inf }
 0x8f8   : > { %v7161_v40 = vpop.f32.mrb[38].mxu0  ;;  %v2524_v54 = vsel %vm1083_vm0, %v7159_v39, -inf }
 0x8f9   : > { %v7163_v41 = vpop.f32.mrb[39].mxu0  ;;  %v2533_v25 = vsel %vm1083_vm0, %v7161_v40, -inf }
 0x8fa   : > { %v2527_v55 = vsel %vm1083_vm0, %v7163_v41, -inf }
 0x90d   : > { %v7165_v20 = vpop.f32.mrb[16].mxu1 }
 0x90e   : > { %v7167_v15 = vpop.f32.mrb[17].mxu1 }
 0x90f   : > { %v7169_v42 = vpop.f32.mrb[18].mxu1 }
 0x910   : > { %v7171_v45 = vpop.f32.mrb[19].mxu1 }
 0x915   : > { %v7173_v46 = vpop.f32.mrb[20].mxu1 }
 0x916   : > { %v7175_v32 = vpop.f32.mrb[21].mxu1 }
 0x917   : > { %v7177_v33 = vpop.f32.mrb[22].mxu1 }
 0x918   : > { %v7179_v29 = vpop.f32.mrb[23].mxu1 }
 0x91d   : > { %v4547_v22 = vpop.f32.mrb[24].mxu1 }
 0x91e   : > { %v2296_v35 = vpop.f32.mrb[25].mxu1  ;;  %v2518_v47 = vsel %vm1083_vm0, %v4547_v22, -inf }
 0x91f   : > { %2519 = vmax.xlane.f32.xlu0 %v2518_v47  ;;  %v4548_v48 = vpop.f32.mrb[26].mxu1  ;;  %v2512_v49 = vsel %vm1083_vm0, %v2296_v35, -inf }
 0x920   : > { %2513 = vmax.xlane.f32.xlu1 %v2512_v49  ;;  %v2299_v50 = vpop.f32.mrb[27].mxu1  ;;  %v2521_v51 = vsel %vm1083_vm0, %v4548_v48, -inf }
 0x921   : > { %v2515_v53 = vsel %vm1083_vm0, %v2299_v50, -inf }
 0x923   : > { %2522 = vmax.xlane.f32.xlu0 %v2521_v51 }
 0x924   : > { %2531 = vmax.xlane.f32.xlu1 %v2530_v59 }
 0x927   : > { %2516 = vmax.xlane.f32.xlu0 %v2515_v53 }
 0x928   : > { %2525 = vmax.xlane.f32.xlu1 %v2524_v54 }
 0x92b   : > { %2534 = vmax.xlane.f32.xlu0 %v2533_v25 }
 0x92f   : > { %2528 = vmax.xlane.f32.xlu0 %v2527_v55 }
 0x951   : > { %v7193_v56 = vpop.f32.mrb[28].mxu1 }
 0x952   : > { %v7195_v57 = vpop.f32.mrb[29].mxu1  ;;  %v2542_v2 = vsel %vm1083_vm0, %v7193_v56, -inf }
 0x953   : > { %2543 = vmax.xlane.f32.xlu1 %v2542_v2  ;;  %v7199_v61 = vpop.f32.mrb[30].mxu1  ;;  %v2536_v8 = vsel %vm1083_vm0, %v7195_v57, -inf }
 0x954   : > { %v7201_v62 = vpop.f32.mrb[31].mxu1  ;;  %v2545_v13 = vsel %vm1083_vm0, %v7199_v61, -inf }
 0x955   : > { %2546 = vmax.xlane.f32.xlu0 %v2545_v13  ;;  %v2539_v14 = vsel %vm1083_vm0, %v7201_v62, -inf }
 0x957   : > { %2537 = vmax.xlane.f32.xlu1 %v2536_v8 }
 0x959   : > { %v7209_v60 = vpop.f32.mrb[40].mxu0  ;;  %2540 = vmax.xlane.f32.xlu0 %v2539_v14 }
 0x95a   : > { %v7211_v7 = vpop.f32.mrb[41].mxu0  ;;  %v2554_v5 = vsel %vm1083_vm0, %v7209_v60, -inf }
 0x95b   : > { %v7215_v6 = vpop.f32.mrb[42].mxu0  ;;  %2555 = vmax.xlane.f32.xlu1 %v2554_v5  ;;  %v2548_v4 = vsel %vm1083_vm0, %v7211_v7, -inf }
 0x95c   : > { %v7217_v0 = vpop.f32.mrb[43].mxu0  ;;  %v2557_v1 = vsel %vm1083_vm0, %v7215_v6, -inf }
 0x95d   : > { %2558 = vmax.xlane.f32.xlu0 %v2557_v1  ;;  %v2551_v27 = vsel %vm1083_vm0, %v7217_v0, -inf }
 0x95f   : > { %2549 = vmax.xlane.f32.xlu1 %v2548_v4 }
 0x961   : > { %2552 = vmax.xlane.f32.xlu0 %v2551_v27 }
 0x970   : > { %2757 = vrot.lane.b32.xlu1 %v7053_v36, %s6046_s13 }
 0x974   : > { %2818 = vrot.lane.b32.xlu1 %v7071_v44, %s6046_s13 }
 0x977   : > { %2698 = vrot.lane.b32.xlu0 %v7043_v11, %s6046_s13 }
 0x978   : > { %2759 = vrot.lane.b32.xlu1 %v7051_v28, %s6046_s13 }
 0x97b   : > { %2820 = vrot.lane.b32.xlu0 %v7069_v43, %s6046_s13 }
 0x9ac   : > { %v2520_v58 = vpop.xlane.xlu0 %2519 }
 0x9ad   : > { %v2562_v26 = vsub.f32 %v4547_v22, %v2520_v58  ;;  %v2514_v12 = vpop.xlane.xlu1 %2513 }
 0x9ae   : > { %v2560_v18 = vsub.f32 %v2296_v35, %v2514_v12 }
 0x9af   : > { %v2580_v24 = vmul.f32 1.442695, %v2562_v26 }
 0x9b0   : > { %v2576_v19 = vmul.f32 1.442695, %v2560_v18  ;;  %v2523_v17 = vpop.xlane.xlu0 %2522 }
 0x9b1   : > { %5141 = vpow2.f32 %v2580_v24  ;;  %v2563_v36 = vsub.f32 %v4548_v48, %v2523_v17  ;;  %v2532_v30 = vpop.xlane.xlu1 %2531 }
 0x9b2   : > { %v2566_v44 = vsub.f32 %v7157_v38, %v2532_v30  ;;  %5143 = vpow2.f32 %v2576_v19 }
 0x9b3   : > { %v2582_v11 = vmul.f32 1.442695, %v2563_v36 }
 0x9b4   : > { %v2588_v16 = vmul.f32 1.442695, %v2566_v44  ;;  %v2517_v31 = vpop.xlane.xlu0 %2516 }
 0x9b5   : > { %5145 = vpow2.f32 %v2582_v11  ;;  %v2561_v28 = vsub.f32 %v2299_v50, %v2517_v31  ;;  %v2526_v9 = vpop.xlane.xlu1 %2525 }
 0x9b6   : > { %v2564_v43 = vsub.f32 %v7159_v39, %v2526_v9  ;;  %5147 = vpow2.f32 %v2588_v16 }
 0x9b7   : > { %v2578_v23 = vmul.f32 1.442695, %v2561_v28 }
 0x9b8   : > { %v2584_v52 = vmul.f32 1.442695, %v2564_v43  ;;  %v2535_v34 = vpop.xlane.xlu0 %2534 }
 0x9b9   : > { %5149 = vpow2.f32 %v2578_v23  ;;  %v2567_v37 = vsub.f32 %v7161_v40, %v2535_v34 }
 0x9ba   : > { %5151 = vpow2.f32 %v2584_v52 }
 0x9bb   : > { %v7238_v22 = vpop.eup %5141  ;;  %v2590_v38 = vmul.f32 1.442695, %v2567_v37 }
 0x9bc   : > { %v2529_v35 = vpop.xlane.xlu0 %2528  ;;  %v2614_v47 = vsel %vm1083_vm0, %v7238_v22, 0.0  ;;  %v7242_v48 = vpop.eup %5143 }
 0x9bd   : > { %5153 = vpow2.f32 %v2590_v38  ;;  %v2565_v39 = vsub.f32 %v7163_v41, %v2529_v35  ;;  %2615 = vadd.xlane.f32.xlu1 %v2614_v47  ;;  %v2608_v40 = vsel %vm1083_vm0, %v7242_v48, 0.0 }
 0x9bf   : > { %v7245_v49 = vpop.eup %5145  ;;  %v2586_v50 = vmul.f32 1.442695, %v2565_v39 }
 0x9c0   : > { %v2617_v51 = vsel %vm1083_vm0, %v7245_v49, 0.0  ;;  %v7251_v59 = vpop.eup %5147 }
 0x9c1   : > { %5155 = vpow2.f32 %v2586_v50  ;;  %2609 = vadd.xlane.f32.xlu1 %v2608_v40  ;;  %2618 = vadd.xlane.f32.xlu0 %v2617_v51  ;;  %v2626_v41 = vsel %vm1083_vm0, %v7251_v59, 0.0 }
 0x9c3   : > { %v7253_v53 = vpop.eup %5149 }
 0x9c4   : > { %v2611_v54 = vsel %vm1083_vm0, %v7253_v53, 0.0  ;;  %v7259_v25 = vpop.eup %5151 }
 0x9c5   : > { %2627 = vadd.xlane.f32.xlu1 %v2626_v41  ;;  %2612 = vadd.xlane.f32.xlu0 %v2611_v54  ;;  %v2620_v2 = vsel %vm1083_vm0, %v7259_v25, 0.0 }
 0x9c7   : > { %v7261_v55 = vpop.eup %5153 }
 0x9c8   : > { %v2629_v13 = vsel %vm1083_vm0, %v7261_v55, 0.0 }
 0x9c9   : > { %2621 = vadd.xlane.f32.xlu1 %v2620_v2  ;;  %2630 = vadd.xlane.f32.xlu0 %v2629_v13 }
 0x9cb   : > { %v7267_v8 = vpop.eup %5155 }
 0x9cc   : > { %v2623_v14 = vsel %vm1083_vm0, %v7267_v8, 0.0 }
 0x9cd   : > { %2624 = vadd.xlane.f32.xlu0 %v2623_v14 }
 0x9e0   : > { %v2544_v5 = vpop.xlane.xlu1 %2543 }
 0x9e1   : > { %v2570_v1 = vsub.f32 %v7193_v56, %v2544_v5 }
 0x9e2   : > { %v2547_v4 = vpop.xlane.xlu0 %2546 }
 0x9e3   : > { %v2596_v27 = vmul.f32 1.442695, %v2570_v1  ;;  %v2571_v58 = vsub.f32 %v7199_v61, %v2547_v4 }
 0x9e4   : > { %v2538_v26 = vpop.xlane.xlu1 %2537 }
 0x9e5   : > { %5157 = vpow2.f32 %v2596_v27  ;;  %v2598_v12 = vmul.f32 1.442695, %v2571_v58  ;;  %v2568_v18 = vsub.f32 %v7195_v57, %v2538_v26 }
 0x9e6   : > { %v2541_v24 = vpop.xlane.xlu0 %2540 }
 0x9e7   : > { %5159 = vpow2.f32 %v2598_v12  ;;  %v2592_v19 = vmul.f32 1.442695, %v2568_v18  ;;  %v2569_v17 = vsub.f32 %v7201_v62, %v2541_v24 }
 0x9e8   : > { %v2556_v36 = vpop.xlane.xlu1 %2555 }
 0x9e9   : > { %5161 = vpow2.f32 %v2592_v19  ;;  %v2594_v30 = vmul.f32 1.442695, %v2569_v17  ;;  %v2574_v44 = vsub.f32 %v7209_v60, %v2556_v36 }
 0x9ea   : > { %v2559_v56 = vpop.xlane.xlu0 %2558 }
 0x9eb   : > { %5163 = vpow2.f32 %v2594_v30  ;;  %v2604_v11 = vmul.f32 1.442695, %v2574_v44  ;;  %v2575_v61 = vsub.f32 %v7215_v6, %v2559_v56 }
 0x9ec   : > { %v2550_v16 = vpop.xlane.xlu1 %2549 }
 0x9ed   : > { %5165 = vpow2.f32 %v2604_v11  ;;  %v2606_v31 = vmul.f32 1.442695, %v2575_v61  ;;  %v2572_v57 = vsub.f32 %v7211_v7, %v2550_v16 }
 0x9ee   : > { %v2553_v28 = vpop.xlane.xlu0 %2552 }
 0x9ef   : > { %v7278_v9 = vpop.eup %5157  ;;  %5167 = vpow2.f32 %v2606_v31  ;;  %v2600_v62 = vmul.f32 1.442695, %v2572_v57  ;;  %v2573_v43 = vsub.f32 %v7217_v0, %v2553_v28 }
 0x9f0   : > { %v2758_v23 = vpop.permute.xlu1 %2757  ;;  %v2638_v60 = vsel %vm1083_vm0, %v7278_v9, 0.0 }
 0x9f1   : > { %v7283_v52 = vpop.eup %5159  ;;  %5169 = vpow2.f32 %v2600_v62  ;;  %v2602_v6 = vmul.f32 1.442695, %v2573_v43  ;;  %2639 = vadd.xlane.f32.xlu1 %v2638_v60  ;;  %4581 = vmatprep.subr.bf16.mxu0 %v2758_v23 }
 0x9f2   : > { %4582 = vmatpush3.bf16.msra.mxu0 %v2758_v23  ;;  %v2699_v34 = vpop.permute.xlu0 %2698  ;;  %v2641_v7 = vsel %vm1083_vm0, %v7283_v52, 0.0 }
 0x9f3   : > { %v7287_v37 = vpop.eup %5161  ;;  %5171 = vpow2.f32 %v2602_v6  ;;  %2642 = vadd.xlane.f32.xlu0 %v2641_v7  ;;  %4575 = vmatprep.subr.bf16.mxu1 %v2699_v34 }
 0x9f4   : > { %v2819_v0 = vpop.permute.xlu1 %2818  ;;  %4576 = vmatpush3.bf16.msra.mxu1 %v2699_v34  ;;  %v2632_v38 = vsel %vm1083_vm0, %v7287_v37, 0.0 }
 0x9f5   : > { %v7291_v35 = vpop.eup %5163  ;;  %2633 = vadd.xlane.f32.xlu1 %v2632_v38  ;;  %4589 = vmatprep.subr.bf16.mxu1 %v2819_v0 }
 0x9f6   : > { %v2635_v47 = vsel %vm1083_vm0, %v7291_v35, 0.0  ;;  %v2821_v5 = vpop.permute.xlu0 %2820 }
 0x9f7   : > { %v7295_v39 = vpop.eup %5165  ;;  %2636 = vadd.xlane.f32.xlu0 %v2635_v47 }
 0x9f8   : > { %v2760_v50 = vpop.permute.xlu1 %2759  ;;  %v2650_v40 = vsel %vm1083_vm0, %v7295_v39, 0.0 }
 0x9f9   : > { %v7299_v51 = vpop.eup %5167  ;;  %2651 = vadd.xlane.f32.xlu1 %v2650_v40  ;;  %4583 = vmatprep.subr.bf16.mxu0 %v2760_v50 }
 0x9fa   : > { %4584 = vmatpush3.bf16.msra.mxu0 %v2760_v50  ;;  %v2653_v41 = vsel %vm1083_vm0, %v7299_v51, 0.0 }
 0x9fb   : > { %v7303_v54 = vpop.eup %5169  ;;  %2654 = vadd.xlane.f32.xlu0 %v2653_v41 }
 0x9fc   : > { %v2644_v2 = vsel %vm1083_vm0, %v7303_v54, 0.0 }
 0x9fd   : > { %v7307_v13 = vpop.eup %5171  ;;  %2645 = vadd.xlane.f32.xlu1 %v2644_v2 }
 0x9fe   : > { %v2647_v14 = vsel %vm1083_vm0, %v7307_v13, 0.0 }
 0x9ff   : > { %2648 = vadd.xlane.f32.xlu0 %v2647_v14 }
 0xa0e   : > { %2879 = vrot.lane.b32.xlu1 %v7102_v10, %s6046_s13 }
 0xa15   : > { %2881 = vrot.lane.b32.xlu0 %v7107_v21, %s6046_s13  ;;  %s6048_s13 = smov [#allocation38]  }
 0xa4a   : > { %v2616_v1 = vpop.xlane.xlu1 %2615 }
 0xa4e   : > { %v2610_v4 = vpop.xlane.xlu1 %2609  ;;  %v2619_v27 = vpop.xlane.xlu0 %2618 }
 0xa4f   : > { %5173 = vrcp.f32 %v2619_v27 }
 0xa50   : > { %5175 = vrcp.f32 %v2610_v4 }
 0xa51   : > { %5177 = vrcp.f32 %v2616_v1 }
 0xa52   : > { %v2628_v58 = vpop.xlane.xlu1 %2627  ;;  %v2613_v26 = vpop.xlane.xlu0 %2612 }
 0xa53   : > { %5179 = vrcp.f32 %v2613_v26 }
 0xa56   : > { %v2622_v12 = vpop.xlane.xlu1 %2621  ;;  %v2631_v18 = vpop.xlane.xlu0 %2630 }
 0xa57   : > { %5181 = vrcp.f32 %v2631_v18 }
 0xa58   : > { %5183 = vrcp.f32 %v2622_v12 }
 0xa59   : > { %5185 = vrcp.f32 %v2628_v58  ;;  %v5174_v10 = vpop.eup %5173 }
 0xa5a   : > { %v2625_v24 = vpop.xlane.xlu0 %2624  ;;  %v5176_v19 = vpop.eup %5175  ;;  %v2663_v36 = vmul.f32 %v5174_v10, %v7245_v49 }
 0xa5b   : > { %5187 = vrcp.f32 %v2625_v24  ;;  %v5178_v21 = vpop.eup %5177  ;;  %v2657_v30 = vmul.f32 %v5176_v19, %v7242_v48 }
 0xa5c   : > { %v2661_v56 = vmul.f32 %v5178_v21, %v7238_v22 }
 0xa5d   : > { %v5180_v17 = vpop.eup %5179 }
 0xa5e   : > { %v2659_v44 = vmul.f32 %v5180_v17, %v7253_v53  ;;  %v2689_v16 = vpack.c.bf16 %v2663_v36, %v2661_v56  ;;  %v5066_v56 = vld [vmem:[#allocation22] sm:$0xff]  }
 0xa60   : > { %v2688_v11 = vpack.c.bf16 %v2659_v44, %v2657_v30 }
 0xa61   : > { %v5182_v61 = vpop.eup %5181 }
 0xa62   : > { %v5184_v31 = vpop.eup %5183  ;;  %4577 = vmatprep.mubr.msk.bf16.mxu1 %vm1083_vm0, %v2688_v11  ;;  %v2671_v62 = vmul.f32 %v5182_v61, %v7261_v55 }
 0xa63   : > { %v5186_v57 = vpop.eup %5185  ;;  %4578 = vmatmul.mubr.msk.bf16.vlgmr.msra.gmra.mrb[32].mxu1 %vm1083_vm0, %v2689_v16  ;;  %v2665_v48 = vmul.f32 %v5184_v31, %v7259_v25 }
 0xa64   : > { %4590 = vmatpush3.bf16.msra.mxu1 %v2819_v0  ;;  %v2669_v22 = vmul.f32 %v5186_v57, %v7251_v59 }
 0xa65   : > { %v5188_v28 = vpop.eup %5187  ;;  %4591 = vmatprep.subr.bf16.mxu1 %v2821_v5 }
 0xa66   : > { %v2667_v49 = vmul.f32 %v5188_v28, %v7267_v8  ;;  %v2691_v43 = vpack.c.bf16 %v2671_v62, %v2669_v22 }
 0xa68   : > { %v2690_v53 = vpack.c.bf16 %v2667_v49, %v2665_v48  ;;  %4592 = vmatpush3.bf16.msra.mxu1 %v2821_v5 }
 0xa69   : > { %4605 = vmatprep.subr.bf16.mxu1 %v5066_v56 }
 0xa6a   : > { %4585 = vmatprep.mubr.msk.bf16.mxu0 %vm1083_vm0, %v2690_v53 }
 0xa6b   : > { %4586 = vmatmul.mubr.msk.bf16.vlgmr.msra.gmra.mrb[44].mxu0 %vm1083_vm0, %v2691_v43 }
 0xa7e   : > { %v2640_v23 = vpop.xlane.xlu1 %2639 }
 0xa80   : > { %v2643_v60 = vpop.xlane.xlu0 %2642 }
 0xa81   : > { %5189 = vrcp.f32 %v2643_v60 }
 0xa82   : > { %v2634_v6 = vpop.xlane.xlu1 %2633 }
 0xa83   : > { %5191 = vrcp.f32 %v2634_v6 }
 0xa84   : > { %5193 = vrcp.f32 %v2640_v23  ;;  %v2637_v55 = vpop.xlane.xlu0 %2636 }
 0xa85   : > { %5195 = vrcp.f32 %v2637_v55 }
 0xa86   : > { %v2652_v25 = vpop.xlane.xlu1 %2651 }
 0xa88   : > { %v2655_v34 = vpop.xlane.xlu0 %2654 }
 0xa89   : > { %5197 = vrcp.f32 %v2655_v34 }
 0xa8a   : > { %v2646_v8 = vpop.xlane.xlu1 %2645 }
 0xa8b   : > { %5199 = vrcp.f32 %v2646_v8  ;;  %v5190_v59 = vpop.eup %5189 }
 0xa8c   : > { %5201 = vrcp.f32 %v2652_v25  ;;  %v2649_v7 = vpop.xlane.xlu0 %2648  ;;  %v2679_v40 = vmul.f32 %v5190_v59, %v7283_v52 }
 0xa8d   : > { %v5192_v0 = vpop.eup %5191  ;;  %5203 = vrcp.f32 %v2649_v7 }
 0xa8e   : > { %v5194_v38 = vpop.eup %5193  ;;  %v2880_v47 = vpop.permute.xlu1 %2879  ;;  %v2673_v2 = vmul.f32 %v5192_v0, %v7287_v37 }
 0xa8f   : > { %v5196_v50 = vpop.eup %5195  ;;  %4597 = vmatprep.subr.bf16.mxu0 %v2880_v47  ;;  %v2677_v5 = vmul.f32 %v5194_v38, %v7278_v9 }
 0xa90   : > { %4598 = vmatpush3.bf16.msra.mxu0 %v2880_v47  ;;  %v2882_v41 = vpop.permute.xlu0 %2881  ;;  %v2675_v14 = vmul.f32 %v5196_v50, %v7291_v35 }
 0xa91   : > { %4599 = vmatprep.subr.bf16.mxu0 %v2882_v41  ;;  %v2693_v4 = vpack.c.bf16 %v2679_v40, %v2677_v5 }
 0xa92   : > { %v2692_v1 = vpack.c.bf16 %v2675_v14, %v2673_v2 }
 0xa93   : > { %v5198_v27 = vpop.eup %5197 }
 0xa94   : > { %4593 = vmatprep.mubr.msk.bf16.mxu1 %vm1083_vm0, %v2692_v1  ;;  %4600 = vmatpush3.bf16.msra.mxu0 %v2882_v41  ;;  %v2687_v12 = vmul.f32 %v5198_v27, %v7299_v51 }
 0xa95   : > { %v5200_v58 = vpop.eup %5199  ;;  %4594 = vmatmul.mubr.msk.bf16.vlgmr.msra.gmra.mrb[36].mxu1 %vm1083_vm0, %v2693_v4 }
 0xa96   : > { %v5202_v52 = vpop.eup %5201  ;;  %v2681_v37 = vmul.f32 %v5200_v58, %v7303_v54  ;;  %4606 = vmatpush3.bf16.msra.mxu1 %v5066_v56 }
 0xa97   : > { %v5204_v26 = vpop.eup %5203  ;;  %v2685_v9 = vmul.f32 %v5202_v52, %v7295_v39 }
 0xa98   : > { %v2683_v35 = vmul.f32 %v5204_v26, %v7307_v13 }
 0xa99   : > { %v2695_v24 = vpack.c.bf16 %v2687_v12, %v2685_v9  ;;  %v4325_v12 = vld [vmem:[#allocation23] ss:$0 sm:$0xff] }
 0xa9a   : > { %v2694_v18 = vpack.c.bf16 %v2683_v35, %v2681_v37 }
 0xa9c   : > { %4601 = vmatprep.mubr.msk.bf16.mxu0 %vm1083_vm0, %v2694_v18 }
 0xa9d   : > { %4602 = vmatmul.mubr.msk.bf16.vlgmr.msra.gmra.mrb[48].mxu0 %vm1083_vm0, %v2695_v24 }
 0xb36   : > { %v4579_v10 = vpop.f32.mrb[32].mxu1 }
 0xb37   : > { %v2742_v19 = vpop.f32.mrb[33].mxu1 }
 0xb38   : > { %v4580_v21 = vpop.f32.mrb[34].mxu1 }
 0xb39   : > { %v2745_v17 = vpop.f32.mrb[35].mxu1 }
 0xb3e   : > { %v4587_v36 = vpop.f32.mrb[44].mxu0 }
 0xb3f   : > { %v2803_v30 = vpop.f32.mrb[45].mxu0 }
 0xb40   : > { %v4588_v44 = vpop.f32.mrb[46].mxu0 }
 0xb41   : > { %v2806_v51 = vpop.f32.mrb[47].mxu0 }
 0xb68   : > { %v4595_v54 = vpop.f32.mrb[36].mxu1 }
 0xb69   : > { %v2864_v13 = vpop.f32.mrb[37].mxu1 }
 0xb6a   : > { %v4596_v39 = vpop.f32.mrb[38].mxu1 }
 0xb6b   : > { %v5036_v11 = vpack.i.bf16 %v4596_v39, %v4595_v54  ;;  %v2867_v61 = vpop.f32.mrb[39].mxu1 }
 0xb6c   : > { %v5031_v16 = vpack.i.bf16 %v2867_v61, %v2864_v13 }
 0xb6d   : > { %5037 = vrot.lane.b32.xlu0 %v5036_v11, %s6045_s23 }
 0xb6e   : > { %5032 = vrot.lane.b32.xlu1 %v5031_v16, %s6045_s23 }
 0xb70   : > { %v4603_v31 = vpop.f32.mrb[48].mxu0 }
 0xb71   : > { %v2925_v57 = vpop.f32.mrb[49].mxu0 }
 0xb72   : > { %v4604_v28 = vpop.f32.mrb[50].mxu0 }
 0xb73   : > { %v5046_v62 = vpack.i.bf16 %v4604_v28, %v4603_v31  ;;  %v2928_v48 = vpop.f32.mrb[51].mxu0 }
 0xb74   : > { %v5041_v49 = vpack.i.bf16 %v2928_v48, %v2925_v57 }
 0xb75   : > { %5047 = vrot.lane.b32.xlu0 %v5046_v62, %s6045_s23 }
 0xb76   : > { %5042 = vrot.lane.b32.xlu1 %v5041_v49, %s6045_s23 }
 0xbdf   : > { %v5038_v22 = vpop.permute.xlu0 %5037 }
 0xbe0   : > { %v5040_v53 = vunpack.i.h.bf16 %v5038_v22  ;;  %v5039_v43 = vunpack.i.l.bf16 %v5038_v22  ;;  %v5033_v23 = vpop.permute.xlu1 %5032 }
 0xbe1   : > { %v5035_v60 = vunpack.i.h.bf16 %v5033_v23  ;;  %v5034_v6 = vunpack.i.l.bf16 %v5033_v23 }
 0xbe2   : > { %v2975_v55 = vsel %vm1284_vm2, %v4580_v21, %v5040_v53  ;;  %v2974_v25 = vsel %vm1284_vm2, %v4579_v10, %v5039_v43 }
 0xbe3   : > { %v2981_v34 = vpack.c.bf16 %v2975_v55, %v2974_v25  ;;  %v2973_v8 = vsel %vm1284_vm2, %v2745_v17, %v5035_v60  ;;  %v2972_v59 = vsel %vm1284_vm2, %v2742_v19, %v5034_v6  ;;  %v4290_v25 = vld [vmem:[#allocation14] ss:$0 sm:$0xff] }
 0xbe4   : > { %v2980_v7 = vpack.c.bf16 %v2973_v8, %v2972_v59  ;;  %v1898_v8 = vadd.f32 %v4290_v25, %v7171_v45 }
 0xbe6   : > { %4607 = vmatprep.mubr.msk.bf16.mxu1 %vm1445_vm3, %v2980_v7 }
 0xbe7   : > { %v5048_v0 = vpop.permute.xlu0 %5047  ;;  %4608 = vmatmul.mubr.msk.bf16.vlgmr.msra.gmra.mrb[40].mxu1 %vm1445_vm3, %v2981_v34  ;;  %v1895_v34 = vadd.f32 %v4290_v25, %v7167_v15 }
 0xbe8   : > { %v5050_v38 = vunpack.i.h.bf16 %v5048_v0  ;;  %v5049_v47 = vunpack.i.l.bf16 %v5048_v0  ;;  %v5043_v50 = vpop.permute.xlu1 %5042 }
 0xbe9   : > { %v5045_v40 = vunpack.i.h.bf16 %v5043_v50  ;;  %v5044_v41 = vunpack.i.l.bf16 %v5043_v50 }
 0xbea   : > { %v2979_v2 = vsel %vm1284_vm2, %v4588_v44, %v5050_v38  ;;  %v2978_v14 = vsel %vm1284_vm2, %v4587_v36, %v5049_v47  ;;  %v5239_v47 = vld [vmem:[%s6768_s30] sm:$0xff] }
 0xbeb   : > { %v2983_v5 = vpack.c.bf16 %v2979_v2, %v2978_v14  ;;  %v2977_v1 = vsel %vm1284_vm2, %v2806_v51, %v5045_v40  ;;  %v2976_v4 = vsel %vm1284_vm2, %v2803_v30, %v5044_v41  ;;  %v5240_v40 = vld [vmem:[%s6768_s30 + $0x8] sm:$0xff]  ;;  %v1903_v2 = vadd.f32 %v7165_v20, %v4290_v25 }
 0xbec   : > { %v2982_v27 = vpack.c.bf16 %v2977_v1, %v2976_v4  ;;  %v1906_v14 = vadd.f32 %v7169_v42, %v4290_v25  ;;  %v1911_v20 = vadd.f32 %v4290_v25, %v7175_v32  ;;  %v1914_v42 = vadd.f32 %v4290_v25, %v7179_v29 }
 0xbed   : > { %v1919_v29 = vadd.f32 %v7173_v46, %v4290_v25 }
 0xbee   : > { %4611 = vmatprep.mubr.msk.bf16.mxu1 %vm1445_vm3, %v2982_v27 }
 0xbef   : > { %4612 = vmatmul.mubr.msk.bf16.gmra.mrb[44].mxu1 %vm1445_vm3, %v2983_v5 }
 0xcba   : > { %v4609_v58 = vpop.f32.mrb[40].mxu1 }
 0xcbb   : > { %v3042_v52 = vpop.f32.mrb[41].mxu1  ;;  %v3051_v35 = vadd.f32 %v4609_v58, %v4325_v12  ;;  %v5241_v58 = vld [vmem:[%s6768_s30 + $0x10] sm:$0xff] }
 0xcbc   : > { %v4610_v26 = vpop.f32.mrb[42].mxu1  ;;  %v3043_v9 = vadd.f32 %v4325_v12, %v3042_v52 }
 0xcbd   : > { %v3045_v37 = vpop.f32.mrb[43].mxu1  ;;  %v3054_v18 = vadd.f32 %v4610_v26, %v4325_v12  ;;  %v3079_v17 = vcombine.high %v3051_v35, %v3051_v35  ;;  %v5242_v26 = vld [vmem:[%s6768_s30 + $0x18] sm:$0xff] }
 0xcbe   : > { %v3046_v24 = vadd.f32 %v4325_v12, %v3045_v37  ;;  %v3077_v36 = vcombine.high %v3043_v9, %v3043_v9 }
 0xcbf   : > { %v3080_v51 = vcombine.high %v3054_v18, %v3054_v18 }
 0xcc0   : > { %v3078_v11 = vcombine.high %v3046_v24, %v3046_v24 }
 0xcc2   : > { %v4613_v10 = vpop.f32.mrb[44].mxu1 }
 0xcc3   : > { %v3067_v19 = vadd.f32 %v4613_v10, %v4325_v12  ;;  %v3058_v21 = vpop.f32.mrb[45].mxu1 }
 0xcc4   : > { %v3059_v30 = vadd.f32 %v4325_v12, %v3058_v21  ;;  %v4614_v44 = vpop.f32.mrb[46].mxu1 }
 0xcc5   : > { %v3097_v56 = vcombine.low %v3067_v19, %v3067_v19  ;;  %v4333_v54 = vcombine.high %v3067_v19, %v3067_v19  ;;  %v3070_v13 = vadd.f32 %v4614_v44, %v4325_v12  ;;  %v3061_v39 = vpop.f32.mrb[47].mxu1  ;;  %v1922_v44 = vadd.f32 %v7177_v33, %v4290_v25 }
 0xcc6   : > { %v3093_v61 = vcombine.low %v3059_v30, %v3059_v30  ;;  %v4331_v16 = vcombine.high %v3059_v30, %v3059_v30  ;;  %v3062_v31 = vadd.f32 %v4325_v12, %v3061_v39  ;;  %v5244_v30 = vld [vmem:[%s6768_s30 + $0x28] sm:$0xff] }
 0xcc7   : > { %v3099_v57 = vcombine.low %v3070_v13, %v3070_v13  ;;  %v4334_v28 = vcombine.high %v3070_v13, %v3070_v13  ;;  %v3114_v62 = vsel %vm3109_vm4, %v3051_v35, %v3097_v56  ;;  %v3115_v48 = vsel %vm3109_vm4, %v3079_v17, %v4333_v54  ;;  %v5243_v17 = vld [vmem:[%s6768_s30 + $0x20] sm:$0xff] }
 0xcc8   : > { %v3095_v49 = vcombine.low %v3062_v31, %v3062_v31  ;;  %v4332_v22 = vcombine.high %v3062_v31, %v3062_v31  ;;  %v3110_v53 = vsel %vm3109_vm4, %v3043_v9, %v3093_v61  ;;  %v3111_v43 = vsel %vm3109_vm4, %v3077_v36, %v4331_v16  ;;  %v5245_v31 = vld [vmem:[%s6768_s30 + $0x30] sm:$0xff] }
 0xcc9   : > { %3126 = vrot.lane.b32.xlu1 %v3110_v53, %s6047_s15  ;;  %3128 = vrot.lane.b32.xlu0 %v3111_v43, %s6047_s15  ;;  %v3116_v23 = vsel %vm3109_vm4, %v3054_v18, %v3099_v57  ;;  %v3117_v60 = vsel %vm3109_vm4, %v3080_v51, %v4334_v28  ;;  %v5246_v28 = vld [vmem:[%s6768_s30 + $0x38] sm:$0xff] }
 0xcca   : > { %v3112_v6 = vsel %vm3109_vm4, %v3046_v24, %v3095_v49  ;;  %v3113_v55 = vsel %vm3109_vm4, %v3078_v11, %v4332_v22 }
 0xccd   : > { %3130 = vrot.lane.b32.xlu1 %v3112_v6, %s6047_s15  ;;  %3132 = vrot.lane.b32.xlu0 %v3113_v55, %s6047_s15 }
 0xcd1   : > { %3134 = vrot.lane.b32.xlu1 %v3114_v62, %s6047_s15  ;;  %3136 = vrot.lane.b32.xlu0 %v3115_v48, %s6047_s15 }
 0xcd5   : > { %3138 = vrot.lane.b32.xlu1 %v3116_v23, %s6047_s15  ;;  %3140 = vrot.lane.b32.xlu0 %v3117_v60, %s6047_s15  ;;  %s5899_s15 = sshll.u32 %s6048_s13, 4  ;;  %s5900_s15 = int_to_ptr.vmem [resolvable:$false] %s5899_s15 }
 0xcd6   : > { %p5902_p4 = scmp.lt.s32.totalorder %s7707_s16, %s5900_s15 }
 0xd3b   : > { %v3127_v59 = vpop.permute.xlu1 %3126  ;;  %v3129_v7 = vpop.permute.xlu0 %3128 }
 0xd3c   : > { %v3151_v0 = vsel %vm3150_vm5, %v1895_v34, %v3127_v59  ;;  %v3152_v38 = vsel %vm3150_vm5, %v1898_v8, %v3129_v7 }
 0xd3d   : > { %v3159_v50 = vadd.f32 %v5239_v47, %v3151_v0  ;;  %v3160_v41 = vadd.f32 %v5240_v40, %v3152_v38 }
 0xd3f   : > { %v3167_v15 = vsel %vm1083_vm0, %v3159_v50, 0.0  ;;  %v3168_v45 = vsel %vm1083_vm0, %v3160_v41, 0.0  ;;  %v3131_v5 = vpop.permute.xlu1 %3130  ;;  %v3133_v1 = vpop.permute.xlu0 %3132 }
 0xd40   : > { %v3153_v4 = vsel %vm3150_vm5, %v1903_v2, %v3131_v5  ;;  %v3154_v27 = vsel %vm3150_vm5, %v1906_v14, %v3133_v1  ;;  %v3169_v37 = vadd.f32 %v3168_v45, %v3167_v15 }
 0xd41   : > { %v3161_v52 = vadd.f32 %v5241_v58, %v3153_v4  ;;  %v3162_v12 = vadd.f32 %v5242_v26, %v3154_v27 }
 0xd43   : > { %v3170_v35 = vsel %vm1083_vm0, %v3161_v52, 0.0  ;;  %v3135_v9 = vpop.permute.xlu1 %3134  ;;  %v3137_v18 = vpop.permute.xlu0 %3136  ;;  %v3172_v21 = vsel %vm1083_vm0, %v3162_v12, 0.0 }
 0xd44   : > { %v3171_v24 = vadd.f32 %v3170_v35, %v3169_v37  ;;  %v3155_v10 = vsel %vm3150_vm5, %v1911_v20, %v3135_v9  ;;  %v3156_v19 = vsel %vm3150_vm5, %v1914_v42, %v3137_v18 }
 0xd45   : > { %v3163_v36 = vadd.f32 %v5243_v17, %v3155_v10  ;;  %v3164_v32 = vadd.f32 %v5244_v30, %v3156_v19  ;;  %v5067_v17 = vld [vmem:[#allocation25] sm:$0xff]  }
 0xd46   : > { %v3173_v51 = vadd.f32 %v3172_v21, %v3171_v24  ;;  %4615 = vmatprep.subr.bf16.mxu0 %v5067_v17 }
 0xd47   : > { %v3174_v56 = vsel %vm1083_vm0, %v3163_v36, 0.0  ;;  %v3139_v54 = vpop.permute.xlu1 %3138  ;;  %v3141_v13 = vpop.permute.xlu0 %3140  ;;  %v3176_v16 = vsel %vm1083_vm0, %v3164_v32, 0.0  ;;  %4616 = vmatpush3.bf16.msra.mxu0 %v5067_v17 }
 0xd48   : > { %v3175_v39 = vadd.f32 %v3174_v56, %v3173_v51  ;;  %v3157_v11 = vsel %vm3150_vm5, %v1919_v29, %v3139_v54  ;;  %v3158_v61 = vsel %vm3150_vm5, %v1922_v44, %v3141_v13 }
 0xd49   : > { %v3165_v57 = vadd.f32 %v5245_v31, %v3157_v11  ;;  %v3166_v62 = vadd.f32 %v5246_v28, %v3158_v61 }
 0xd4a   : > { %v3177_v48 = vadd.f32 %v3176_v16, %v3175_v39 }
 0xd4b   : > { %v3178_v46 = vsel %vm1083_vm0, %v3165_v57, 0.0  ;;  %v3180_v49 = vsel %vm1083_vm0, %v3166_v62, 0.0 }
 0xd4c   : > { %v3179_v33 = vadd.f32 %v3178_v46, %v3177_v48 }
 0xd4e   : > { %v3181_v22 = vadd.f32 %v3180_v49, %v3179_v33 }
 0xd50   : > { %3182 = vadd.xlane.f32.xlu1 %v3181_v22 }
 0xddd   : > { %v3183_v53 = vpop.xlane.xlu1 %3182 }
 0xdde   : > { %v3184_v43 = vrot.slane %v3183_v53, 4 }
 0xde0   : > { %v3185_v23 = vadd.f32 %v3184_v43, %v3183_v53  ;;  %v5069_v43 = vld [vmem:[#allocation34] sm:$0xff]  }
 0xde1   : > { %4627 = vmatprep.subr.bf16.mxu1 %v5069_v43 }
 0xde2   : > { %v3186_v60 = vrot.slane %v3185_v23, 2  ;;  %4628 = vmatpush3.bf16.msra.mxu1 %v5069_v43 }
 0xde4   : > { %v3187_v6 = vadd.f32 %v3186_v60, %v3185_v23  ;;  %v5070_v23 = vld [vmem:[#allocation34 + $0x8] sm:$0xff]   ;;  %v5071_v60 = vld [vmem:[#allocation34 + $0x10] sm:$0xff]  }
 0xde5   : > { %4629 = vmatprep.subr.bf16.mxu1 %v5070_v23 }
 0xde6   : > { %v3188_v55 = vrot.slane %v3187_v6, 1  ;;  %4630 = vmatpush3.bf16.msra.mxu1 %v5070_v23 }
 0xde7   : > { %4631 = vmatprep.subr.bf16.mxu1 %v5071_v60 }
 0xde8   : > { %v3189_v25 = vadd.f32 %v3188_v55, %v3187_v6  ;;  %v5072_v6 = vld [vmem:[#allocation34 + $0x18] sm:$0xff]   ;;  %v5073_v55 = vld [vmem:[#allocation34 + $0x20] sm:$0xff]  }
 0xdea   : > { %4661 = vpush %v3189_v25  ;;  %4632 = vmatpush3.bf16.msra.mxu1 %v5071_v60  ;;  %v5074_v25 = vld [vmem:[#allocation34 + $0x28] sm:$0xff]  }
 0xdeb   : > { %4633 = vmatprep.subr.bf16.mxu1 %v5072_v6 }
 0xdee   : > { %4634 = vmatpush3.bf16.msra.mxu1 %v5072_v6 }
 0xdef   : > { %4635 = vmatprep.subr.bf16.mxu1 %v5073_v55 }
 0xdf2   : > { %4636 = vmatpush3.bf16.msra.mxu1 %v5073_v55 }
 0xdf3   : > { %4637 = vmatprep.subr.bf16.mxu1 %v5074_v25 }
 0xdf6   : > { %4638 = vmatpush3.bf16.msra.mxu1 %v5074_v25 }
 0xe1b   : > { %s4662_s10 = spop %4661 }
 0xe1c   : > { %s3193_s0 = smul.f32 0.00048828125, %s4662_s10  ;;  %s5901_s10 = scalar_lea.vmem %s5900_s15, 2048 }
 0xe1d   : > { %p5903_p8 = scmp.lt.s32.totalorder %s5901_s10, %s5895_s8 }
 0xe1e   : > { %v3194_v34 = vstv %s3193_s0 }
 0xe1f   : > { %v3195_v8 = vsub.f32 %v3159_v50, %v3194_v34  ;;  %v3196_v59 = vsub.f32 %v3160_v41, %v3194_v34  ;;  %v3197_v7 = vsub.f32 %v3161_v52, %v3194_v34  ;;  %v3198_v0 = vsub.f32 %v3162_v12, %v3194_v34  ;;  %p5904_p11 = por %p5903_p8, %p5902_p4 }
 0xe20   : > { %v3199_v38 = vsub.f32 %v3163_v36, %v3194_v34  ;;  %v3200_v14 = vsub.f32 %v3164_v32, %v3194_v34  ;;  %v3201_v4 = vsub.f32 %v3165_v57, %v3194_v34  ;;  %v3202_v50 = vsub.f32 %v3166_v62, %v3194_v34  ;;  %v5068_v32 = vld [vmem:[#allocation25 + $0x8] sm:$0xff]   ;;  %v5075_v34 = vld [vmem:[#allocation34 + $0x30] sm:$0xff]  }
 0xe21   : > { %v3203_v47 = vmul.f32 %v3195_v8, %v3195_v8  ;;  %v3204_v40 = vmul.f32 %v3196_v59, %v3196_v59  ;;  %v3205_v2 = vmul.f32 %v3197_v7, %v3197_v7  ;;  %v3206_v15 = vmul.f32 %v3198_v0, %v3198_v0  ;;  %4617 = vmatprep.subr.bf16.mxu0 %v5068_v32  ;;  %p5905_p0 = pnand %p5904_p11, %p5898_p9 }
 0xe22   : > { %v3207_v27 = vmul.f32 %v3199_v38, %v3199_v38  ;;  %v3208_v41 = vmul.f32 %v3200_v14, %v3200_v14  ;;  %v3209_v20 = vmul.f32 %v3201_v4, %v3201_v4  ;;  %v3210_v35 = vmul.f32 %v3202_v50, %v3202_v50  ;;  %4618 = vmatpush3.bf16.msra.mxu0 %v5068_v32 }
 0xe23   : > { %v3211_v45 = vsel %vm1083_vm0, %v3203_v47, 0.0  ;;  %v3212_v5 = vsel %vm1083_vm0, %v3204_v40, 0.0  ;;  %v3214_v58 = vsel %vm1083_vm0, %v3205_v2, 0.0  ;;  %v3216_v52 = vsel %vm1083_vm0, %v3206_v15, 0.0  ;;  %4639 = vmatprep.subr.bf16.mxu1 %v5075_v34  ;;  %v3418_v40 = vld [vmem:[#allocation29] sm:$0xff] }
 0xe24   : > { %v3213_v1 = vadd.f32 %v3212_v5, %v3211_v45  ;;  %v3218_v42 = vsel %vm1083_vm0, %v3207_v27, 0.0  ;;  %v3220_v9 = vsel %vm1083_vm0, %v3208_v41, 0.0  ;;  %v3222_v24 = vsel %vm1083_vm0, %v3209_v20, 0.0  ;;  %4640 = vmatpush3.bf16.msra.mxu1 %v5075_v34 }
 0xe25   : > { %v3224_v19 = vsel %vm1083_vm0, %v3210_v35, 0.0  ;;  %v3492_v2 = vsub.s32 1, %v7021_v3  ;;  %v3532_v32 = vsub.s32 3, %v7021_v3 }
 0xe26   : > { %v3215_v26 = vadd.f32 %v3214_v58, %v3213_v1  ;;  %v7433_v58 = vrot.slane %v3418_v40, %v7038_v63 }
 0xe27   : > { %v7435_v41 = vrot.slane %v3418_v40, %v3492_v2  ;;  %v7448_v43 = vrot.slane %v3418_v40, %v3532_v32 }
 0xe28   : > { %v3217_v12 = vadd.f32 %v3216_v52, %v3215_v26 }
 0xe29   : > { %v3494_v63 = vmul.f32 0.0, %v7435_v41 }
 0xe2a   : > { %v3219_v37 = vadd.f32 %v3218_v42, %v3217_v12  ;;  %v3512_v12 = vsub.s32 2, %v7021_v3 }
 0xe2c   : > { %v3221_v18 = vadd.f32 %v3220_v9, %v3219_v37  ;;  %v3482_v9 = vmul.f32 0.0, %v7433_v58 }
 0xe2e   : > { %v3223_v10 = vadd.f32 %v3222_v24, %v3221_v18 }
 0xe30   : > { %v3225_v21 = vadd.f32 %v3224_v19, %v3223_v10  ;;  %v7440_v10 = vrot.slane %v3418_v40, %v3512_v12 }
 0xe32   : > { %3226 = vadd.xlane.f32.xlu0 %v3225_v21 }
 0xebf   : > { %v3227_v36 = vpop.xlane.xlu0 %3226 }
 0xec0   : > { %v3228_v30 = vrot.slane %v3227_v36, 4 }
 0xec2   : > { %v3229_v29 = vadd.f32 %v3228_v30, %v3227_v36 }
 0xec4   : > { %v3230_v44 = vrot.slane %v3229_v29, 2 }
 0xec6   : > { %v3231_v51 = vadd.f32 %v3230_v44, %v3229_v29  ;;  %v3552_v29 = vsub.s32 4, %v7021_v3 }
 0xec8   : > { %v3232_v56 = vrot.slane %v3231_v51, 1  ;;  %v7450_v23 = vrot.slane %v3418_v40, %v3552_v29 }
 0xeca   : > { %v3233_v54 = vadd.f32 %v3232_v56, %v3231_v51  ;;  %v3572_v56 = vsub.s32 5, %v7021_v3 }
 0xecc   : > { %4663 = vpush %v3233_v54  ;;  %v3592_v54 = vsub.s32 6, %v7021_v3  ;;  %v7452_v55 = vrot.slane %v3418_v40, %v3572_v56 }
 0xece   : > { %v7454_v25 = vrot.slane %v3418_v40, %v3592_v54 }
 0xefd   : > { %s4664_s17 = spop %4663 }
 0xefe   : > { %s3237_s3 = smul.f32 0.00048828125, %s4664_s17 }
 0xf00   : > { %s3238_s4 = sadd.f32 1e-05, %s3237_s3 }
 0xf02   : > { %v3239_v13 = vstv %s3238_s4 }
 0xf03   : > { %5205 = vrsqrt.f32 %v3239_v13  ;;  %v3612_v13 = vsub.s32 7, %v7021_v3 }
 0xf05   : > { %v7456_v3 = vrot.slane %v3418_v40, %v3612_v13 }
 0xf0d   : > { %v5206_v39 = vpop.eup %5205 }
 0xf0e   : > { %4665 = vpush %v5206_v39 }
 0xf3f   : > { %s4666_s30 = spop %4665 }
 0xf40   : > { %v3242_v11 = vstv %s4666_s30 }
 0xf41   : > { %v7403_v61 = vmul.f32 %v3242_v11, %v3195_v8  ;;  %v7405_v16 = vmul.f32 %v3242_v11, %v3196_v59  ;;  %v7407_v31 = vmul.f32 %v3242_v11, %v3197_v7  ;;  %v7409_v57 = vmul.f32 %v3242_v11, %v3198_v0  ;;  %v5076_v8 = vld [vmem:[#allocation34 + $0x38] sm:$0xff]   ;;  %v4341_v59 = vld [vmem:[#allocation26] ss:$0 sm:$0xff]  ;;  %v4342_v0 = vld [vmem:[#allocation28] ss:$0 sm:$0xff] }
 0xf42   : > { %v7411_v28 = vmul.f32 %v3242_v11, %v3199_v38  ;;  %v7413_v62 = vmul.f32 %v3242_v11, %v3200_v14  ;;  %v7424_v49 = vmul.f32 %v3242_v11, %v3201_v4  ;;  %v7426_v22 = vmul.f32 %v3242_v11, %v3202_v50  ;;  %4641 = vmatprep.subr.bf16.mxu1 %v5076_v8 }
 0xf43   : > { %7913 = vst [vmem:[#allocation59_spill] sm:$0xff] %v7405_v16  ;;  %v3251_v48 = vpack.c.bf16 %v7405_v16, %v7403_v61  ;;  %v3252_v46 = vpack.c.bf16 %v7409_v57, %v7407_v31  ;;  %4642 = vmatpush3.bf16.msra.mxu1 %v5076_v8  ;;  %v3502_v11 = vadd.f32 %v3494_v63, %v3482_v9 }
 0xf44   : > { %7914 = vst [vmem:[#allocation60_spill] sm:$0xff] %v7411_v28  ;;  %7915 = vst [vmem:[#allocation61_spill] sm:$0xff] %v7413_v62  ;;  %v3253_v33 = vpack.c.bf16 %v7413_v62, %v7411_v28  ;;  %v3254_v53 = vpack.c.bf16 %v7426_v22, %v7424_v49 }
 0xf45   : > { %4619 = vmatprep.mubr.msk.bf16.mxu0 %vm1083_vm0, %v3251_v48  ;;  %7916 = vst [vmem:[#allocation62_spill] sm:$0xff] %v7424_v49  ;;  %7917 = vst [vmem:[#allocation63_spill] sm:$0xff] %v7426_v22  ;;  %v3514_v48 = vmul.f32 0.0, %v7440_v10 }
 0xf46   : > { %4620 = vmatmul.mubr.msk.bf16.vlgmr.msra.gmra.mrb[52].mxu0 %vm1083_vm0, %v3252_v46 }
 0xf47   : > { %4623 = vmatprep.mubr.msk.bf16.mxu0 %vm1083_vm0, %v3253_v33 }
 0xf4e   : > { %4624 = vmatmul.mubr.msk.bf16.gmra.mrb[56].mxu0 %vm1083_vm0, %v3254_v53 }
0x1019   : > { %v4621_v7 = vpop.f32.mrb[52].mxu0 }
0x101a   : > { %v3357_v38 = vmul.f32 %v4621_v7, %v4341_v59  ;;  %v3317_v47 = vpop.f32.mrb[53].mxu0 }
0x101b   : > { %v3355_v14 = vmul.f32 %v4341_v59, %v3317_v47  ;;  %v4622_v15 = vpop.f32.mrb[54].mxu0 }
0x101c   : > { %v3372_v45 = vadd.f32 %v4342_v0, %v3357_v38  ;;  %v3358_v5 = vmul.f32 %v4622_v15, %v4341_v59  ;;  %v3320_v1 = vpop.f32.mrb[55].mxu0 }
0x101d   : > { %v3370_v4 = vadd.f32 %v4342_v0, %v3355_v14  ;;  %v3356_v27 = vmul.f32 %v4341_v59, %v3320_v1  ;;  %v7459_v14 = vmul.f32 0.0, %v7454_v25 }
0x101e   : > { %v3388_v26 = vmul.f32 0.70710677, %v3372_v45  ;;  %v3373_v50 = vadd.f32 %v4342_v0, %v3358_v5 }
0x101f   : > { %v3386_v52 = vmul.f32 0.70710677, %v3370_v4  ;;  %v3371_v20 = vadd.f32 %v4342_v0, %v3356_v27  ;;  %v3378_v47 = vmul.f32 0.5, %v3370_v4 }
0x1020   : > { %5207 = verf.f32 %v3388_v26  ;;  %v3389_v42 = vmul.f32 0.70710677, %v3373_v50  ;;  %v3381_v1 = vmul.f32 0.5, %v3373_v50 }
0x1021   : > { %5209 = verf.f32 %v3386_v52  ;;  %v3387_v37 = vmul.f32 0.70710677, %v3371_v20  ;;  %v4625_v35 = vpop.f32.mrb[56].mxu0  ;;  %v3379_v26 = vmul.f32 0.5, %v3371_v20 }
0x1022   : > { %5211 = verf.f32 %v3389_v42  ;;  %v3361_v18 = vmul.f32 %v4625_v35, %v4341_v59  ;;  %v3333_v24 = vpop.f32.mrb[57].mxu0 }
0x1023   : > { %5213 = verf.f32 %v3387_v37  ;;  %v3359_v19 = vmul.f32 %v4341_v59, %v3333_v24  ;;  %v4626_v21 = vpop.f32.mrb[58].mxu0 }
0x1024   : > { %v3376_v17 = vadd.f32 %v4342_v0, %v3361_v18  ;;  %v3362_v36 = vmul.f32 %v4626_v21, %v4341_v59  ;;  %v3336_v30 = vpop.f32.mrb[59].mxu0 }
0x1025   : > { %v3374_v44 = vadd.f32 %v4342_v0, %v3359_v19  ;;  %v3360_v51 = vmul.f32 %v4341_v59, %v3336_v30  ;;  %v3380_v59 = vmul.f32 0.5, %v3372_v45 }
0x1026   : > { %v3377_v39 = vadd.f32 %v4342_v0, %v3362_v36  ;;  %v3392_v46 = vmul.f32 0.70710677, %v3376_v17  ;;  %v3384_v12 = vmul.f32 0.5, %v3376_v17 }
0x1027   : > { %v3375_v33 = vadd.f32 %v4342_v0, %v3360_v51  ;;  %v3390_v53 = vmul.f32 0.70710677, %v3374_v44  ;;  %v3522_v0 = vadd.f32 %v3514_v48, %v3502_v11  ;;  %v3382_v42 = vmul.f32 0.5, %v3374_v44 }
0x1028   : > { %v3393_v60 = vmul.f32 0.70710677, %v3377_v39  ;;  %5215 = verf.f32 %v3392_v46  ;;  %v7464_v4 = vmul.f32 0.5, %v3377_v39 }
0x1029   : > { %v3391_v34 = vmul.f32 0.70710677, %v3375_v33  ;;  %5217 = verf.f32 %v3390_v53  ;;  %v7467_v18 = vmul.f32 0.5, %v3375_v33 }
0x102a   : > { %v5208_v6 = vpop.eup %5207  ;;  %5219 = verf.f32 %v3393_v60 }
0x102b   : > { %v5210_v8 = vpop.eup %5209  ;;  %v3404_v7 = vadd.f32 1.0, %v5208_v6  ;;  %5221 = verf.f32 %v3391_v34 }
0x102c   : > { %v5212_v38 = vpop.eup %5211  ;;  %v3402_v2 = vadd.f32 1.0, %v5210_v8 }
0x102d   : > { %v5214_v15 = vpop.eup %5213  ;;  %v7461_v5 = vmul.f32 %v3404_v7, %v3380_v59  ;;  %v3405_v27 = vadd.f32 1.0, %v5212_v38 }
0x102e   : > { %v3410_v40 = vmul.f32 %v3402_v2, %v3378_v47  ;;  %v3403_v52 = vadd.f32 1.0, %v5214_v15 }
0x102f   : > { %v3430_v45 = vrot.slane %v7461_v5, 7  ;;  %v3455_v37 = vrot.slane %v7461_v5, 1  ;;  %v3497_v20 = vmul.f32 %v7435_v41, %v7461_v5  ;;  %v7476_v24 = vmul.f32 %v7450_v23, %v7461_v5 }
0x1030   : > { %v3428_v35 = vrot.slane %v3410_v40, 7  ;;  %v3453_v9 = vrot.slane %v3410_v40, 1  ;;  %v3413_v63 = vmul.f32 %v3405_v27, %v3381_v1  ;;  %v7482_v36 = vmul.f32 %v3403_v52, %v3379_v26 }
0x1031   : > { %v7470_v50 = vsel %vm3444_vm6, 0.0, %v3430_v45  ;;  %v3495_v32 = vmul.f32 %v7435_v41, %v3410_v40  ;;  %v3554_v44 = vmul.f32 %v7450_v23, %v3410_v40  ;;  %v7493_v13 = vsel %vm3469_vm7, %v3455_v37, 0.0 }
0x1032   : > { %v3485_v19 = vmul.f32 %v7433_v58, %v7470_v50  ;;  %v3445_v21 = vsel %vm3444_vm6, 0.0, %v3428_v35  ;;  %v3470_v17 = vsel %vm3469_vm7, %v3453_v9, 0.0  ;;  %v7490_v51 = vmul.f32 %v7448_v43, %v7470_v50  ;;  %v5216_v39 = vpop.eup %5215  ;;  %v7521_v35 = vld [vmem:[#allocation29 + $0x8] ss:$0 sm:$0xff] }
0x1033   : > { %v3483_v30 = vmul.f32 %v7433_v58, %v3445_v21  ;;  %v3534_v29 = vmul.f32 %v7448_v43, %v3445_v21  ;;  %v3431_v56 = vrot.slane %v3413_v63, 7  ;;  %v3456_v54 = vrot.slane %v3413_v63, 1  ;;  %v5218_v53 = vpop.eup %5217 }
0x1034   : > { %v3515_v48 = vmul.f32 %v7440_v10, %v3470_v17  ;;  %v3574_v33 = vmul.f32 %v7452_v55, %v3470_v17  ;;  %v7497_v60 = vadd.f32 %v3497_v20, %v3485_v19  ;;  %v3429_v8 = vrot.slane %v7482_v36, 7  ;;  %v5220_v59 = vpop.eup %5219 }
0x1035   : > { %v3503_v11 = vadd.f32 %v3495_v32, %v3483_v30  ;;  %v3542_v46 = vadd.f32 %v3534_v29, %v3522_v0  ;;  %v3448_v6 = vsel %vm3444_vm6, 0.0, %v3431_v56  ;;  %v3473_v34 = vsel %vm3469_vm7, %v3456_v54, 0.0  ;;  %v5222_v2 = vpop.eup %5221 }
0x1036   : > { %v3486_v7 = vmul.f32 %v7433_v58, %v3448_v6  ;;  %v3498_v38 = vmul.f32 %v7435_v41, %v3413_v63  ;;  %v7505_v47 = vmul.f32 %v7450_v23, %v3413_v63  ;;  %v7508_v0 = vmul.f32 %v7456_v3, %v3413_v63 }
0x1037   : > { %v3523_v15 = vadd.f32 %v3515_v48, %v3503_v11  ;;  %v3562_v1 = vadd.f32 %v3554_v44, %v3542_v46  ;;  %v3518_v27 = vmul.f32 %v7440_v10, %v3473_v34  ;;  %v3454_v40 = vrot.slane %v7482_v36, 1 }
0x1038   : > { %v3506_v26 = vadd.f32 %v3498_v38, %v3486_v7  ;;  %v7513_v52 = vmul.f32 %v7448_v43, %v3448_v6  ;;  %v7516_v45 = vmul.f32 %v7452_v55, %v3473_v34  ;;  %v7519_v37 = vsel %vm3444_vm6, 0.0, %v3429_v8 }
0x1039   : > { %v7524_v9 = vmul.f32 %v7454_v25, %v3448_v6  ;;  %v3484_v20 = vmul.f32 %v7433_v58, %v7519_v37  ;;  %v3535_v63 = vmul.f32 %v7448_v43, %v7519_v37  ;;  %v3408_v19 = vadd.f32 1.0, %v5216_v39 }
0x103a   : > { %v7531_v21 = vmul.f32 %v7521_v35, %v3473_v34  ;;  %v3406_v17 = vadd.f32 1.0, %v5218_v53  ;;  %v3409_v30 = vadd.f32 1.0, %v5220_v59  ;;  %v3407_v32 = vadd.f32 1.0, %v5222_v2 }
0x103b   : > { %v3496_v29 = vmul.f32 %v7435_v41, %v7482_v36  ;;  %v3543_v44 = vadd.f32 %v3535_v63, %v3523_v15  ;;  %v3555_v56 = vmul.f32 %v7450_v23, %v7482_v36  ;;  %v7537_v54 = vmul.f32 %v3408_v19, %v3384_v12 }
0x103c   : > { %v7539_v11 = vadd.f32 %v3574_v33, %v3562_v1  ;;  %v3526_v48 = vadd.f32 %v3518_v27, %v3506_v26  ;;  %v3414_v46 = vmul.f32 %v3406_v17, %v3382_v42  ;;  %v7542_v39 = vsel %vm3469_vm7, %v3454_v40, 0.0 }
0x103d   : > { %v3504_v6 = vadd.f32 %v3496_v29, %v3484_v20  ;;  %v3563_v53 = vadd.f32 %v3555_v56, %v3543_v44  ;;  %v3434_v34 = vrot.slane %v7537_v54, 7  ;;  %v3459_v8 = vrot.slane %v7537_v54, 1 }
0x103e   : > { %v3432_v59 = vrot.slane %v3414_v46, 7  ;;  %v3457_v7 = vrot.slane %v3414_v46, 1  ;;  %v7547_v38 = vmul.f32 %v3409_v30, %v7464_v4  ;;  %v7550_v12 = vmul.f32 %v3407_v32, %v7467_v18 }
0x103f   : > { %v7553_v33 = vsel %vm3444_vm6, 0.0, %v3434_v34  ;;  %v3501_v42 = vmul.f32 %v7435_v41, %v7537_v54  ;;  %v3499_v2 = vmul.f32 %v7435_v41, %v3414_v46  ;;  %v3516_v15 = vmul.f32 %v7440_v10, %v7542_v39 }
0x1040   : > { %v7561_v1 = vsel %vm3469_vm7, %v3459_v8, 0.0  ;;  %v3489_v4 = vmul.f32 %v7433_v58, %v7553_v33  ;;  %v3449_v18 = vsel %vm3444_vm6, 0.0, %v3432_v59  ;;  %v3474_v27 = vsel %vm3469_vm7, %v3457_v7, 0.0 }
0x1041   : > { %v3487_v40 = vmul.f32 %v7433_v58, %v3449_v18  ;;  %v3538_v26 = vmul.f32 %v7448_v43, %v3449_v18  ;;  %v3558_v20 = vmul.f32 %v7450_v23, %v3414_v46  ;;  %v7571_v63 = vmul.f32 %v7456_v3, %v3414_v46 }
0x1042   : > { %v3509_v19 = vadd.f32 %v3501_v42, %v3489_v4  ;;  %v3519_v17 = vmul.f32 %v7440_v10, %v3474_v27  ;;  %v3435_v30 = vrot.slane %v7547_v38, 7  ;;  %v3460_v32 = vrot.slane %v7547_v38, 1 }
0x1043   : > { %v3507_v29 = vadd.f32 %v3499_v2, %v3487_v40  ;;  %v3546_v44 = vadd.f32 %v3538_v26, %v3526_v48  ;;  %v3597_v56 = vmul.f32 %v7454_v25, %v3449_v18  ;;  %v3521_v34 = vmul.f32 %v7440_v10, %v7561_v1 }
0x1044   : > { %v7580_v8 = vmul.f32 %v7521_v35, %v3474_v27  ;;  %v7583_v46 = vsel %vm3444_vm6, 0.0, %v3435_v30  ;;  %v7586_v59 = vsel %vm3469_vm7, %v3460_v32, 0.0  ;;  %v3433_v7 = vrot.slane %v7550_v12, 7 }
0x1045   : > { %v3527_v42 = vadd.f32 %v3519_v17, %v3507_v29  ;;  %v3566_v4 = vadd.f32 %v3558_v20, %v3546_v44  ;;  %v3529_v2 = vadd.f32 %v3521_v34, %v3509_v19  ;;  %v3541_v48 = vmul.f32 %v7448_v43, %v7583_v46 }
0x1046   : > { %v3561_v18 = vmul.f32 %v7450_v23, %v7547_v38  ;;  %v3581_v40 = vmul.f32 %v7452_v55, %v7586_v59  ;;  %v3450_v26 = vsel %vm3444_vm6, 0.0, %v3433_v7  ;;  %v3458_v30 = vrot.slane %v7550_v12, 1 }
0x1047   : > { %v3549_v32 = vadd.f32 %v3541_v48, %v3529_v2  ;;  %v3488_v62 = vmul.f32 %v7433_v58, %v3450_v26  ;;  %v3500_v20 = vmul.f32 %v7435_v41, %v7550_v12  ;;  %v3539_v19 = vmul.f32 %v7448_v43, %v3450_v26 }
0x1048   : > { %v3559_v17 = vmul.f32 %v7450_v23, %v7550_v12  ;;  %v3517_v29 = vmul.f32 %v7440_v10, %v7493_v13  ;;  %v3524_v44 = vadd.f32 %v3516_v15, %v3504_v6  ;;  %v3575_v34 = vmul.f32 %v7452_v55, %v7542_v39 }
0x1049   : > { %v3569_v7 = vadd.f32 %v3561_v18, %v3549_v32  ;;  %v3508_v22 = vadd.f32 %v3500_v20, %v3488_v62  ;;  %v3547_v2 = vadd.f32 %v3539_v19, %v3527_v42  ;;  %v3576_v58 = vmul.f32 %v7452_v55, %v7493_v13 }
0x104a   : > { %v3525_v41 = vadd.f32 %v3517_v29, %v7497_v60  ;;  %v3544_v48 = vadd.f32 %v7490_v51, %v3524_v44  ;;  %v3583_v28 = vadd.f32 %v3575_v34, %v3563_v53  ;;  %v3594_v49 = vmul.f32 %v7454_v25, %v7519_v37 }
0x104b   : > { %v7613_v16 = vadd.f32 %v3581_v40, %v3569_v7  ;;  %v3567_v6 = vadd.f32 %v3559_v17, %v3547_v2  ;;  %v3595_v15 = vmul.f32 %v7454_v25, %v7470_v50  ;;  %v3614_v62 = vmul.f32 %v7456_v3, %v7482_v36  ;;  %v7638_v17 = vld [vmem:[#allocation32] ss:$0 sm:$0xff] }
0x104c   : > { %v3545_v42 = vadd.f32 %v7513_v52, %v3525_v41  ;;  %v3564_v18 = vadd.f32 %v7476_v24, %v3544_v48  ;;  %v3602_v60 = vadd.f32 %v3594_v49, %v7539_v11  ;;  %v3615_v51 = vmul.f32 %v7456_v3, %v7461_v5  ;;  %v7631_v49 = vld [vmem:[#allocation31] ss:$0 sm:$0xff] }
0x104d   : > { %v3603_v53 = vadd.f32 %v3595_v15, %v3583_v28  ;;  %v3634_v37 = vmul.f32 %v7521_v35, %v7542_v39  ;;  %v3635_v40 = vmul.f32 %v7521_v35, %v7493_v13  ;;  %v3475_v50 = vsel %vm3469_vm7, %v3458_v30, 0.0 }
0x104e   : > { %v3565_v36 = vadd.f32 %v7505_v47, %v3545_v42  ;;  %v3584_v32 = vadd.f32 %v3576_v58, %v3564_v18  ;;  %v3622_v52 = vadd.f32 %v3614_v62, %v3602_v60  ;;  %v3520_v24 = vmul.f32 %v7440_v10, %v3475_v50 }
0x104f   : > { %v3623_v20 = vadd.f32 %v3615_v51, %v3603_v53  ;;  %v3578_v5 = vmul.f32 %v7452_v55, %v3474_v27  ;;  %v3579_v28 = vmul.f32 %v7452_v55, %v3475_v50  ;;  %v3598_v11 = vmul.f32 %v7454_v25, %v3450_v26 }
0x1050   : > { %v3604_v39 = vadd.f32 %v7524_v9, %v3584_v32  ;;  %v3642_v13 = vadd.f32 %v3634_v37, %v3622_v52  ;;  %v3585_v30 = vadd.f32 %v7516_v45, %v3565_v36  ;;  %v3528_v19 = vadd.f32 %v3520_v24, %v3508_v22 }
0x1051   : > { %v3643_v47 = vadd.f32 %v3635_v40, %v3623_v20  ;;  %v3586_v29 = vadd.f32 %v3578_v5, %v3566_v4  ;;  %v3587_v10 = vadd.f32 %v3579_v28, %v3567_v6  ;;  %v3599_v44 = vmul.f32 %v7454_v25, %v7553_v33 }
0x1052   : > { %v3657_v27 = vmul.f32 %v7631_v49, %v3642_v13  ;;  %v3605_v34 = vadd.f32 %v3597_v56, %v3585_v30  ;;  %v3624_v7 = vadd.f32 %v7508_v0, %v3604_v39  ;;  %v3618_v9 = vmul.f32 %v7456_v3, %v7550_v12 }
0x1053   : > { %v3658_v26 = vmul.f32 %v7631_v49, %v3643_v47  ;;  %v3606_v45 = vadd.f32 %v3598_v11, %v3586_v29  ;;  %v3607_v22 = vadd.f32 %v3599_v44, %v3587_v10  ;;  %v3619_v2 = vmul.f32 %v7456_v3, %v7537_v54 }
0x1054   : > { %v3672_v4 = vadd.f32 %v7638_v17, %v3657_v27  ;;  %v3625_v58 = vadd.f32 %v7571_v63, %v3605_v34  ;;  %v3644_v41 = vadd.f32 %v7531_v21, %v3624_v7  ;;  %v3638_v56 = vmul.f32 %v7521_v35, %v3475_v50 }
0x1055   : > { %v3673_v0 = vadd.f32 %v7638_v17, %v3658_v26  ;;  %v3626_v48 = vadd.f32 %v3618_v9, %v3606_v45  ;;  %v3627_v6 = vadd.f32 %v3619_v2, %v3607_v22  ;;  %v3639_v12 = vmul.f32 %v7521_v35, %v7561_v1 }
0x1056   : > { %v3540_v15 = vmul.f32 %v7448_v43, %v7553_v33  ;;  %v3688_v62 = vmul.f32 0.70710677, %v3672_v4  ;;  %v3645_v42 = vadd.f32 %v7580_v8, %v3625_v58  ;;  %v3659_v18 = vmul.f32 %v7631_v49, %v3644_v41 }
0x1057   : > { %v3560_v21 = vmul.f32 %v7450_v23, %v7537_v54  ;;  %v3689_v63 = vmul.f32 0.70710677, %v3673_v0  ;;  %v3646_v60 = vadd.f32 %v3638_v56, %v3626_v48  ;;  %v3647_v51 = vadd.f32 %v3639_v12, %v3627_v6 }
0x1058   : > { %5223 = verf.f32 %v3688_v62  ;;  %v3660_v53 = vmul.f32 %v7631_v49, %v3645_v42  ;;  %v3674_v37 = vadd.f32 %v7638_v17, %v3659_v18  ;;  %v3548_v40 = vadd.f32 %v3540_v15, %v3528_v19 }
0x1059   : > { %5225 = verf.f32 %v3689_v63  ;;  %v3661_v43 = vmul.f32 %v7631_v49, %v3646_v60  ;;  %v3662_v33 = vmul.f32 %v7631_v49, %v3647_v51  ;;  %v3621_v8 = vmul.f32 0.0, %v7456_v3 }
0x105a   : > { %v3675_v50 = vadd.f32 %v7638_v17, %v3660_v53  ;;  %v3690_v36 = vmul.f32 0.70710677, %v3674_v37  ;;  %v3568_v23 = vadd.f32 %v3560_v21, %v3548_v40  ;;  %v3580_v54 = vmul.f32 %v7452_v55, %v7561_v1 }
0x105b   : > { %v3676_v32 = vadd.f32 %v7638_v17, %v3661_v43  ;;  %v3677_v52 = vadd.f32 %v7638_v17, %v3662_v33  ;;  %v3609_v24 = vadd.f32 %v7459_v14, %v7613_v16  ;;  %v3641_v20 = vmul.f32 0.0, %v7521_v35 }
0x105c   : > { %v3600_v5 = vmul.f32 %v7454_v25, %v7583_v46  ;;  %v3691_v28 = vmul.f32 0.70710677, %v3675_v50  ;;  %5227 = verf.f32 %v3690_v36  ;;  %v3588_v11 = vadd.f32 %v3580_v54, %v3568_v23  ;;  %v4354_v36 = vld [vmem:[#allocation35] ss:$0 sm:$0xff]  ;;  %v4355_v54 = vld [vmem:[#allocation37] ss:$0 sm:$0xff] }
0x105d   : > { %v3692_v39 = vmul.f32 0.70710677, %v3676_v32  ;;  %v3693_v13 = vmul.f32 0.70710677, %v3677_v52  ;;  %v3620_v55 = vmul.f32 %v7456_v3, %v7547_v38  ;;  %v3629_v30 = vadd.f32 %v3621_v8, %v3609_v24 }
0x105e   : > { %5229 = verf.f32 %v3691_v28  ;;  %v3608_v1 = vadd.f32 %v3600_v5, %v3588_v11  ;;  %v3640_v16 = vmul.f32 %v7521_v35, %v7586_v59  ;;  %v3680_v10 = vmul.f32 0.5, %v3672_v4 }
0x105f   : > { %5231 = verf.f32 %v3692_v39  ;;  %v3649_v14 = vadd.f32 %v3641_v20, %v3629_v30  ;;  %v3681_v27 = vmul.f32 0.5, %v3673_v0  ;;  %v3682_v59 = vmul.f32 0.5, %v3674_v37 }
0x1060   : > { %5233 = verf.f32 %v3693_v13  ;;  %v3628_v19 = vadd.f32 %v3620_v55, %v3608_v1  ;;  %v3683_v56 = vmul.f32 0.5, %v3675_v50  ;;  %v3684_v15 = vmul.f32 0.5, %v3676_v32 }
0x1061   : > { %v3664_v46 = vmul.f32 %v7631_v49, %v3649_v14  ;;  %v3685_v62 = vmul.f32 0.5, %v3677_v52  ;;  %v7918_v14 = vld [vmem:[#allocation59_spill] sm:$0xff] }
0x1062   : > { %v5224_v47 = vpop.eup %5223  ;;  %v3648_v25 = vadd.f32 %v3640_v16, %v3628_v19 }
0x1063   : > { %v5226_v29 = vpop.eup %5225  ;;  %v3704_v44 = vadd.f32 1.0, %v5224_v47  ;;  %v3679_v38 = vadd.f32 %v7638_v17, %v3664_v46 }
0x1064   : > { %v3705_v34 = vadd.f32 1.0, %v5226_v29  ;;  %v3663_v3 = vmul.f32 %v7631_v49, %v3648_v25 }
0x1065   : > { %v3712_v9 = vmul.f32 %v3704_v44, %v3680_v10  ;;  %v3695_v35 = vmul.f32 0.70710677, %v3679_v38  ;;  %v3687_v40 = vmul.f32 0.5, %v3679_v38 }
0x1066   : > { %v5228_v7 = vpop.eup %5227  ;;  %v3713_v26 = vmul.f32 %v3705_v34, %v3681_v27  ;;  %v3678_v45 = vadd.f32 %v7638_v17, %v3663_v3 }
0x1067   : > { %v3706_v22 = vadd.f32 1.0, %v5228_v7  ;;  %5235 = verf.f32 %v3695_v35  ;;  %v7921_v35 = vld [vmem:[#allocation63_spill] sm:$0xff] }
0x1068   : > { %v5230_v2 = vpop.eup %5229  ;;  %v3720_v58 = vpack.c.bf16 %v3713_v26, %v3712_v9  ;;  %v3694_v41 = vmul.f32 0.70710677, %v3678_v45  ;;  %v3686_v37 = vmul.f32 0.5, %v3678_v45  ;;  %v7920_v9 = vld [vmem:[#allocation60_spill] sm:$0xff] }
0x1069   : > { %v5232_v4 = vpop.eup %5231  ;;  %v3707_v0 = vadd.f32 1.0, %v5230_v2  ;;  %v3714_v48 = vmul.f32 %v3706_v22, %v3682_v59  ;;  %v7923_v22 = vld [vmem:[#allocation61_spill] sm:$0xff] }
0x106a   : > { %v5234_v6 = vpop.eup %5233  ;;  %4643 = vmatprep.mubr.bf16.mxu1 %v3720_v58  ;;  %v3708_v49 = vadd.f32 1.0, %v5232_v4  ;;  %5237 = verf.f32 %v3694_v41 }
0x106b   : > { %v3715_v12 = vmul.f32 %v3707_v0, %v3683_v56  ;;  %v3709_v42 = vadd.f32 1.0, %v5234_v6 }
0x106c   : > { %v3716_v18 = vmul.f32 %v3708_v49, %v3684_v15 }
0x106d   : > { %v3721_v17 = vpack.c.bf16 %v3715_v12, %v3714_v48  ;;  %v3717_v21 = vmul.f32 %v3709_v42, %v3685_v62 }
0x106f   : > { %4644 = vmatmul.mubr.bf16.vlgmr.msra.gmra.mrb[48].mxu1 %v3721_v17  ;;  %v3722_v63 = vpack.c.bf16 %v3717_v21, %v3716_v18 }
0x1071   : > { %4647 = vmatprep.mubr.bf16.mxu1 %v3722_v63  ;;  %v5236_v60 = vpop.eup %5235 }
0x1072   : > { %v3711_v51 = vadd.f32 1.0, %v5236_v60 }
0x1074   : > { %v5238_v53 = vpop.eup %5237  ;;  %v3719_v8 = vmul.f32 %v3711_v51, %v3687_v40 }
0x1075   : > { %v3710_v43 = vadd.f32 1.0, %v5238_v53 }
0x1077   : > { %v3718_v33 = vmul.f32 %v3710_v43, %v3686_v37 }
0x1079   : > { %v3723_v50 = vpack.c.bf16 %v3719_v8, %v3718_v33 }
0x107b   : > { %4648 = vmatmul.mubr.bf16.gmra.mrb[52].mxu1 %v3723_v50 }
0x1142   : > { %v4645_v23 = vpop.f32.mrb[48].mxu1 }
0x1143   : > { %v3862_v32 = vmul.f32 %v4645_v23, %v4354_v36  ;;  %v3822_v52 = vpop.f32.mrb[49].mxu1 }
0x1144   : > { %v3860_v24 = vmul.f32 %v4354_v36, %v3822_v52  ;;  %v4646_v20 = vpop.f32.mrb[50].mxu1 }
0x1145   : > { %v3877_v5 = vadd.f32 %v4355_v54, %v3862_v32  ;;  %v3863_v28 = vmul.f32 %v4646_v20, %v4354_v36  ;;  %v3825_v11 = vpop.f32.mrb[51].mxu1 }
0x1146   : > { %v3875_v39 = vadd.f32 %v4355_v54, %v3860_v24  ;;  %v3861_v13 = vmul.f32 %v4354_v36, %v3825_v11 }
0x1147   : > { %v3885_v55 = vadd.f32 %v3877_v5, %v7407_v31  ;;  %v3878_v1 = vadd.f32 %v4355_v54, %v3863_v28 }
0x1148   : > { %v3883_v30 = vadd.f32 %v3875_v39, %v7403_v61  ;;  %v3876_v19 = vadd.f32 %v4355_v54, %v3861_v13 }
0x1149   : > { %3893 = vst.msk [vmem:[%s1046_s14 + $0x10] sm:$0xff] %vm1083_vm0, %v3885_v55  ;;  %v3886_v16 = vadd.f32 %v3878_v1, %v7409_v57  ;;  %v7919_v57 = vld [vmem:[#allocation62_spill] sm:$0xff] }
0x114a   : > { %3891 = vst.msk [vmem:[%s1046_s14] sm:$0xff] %vm1083_vm0, %v3883_v30  ;;  %v3884_v47 = vadd.f32 %v3876_v19, %v7918_v14 }
0x114b   : > { %3894 = vst.msk [vmem:[%s1046_s14 + $0x18] sm:$0xff] %vm1083_vm0, %v3886_v16 }
0x114c   : > { %3892 = vst.msk [vmem:[%s1046_s14 + $0x8] sm:$0xff] %vm1083_vm0, %v3884_v47 }
0x114e   : > { %v4649_v31 = vpop.f32.mrb[52].mxu1 }
0x114f   : > { %v3866_v25 = vmul.f32 %v4649_v31, %v4354_v36  ;;  %v3838_v46 = vpop.f32.mrb[53].mxu1 }
0x1150   : > { %v3864_v61 = vmul.f32 %v4354_v36, %v3838_v46  ;;  %v4650_v29 = vpop.f32.mrb[54].mxu1 }
0x1151   : > { %v3881_v10 = vadd.f32 %v4355_v54, %v3866_v25  ;;  %v3867_v44 = vmul.f32 %v4650_v29, %v4354_v36  ;;  %v3841_v27 = vpop.f32.mrb[55].mxu1 }
0x1152   : > { %v3879_v34 = vadd.f32 %v4355_v54, %v3864_v61  ;;  %v3865_v3 = vmul.f32 %v4354_v36, %v3841_v27 }
0x1153   : > { %v3889_v38 = vadd.f32 %v3881_v10, %v7919_v57  ;;  %v3882_v7 = vadd.f32 %v4355_v54, %v3867_v44 }
0x1154   : > { %v3887_v26 = vadd.f32 %v3879_v34, %v7920_v9  ;;  %v3880_v45 = vadd.f32 %v4355_v54, %v3865_v3 }
0x1155   : > { %3897 = vst.msk [vmem:[%s1046_s14 + $0x30] sm:$0xff] %vm1083_vm0, %v3889_v38  ;;  %v3890_v59 = vadd.f32 %v3882_v7, %v7921_v35 }
0x1156   : > { %3895 = vst.msk [vmem:[%s1046_s14 + $0x20] sm:$0xff] %vm1083_vm0, %v3887_v26  ;;  %v3888_v2 = vadd.f32 %v3880_v45, %v7923_v22 }
0x1157   : > { %3898 = vst.msk [vmem:[%s1046_s14 + $0x38] sm:$0xff] %vm1083_vm0, %v3890_v59 }
0x1158   : > { %3896 = vst.msk [vmem:[%s1046_s14 + $0x28] sm:$0xff] %vm1083_vm0, %v3888_v2 }
0x1159   : > { %5908 = shalt.err (!%p5905_p0)
}
0x115a   : > { %s5909_s0 = scalar_lea.hbm %s7703_s7, 1024  ;;  %s5913_s4 = scalar_lea.hbm %s7922_s29, 2048 }
0x115b   : > { %p5910_p12 = scmp.ne.s32.totalorder %s7703_s7, %s5909_s0  ;;  %p5914_p3 = scmp.lt.u32.totalorder %s7703_s7, %s7922_s29 }
0x115c   : > { %p5915_p7 = scmp.lt.u32.totalorder %s5913_s4, %s5909_s0  ;;  %p5917_p6 = scmp.lt.u32.totalorder %s5909_s0, %s7703_s7 }
0x115d   : > { %p5911_p13 = pnand %p5910_p12, %p7924_p10 }
0x115e   : > { %p5916_p2 = por %p5915_p7, %p5914_p3 }
0x115f   : > { %p5912_p1 = pneg %p5911_p13 }
0x1160   : > { %p5918_p5 = por %p5917_p6, %p5916_p2 }
0x1162   : > { %p5919_p9 = pnand %p5918_p5, %p5912_p1 }
0x1164   : > { %5922 = shalt.err (!%p5919_p9)
}
0x1165   : > { %s6049_s9 = smov 128  }
0x1166   : > { %4755 = dma.vmem_to_hbm [thread:$0]  (%p7924_p10), %s7707_s16, 1024, %s7703_s7, %s3900_s12, %s6049_s9, %s6049_s9, %s6045_s23  }
0x1167 PF: > { %s7925_s11 = sld [smem:[#allocation53_spill]]  ;;  %s7926_s18 = sld [smem:[#allocation56_spill]] }
0x1168   : > { %p7927_p4 = scmp.ne.s32.totalorder %s7881_s24, 0 }
0x116d   : > { %s3928_s8 = sand.u32 1, %s7925_s11   ;;  %p7928_p8 = scmp.ge.s32.totalorder %s7926_s18, 2 }
0x116e   : > { %s3929_s13 = scalar_lea.sflag [#allocation4], %s3928_s8 }
0x116f   : > { %p4829_p11 = pnand %p7928_p8, %p7927_p4 }
0x1171   : > { %5992 = dma.done.wait (!%p4829_p11), %s3929_s13, 1024  }
0x1172   : > { %5994 = vsyncadd (!%p4829_p11), %s3929_s13, 4294966272  ;;  %s7929_s4 = sld [smem:[#allocation54_spill]]  ;;  %s7930_s30 = sld [smem:[#allocation55_spill]] }
0x1173   : > { %p49_p0 = scmp.ge.s32.totalorder %s6642_s25, 4   ;;  %s7931_s24 = smov %s6654_s5 }
0x1175   :  { %51 = sbr.rel (!%p49_p0) target bundleno = 40 (0x28), region = 254 }
0x117c   :  { %3934 = vsyncpa [#allocation3], 1 }
0x117d   :  { %3936 = vsyncpa [#allocation3 + $0x1], 1 }
0x117e   :  { %3937 = vsyncpa [#allocation6], 1 }
0x117f   :  { %3939 = vsyncpa [#allocation6 + $0x1], 1 }
0x1180   :  { %3940 = vsyncpa [#allocation9], 1 }
0x1181   :  { %3941 = vsyncpa [#allocation12], 1 }
0x1182   :  { %3942 = vsyncpa [#allocation15], 1 }
0x1183   :  { %3943 = vsyncpa [#allocation18], 1 }
0x1184   :  { %3944 = vsyncpa [#allocation21], 1 }
0x1185   :  { %3945 = vsyncpa [#allocation24], 1 }
0x1186   :  { %3946 = vsyncpa [#allocation27], 1 }
0x1187   :  { %3947 = vsyncpa [#allocation30], 1 }
0x1188   :  { %3948 = vsyncpa [#allocation33], 1 }
0x1189   :  { %3949 = vsyncpa [#allocation36], 1 }
0x118a   :  { %3950 = vsyncpa [#allocation4], 1 }
0x118b   :  { %3952 = vsyncpa [#allocation4 + $0x1], 1 }

</bundles_post_ra>
